<compile_context>
chip_gen: v5e
topology: v5e:2x2
jax: 0.10.0
libtpu: 0.0.40
codegen_flags: <defaults>
</compile_context>

<pallas_src>
import math

import jax
import jax.numpy as jnp
from jax.experimental import pallas as pl
from jax.experimental.pallas import tpu as pltpu

N_CLASSES = 20
N_BOXES = 4
C_IN = 512            # fixed by the module (Conv2d(512, ...))
KH = KW = 3

C_BOX = N_BOXES * 4           # 16
C_CLS = N_BOXES * N_CLASSES   # 80
C_FUSED = C_BOX + C_CLS       # 96
C_PAD = 128                   # fused output channels padded to one lane register


def _round_up(x, m):
    return (x + m - 1) // m * m


def _pred_kernel(x_ref, w_ref, b_ref, out_ref):
    """Grid = (batch, row_tiles).  One (image, output-row band) per step.

    x_ref  : (1, H+2, WP, 512) bf16  zero-padded NHWC feature map
                                     (WP >= W+2, WP % 8 == 0)
    w_ref  : (3, 512, 3*128)   bf16  w_ref[dy][:, dx*128:(dx+1)*128] = tap (dy,dx)
                                     (cols 0:16 box head, 16:96 class head, 96:128 zero)
    b_ref  : (1, 128)          f32   fused, zero-padded bias
    out_ref: (1, TH*WP, 128)   f32   width-padded fused output rows of this band
    """
    wp = x_ref.shape[2]
    c = x_ref.shape[3]
    m = out_ref.shape[1]            # TH * WP
    th = m // wp                    # output rows in this band
    row0 = pl.program_id(1) * th    # first padded input row of this band

    def band(dy):
        # (TH, WP, 512) -> (TH*WP, 512); free re-view because WP % 8 == 0.
        return x_ref[0, pl.ds(row0 + dy, th), :, :].reshape(m, c)

    # 3x3 conv as 3 wide MXU matmuls (one per kernel row dy); all three dx taps
    # are produced at once via the stacked 3*128 output columns.
    acc = jnp.dot(band(0), w_ref[0], preferred_element_type=jnp.float32)
    acc = acc + jnp.dot(band(1), w_ref[1], preferred_element_type=jnp.float32)
    acc = acc + jnp.dot(band(2), w_ref[2], preferred_element_type=jnp.float32)

    # Combine the dx taps with sublane rolls on the narrow 128-wide groups
    # (XLU slot; lane-dense, sublane-aligned -- no window-slice relayouts):
    #   out[r] = g0[r] + g1[r+1] + g2[r+2]
    # Wrapped rows only land in the padded width columns, stripped by the wrapper.
    g0 = acc[:, 0 * C_PAD:1 * C_PAD]
    g1 = pltpu.roll(acc[:, 1 * C_PAD:2 * C_PAD], shift=m - 1, axis=0)
    g2 = pltpu.roll(acc[:, 2 * C_PAD:3 * C_PAD], shift=m - 2, axis=0)

    out_ref[...] = (g0 + g1 + g2 + b_ref[...]).reshape(1, m, C_PAD)


def prediction_layers_forward(feature_map_nchw, w_box, b_box, w_cls, b_cls,
                              row_tiles=2):
    """Forward pass matching PredictionLayers.forward.

    feature_map_nchw : (N, 512, H, W) float32 (PyTorch NCHW convention)
    w_box : (3, 3, 512, 16) HWIO, b_box : (16,)
    w_cls : (3, 3, 512, 80) HWIO, b_cls : (80,)
    Returns (pred_box, pred_class): (N, H*W*4, 4), (N, H*W*4, 20).
    """
    n, c, h, w = feature_map_nchw.shape
    assert c == C_IN

    if h % row_tiles != 0:          # keep row bands equal-sized
        row_tiles = 1
    th = h // row_tiles

    # Pad width so WP % 8 == 0 (left pad 1 for the conv, rest on the right):
    # the per-dy band reshape into the sublane axis is then a free re-view.
    wp = _round_up(w + 2, 8)

    # bf16 BEFORE the transpose -> half the relayout HBM bytes.
    # TODO(synk): producing the backbone feature map in NHWC (or consuming NCHW
    # directly with spatial-on-lanes) would remove this relayout entirely.
    x_bf16 = feature_map_nchw.astype(jnp.bfloat16)
    x_nhwc = jnp.transpose(x_bf16, (0, 2, 3, 1))
    x_pad = jnp.pad(x_nhwc, ((0, 0), (1, 1), (1, wp - w - 1), (0, 0)))

    # Fuse the two heads: (3,3,512,96) -> pad cout to 128 -> per-dy layout
    # (3, 512, 3*128) with the dx taps stacked as aligned 128-column groups.
    w_cat = jnp.concatenate([w_box, w_cls], axis=-1)                        # (3,3,512,96)
    w_cat = jnp.pad(w_cat, ((0, 0), (0, 0), (0, 0), (0, C_PAD - C_FUSED)))  # (3,3,512,128)
    w_fused = (jnp.transpose(w_cat, (0, 2, 1, 3))                           # (3,512,3,128)
               .reshape(KH, C_IN, KW * C_PAD)
               .astype(jnp.bfloat16))

    b_fused = jnp.concatenate([b_box, b_cls]).astype(jnp.float32)
    b_fused = jnp.pad(b_fused, (0, C_PAD - C_FUSED)).reshape(1, C_PAD)

    out = pl.pallas_call(
        _pred_kernel,
        out_shape=jax.ShapeDtypeStruct((n, h * wp, C_PAD), jnp.float32),
        grid_spec=pltpu.PrefetchScalarGridSpec(
            num_scalar_prefetch=0,
            grid=(n, row_tiles),
            in_specs=[
                # Full padded image; index_map ignores t so the block stays
                # resident across the row-tile axis (fetched once per image).
                pl.BlockSpec((1, h + 2, wp, C_IN), lambda i, t: (i, 0, 0, 0)),
                pl.BlockSpec((KH, C_IN, KW * C_PAD), lambda i, t: (0, 0, 0)),
                pl.BlockSpec((1, C_PAD), lambda i, t: (0, 0)),
            ],
            out_specs=pl.BlockSpec((1, th * wp, C_PAD), lambda i, t: (i, t, 0)),
        ),
        compiler_params=pltpu.CompilerParams(
            dimension_semantics=("parallel", "parallel"),
            vmem_limit_bytes=24 * 1024 * 1024,
        ),
    )(x_pad, w_fused, b_fused)

    # Strip padded width columns / padded lanes.  Same element ordering as
    # permute(0,2,3,1).contiguous().view(N,-1,4) / view(N,-1,n_classes).
    out = out.reshape(n, h, wp, C_PAD)[:, :, :w, :]
    pred_box = out[..., :C_BOX].reshape(n, h * w * N_BOXES, 4)
    pred_class = out[..., C_BOX:C_FUSED].reshape(n, h * w * N_BOXES, N_CLASSES)
    return pred_box, pred_class


def _xavier_uniform(key, shape_hwio):
    """Xavier uniform matching torch.nn.init.xavier_uniform_ on (Cout, Cin, kh, kw)."""
    kh, kw, cin, cout = shape_hwio
    fan_in = cin * kh * kw
    fan_out = cout * kh * kw
    bound = math.sqrt(6.0 / (fan_in + fan_out))
    return jax.random.uniform(key, shape_hwio, jnp.float32, -bound, bound)


def _reference_forward(feature_map_nchw, w_box, b_box, w_cls, b_cls):
    """Pure-JAX f32 reference (lax conv) for correctness checking."""
    x_nhwc = jnp.transpose(feature_map_nchw, (0, 2, 3, 1))
    dn = ("NHWC", "HWIO", "NHWC")
    box = jax.lax.conv_general_dilated(
        x_nhwc, w_box, (1, 1), "SAME", dimension_numbers=dn,
        precision=jax.lax.Precision.HIGHEST) + b_box
    cls = jax.lax.conv_general_dilated(
        x_nhwc, w_cls, (1, 1), "SAME", dimension_numbers=dn,
        precision=jax.lax.Precision.HIGHEST) + b_cls
    n = feature_map_nchw.shape[0]
    return box.reshape(n, -1, 4), cls.reshape(n, -1, N_CLASSES)


if __name__ == "__main__":
    key = jax.random.PRNGKey(0)
    k_x, k_wb, k_wc = jax.random.split(key, 3)

    # Small spatial size instead of the full 38x38 of partialVGG16 (channels are
    # fixed at 512 by the module).  W+2 = 16 is already a multiple of 8.
    N, H, W = 2, 14, 14
    feature_map = jax.random.normal(k_x, (N, C_IN, H, W), jnp.float32)

    # Deterministic xavier-uniform weights, zero biases (as in init_params).
    w_box = _xavier_uniform(k_wb, (KH, KW, C_IN, C_BOX))
    b_box = jnp.zeros((C_BOX,), jnp.float32)
    w_cls = _xavier_uniform(k_wc, (KH, KW, C_IN, C_CLS))
    b_cls = jnp.zeros((C_CLS,), jnp.float32)

    pred_box, pred_class = prediction_layers_forward(
        feature_map, w_box, b_box, w_cls, b_cls)
    pred_box = jax.block_until_ready(pred_box)
    pred_class = jax.block_until_ready(pred_class)

    assert pred_box.shape == (N, H * W * N_BOXES, 4)
    assert pred_class.shape == (N, H * W * N_BOXES, N_CLASSES)

    ref_box, ref_class = _reference_forward(
        feature_map, w_box, b_box, w_cls, b_cls)
    # bf16 inputs/weights with f32 accumulation over 9*512-term dot products:
    # estimated max abs error ~1.5e-2 at these magnitudes.
    assert jnp.allclose(pred_box, ref_box, atol=4e-2, rtol=4e-2)
    assert jnp.allclose(pred_class, ref_class, atol=4e-2, rtol=4e-2)

    print("KERNEL_OK")
</pallas_src>

<mosaic_0001>
module attributes {stable_mosaic.version = 11 : i64} {
  func.func @_pred_kernel(%arg0: i32, %arg1: i32, %arg2: memref<1x16x16x512xbf16, #tpu.memory_space<vmem>>, %arg3: memref<3x512x384xbf16, #tpu.memory_space<vmem>>, %arg4: memref<1x128xf32, #tpu.memory_space<vmem>>, %arg5: memref<1x112x128xf32, #tpu.memory_space<vmem>>) attributes {dimension_semantics = [#tpu.dimension_semantics<parallel>, #tpu.dimension_semantics<parallel>], iteration_bounds = array<i64: 2, 2>, scalar_prefetch = 0 : i64, scratch_operands = 0 : i64, tpu.core_type = #tpu.core_type<tc>, window_params = [{transform_indices = @transform_0, window_bounds = array<i64: 1, 16, 16, 512>}, {pipeline_mode = #tpu.pipeline_mode<synchronous>, transform_indices = @transform_1, window_bounds = array<i64: 3, 512, 384>}, {pipeline_mode = #tpu.pipeline_mode<synchronous>, transform_indices = @transform_2, window_bounds = array<i64: 1, 128>}, {transform_indices = @transform_3, window_bounds = array<i64: 1, 112, 128>}]} {
    %c7_i32 = arith.constant 7 : i32
    %0 = arith.muli %arg1, %c7_i32 : i32
    %c0_i32 = arith.constant 0 : i32
    %1 = arith.addi %0, %c0_i32 : i32
    %c0 = arith.constant 0 : index
    %2 = arith.index_cast %1 : i32 to index
    %c0_0 = arith.constant 0 : index
    %c0_1 = arith.constant 0 : index
    %3 = vector.load %arg2[%c0, %2, %c0_0, %c0_1] : memref<1x16x16x512xbf16, #tpu.memory_space<vmem>>, vector<1x7x16x512xbf16>
    %4 = vector.shape_cast %3 : vector<1x7x16x512xbf16> to vector<7x16x512xbf16>
    %5 = vector.shape_cast %4 : vector<7x16x512xbf16> to vector<112x512xbf16>
    %c0_2 = arith.constant 0 : index
    %c0_3 = arith.constant 0 : index
    %c0_4 = arith.constant 0 : index
    %6 = vector.load %arg3[%c0_2, %c0_3, %c0_4] : memref<3x512x384xbf16, #tpu.memory_space<vmem>>, vector<1x512x384xbf16>
    %7 = vector.shape_cast %6 : vector<1x512x384xbf16> to vector<512x384xbf16>
    %cst = arith.constant dense<0.000000e+00> : vector<112x384xf32>
    %8 = tpu.matmul %5, %7, %cst {dimension_numbers = #tpu.dot_dimension_numbers<[1], [0], [0], [1], [0, 0, 1, 1], [], []>} : vector<112x512xbf16>, vector<512x384xbf16>, vector<112x384xf32> -> vector<112x384xf32>
    %c1_i32 = arith.constant 1 : i32
    %9 = arith.addi %0, %c1_i32 : i32
    %c0_5 = arith.constant 0 : index
    %10 = arith.index_cast %9 : i32 to index
    %c0_6 = arith.constant 0 : index
    %c0_7 = arith.constant 0 : index
    %11 = vector.load %arg2[%c0_5, %10, %c0_6, %c0_7] : memref<1x16x16x512xbf16, #tpu.memory_space<vmem>>, vector<1x7x16x512xbf16>
    %12 = vector.shape_cast %11 : vector<1x7x16x512xbf16> to vector<7x16x512xbf16>
    %13 = vector.shape_cast %12 : vector<7x16x512xbf16> to vector<112x512xbf16>
    %c1 = arith.constant 1 : index
    %c0_8 = arith.constant 0 : index
    %c0_9 = arith.constant 0 : index
    %14 = vector.load %arg3[%c1, %c0_8, %c0_9] : memref<3x512x384xbf16, #tpu.memory_space<vmem>>, vector<1x512x384xbf16>
    %15 = vector.shape_cast %14 : vector<1x512x384xbf16> to vector<512x384xbf16>
    %cst_10 = arith.constant dense<0.000000e+00> : vector<112x384xf32>
    %16 = tpu.matmul %13, %15, %cst_10 {dimension_numbers = #tpu.dot_dimension_numbers<[1], [0], [0], [1], [0, 0, 1, 1], [], []>} : vector<112x512xbf16>, vector<512x384xbf16>, vector<112x384xf32> -> vector<112x384xf32>
    %17 = arith.addf %8, %16 : vector<112x384xf32>
    %c2_i32 = arith.constant 2 : i32
    %18 = arith.addi %0, %c2_i32 : i32
    %c0_11 = arith.constant 0 : index
    %19 = arith.index_cast %18 : i32 to index
    %c0_12 = arith.constant 0 : index
    %c0_13 = arith.constant 0 : index
    %20 = vector.load %arg2[%c0_11, %19, %c0_12, %c0_13] : memref<1x16x16x512xbf16, #tpu.memory_space<vmem>>, vector<1x7x16x512xbf16>
    %21 = vector.shape_cast %20 : vector<1x7x16x512xbf16> to vector<7x16x512xbf16>
    %22 = vector.shape_cast %21 : vector<7x16x512xbf16> to vector<112x512xbf16>
    %c2 = arith.constant 2 : index
    %c0_14 = arith.constant 0 : index
    %c0_15 = arith.constant 0 : index
    %23 = vector.load %arg3[%c2, %c0_14, %c0_15] : memref<3x512x384xbf16, #tpu.memory_space<vmem>>, vector<1x512x384xbf16>
    %24 = vector.shape_cast %23 : vector<1x512x384xbf16> to vector<512x384xbf16>
    %cst_16 = arith.constant dense<0.000000e+00> : vector<112x384xf32>
    %25 = tpu.matmul %22, %24, %cst_16 {dimension_numbers = #tpu.dot_dimension_numbers<[1], [0], [0], [1], [0, 0, 1, 1], [], []>} : vector<112x512xbf16>, vector<512x384xbf16>, vector<112x384xf32> -> vector<112x384xf32>
    %26 = arith.addf %17, %25 : vector<112x384xf32>
    %27 = vector.extract_strided_slice %26 {offsets = [0, 0], sizes = [112, 128], strides = [1, 1]} : vector<112x384xf32> to vector<112x128xf32>
    %28 = vector.extract_strided_slice %26 {offsets = [0, 128], sizes = [112, 128], strides = [1, 1]} : vector<112x384xf32> to vector<112x128xf32>
    %c111_i32 = arith.constant 111 : i32
    %29 = tpu.dynamic_rotate %28 by %c111_i32 dim 0 : vector<112x128xf32>, i32 -> vector<112x128xf32>
    %30 = vector.extract_strided_slice %26 {offsets = [0, 256], sizes = [112, 128], strides = [1, 1]} : vector<112x384xf32> to vector<112x128xf32>
    %c110_i32 = arith.constant 110 : i32
    %31 = tpu.dynamic_rotate %30 by %c110_i32 dim 0 : vector<112x128xf32>, i32 -> vector<112x128xf32>
    %32 = arith.addf %27, %29 : vector<112x128xf32>
    %33 = arith.addf %32, %31 : vector<112x128xf32>
    %c0_17 = arith.constant 0 : index
    %c0_18 = arith.constant 0 : index
    %34 = vector.load %arg4[%c0_17, %c0_18] : memref<1x128xf32, #tpu.memory_space<vmem>>, vector<1x128xf32>
    %35 = vector.broadcast %34 : vector<1x128xf32> to vector<112x128xf32>
    %36 = arith.addf %33, %35 : vector<112x128xf32>
    %37 = vector.shape_cast %36 : vector<112x128xf32> to vector<1x112x128xf32>
    %c0_19 = arith.constant 0 : index
    %c0_20 = arith.constant 0 : index
    %c0_21 = arith.constant 0 : index
    %38 = vector.load %arg5[%c0_19, %c0_20, %c0_21] : memref<1x112x128xf32, #tpu.memory_space<vmem>>, vector<1x112x128xf32>
    tpu.vector_store %arg5[%c0_19, %c0_20, %c0_21], %37 {strides = array<i32>} : memref<1x112x128xf32, #tpu.memory_space<vmem>>, vector<1x112x128xf32>,
    return
  }
  func.func @transform_0(%arg0: i32, %arg1: i32) -> (i32, i32, i32, i32) {
    %c0_i32 = arith.constant 0 : i32
    %c0_i32_0 = arith.constant 0 : i32
    %c0_i32_1 = arith.constant 0 : i32
    %c0_i32_2 = arith.constant 0 : i32
    return %arg0, %c0_i32, %c0_i32_0, %c0_i32_1 : i32, i32, i32, i32
  }
  func.func @transform_1(%arg0: i32, %arg1: i32) -> (i32, i32, i32) {
    %c0_i32 = arith.constant 0 : i32
    %c0_i32_0 = arith.constant 0 : i32
    %c0_i32_1 = arith.constant 0 : i32
    %c0_i32_2 = arith.constant 0 : i32
    return %c0_i32, %c0_i32_0, %c0_i32_1 : i32, i32, i32
  }
  func.func @transform_2(%arg0: i32, %arg1: i32) -> (i32, i32) {
    %c0_i32 = arith.constant 0 : i32
    %c0_i32_0 = arith.constant 0 : i32
    %c0_i32_1 = arith.constant 0 : i32
    return %c0_i32, %c0_i32_0 : i32, i32
  }
  func.func @transform_3(%arg0: i32, %arg1: i32) -> (i32, i32, i32) {
    %c0_i32 = arith.constant 0 : i32
    %c0_i32_0 = arith.constant 0 : i32
    return %arg0, %arg1, %c0_i32 : i32, i32, i32
  }
}

</mosaic_0001>

<bundles_post_ra>
// kernel: tpu_custom_call.1
= control target key start
LH: loop header
LB: loop body
LE: loop exit
PB: predicated region body
PF: predicated region fallthrough
CT: control target
= control target key end

     0   :  { %s8108_s0 = inlined_call_operand.hbm [shape: bf16[2,16,16,512], index: 0, kind: input, shape index: {}]   ;;  %s8109_s1 = inlined_call_operand.hbm [shape: bf16[3,512,384], index: 1, kind: input, shape index: {}]   ;;  %s8110_s2 = inlined_call_operand.hbm [shape: f32[1,128], index: 2, kind: input, shape index: {}]   ;;  %s8111_s3 = inlined_call_operand.hbm [shape: f32[2,224,128], index: 3, kind: output, shape index: {}]  }
   0x1   :  { %8119 = sst [smem:[#allocation45_spill]] %s8109_s1 }
   0x2   :  { %8120 = sst [smem:[#allocation46_spill]] %s8110_s2 }
   0x3   :  { %8 = vsyncpa [#allocation3], 0 }
   0x4   :  { %10 = vsyncpa [#allocation3 + $0x1], 0 }
   0x5   :  { %11 = vsyncpa [#allocation6], 0 }
   0x6   :  { %12 = vsyncpa [#allocation4], 0 }
   0x7   :  { %14 = vsyncpa [#allocation4 + $0x1], 0  ;;  %s6871_s12 = smov 0   ;;  %s6873_s13 = smov 0  }
   0x8   :  { %s6875_s14 = smov 0   ;;  %s6877_s15 = smov 0  }
   0x9   :  { %s6879_s16 = smov 0   ;;  %s6881_s17 = smov 0  }
   0xa   :  { %s6883_s18 = smov 0   ;;  %s6885_s19 = smov 0  }
   0xb   :  { %s6887_s20 = smov 0   ;;  %s6889_s21 = smov 0  }
   0xc   :  { %s6891_s22 = smov 0  }
   0xd LB: > { %8121 = sst [smem:[#allocation12_spill]] %s6801_s12  ;;  %s4555_s23 = sadd.s32 4294967295, %s6841_s22   ;;  %s6841_s22 = sphi %s6891_s22, %s20_s22   ;;  %s6837_s21 = sphi %s6889_s21, %s8252_s21   ;;  %s6833_s20 = sphi %s6887_s20, %s8243_s20   ;;  %s6829_s19 = sphi %s6885_s19, %s8251_s19   ;;  %s6825_s18 = sphi %s6883_s18, %s8242_s18   ;;  %s6821_s17 = sphi %s6881_s17, %s8250_s17   ;;  %s6817_s16 = sphi %s6879_s16, %s8249_s16   ;;  %s6813_s15 = sphi %s6877_s15, %s8248_s15   ;;  %s6809_s14 = sphi %s6875_s14, %s8247_s14   ;;  %s6805_s13 = sphi %s6873_s13, %s8246_s13   ;;  %s6801_s12 = sphi %s6871_s12, %s8245_s12  }
   0xe   : > { %8122 = sst [smem:[#allocation13_spill]] %s6833_s20  ;;  %s4556_s24 = sadd.s32 4294967294, %s6841_s22  }
   0xf   : > { %p52_p0 = scmp.ne.s32.totalorder %s6817_s16, %s6813_s15  ;;  %p6927_p1 = scmp.eq.s32.totalorder %s4555_s23, 0 }
  0x10   : > { %p119_p2 = scmp.ne.s32.totalorder %s6809_s14, %s6805_s13  ;;  %p120_p3 = scmp.eq.s32.totalorder %s4555_s23, 3 }
  0x11   : > { %p6935_p4 = por %p6927_p1, %p52_p0  ;;  %p125_p5 = scmp.ne.s32.totalorder %s6805_s13, %s6801_s12 }
  0x12   : > { %p6941_p6 = por %p120_p3, %p119_p2  ;;  %p126_p7 = scmp.eq.s32.totalorder %s4556_s24, 3 }
  0x13   : > { %p4557_p8 = scmp.ge.s32.totalorder %s6841_s22, 1  ;;  %p133_p9 = scmp.lt.s32.totalorder %s6841_s22, 5 }
  0x14   : > { %s8125_s27 = scalar_select %p6941_p6, 1, 0 }
  0x15   : > { %p6947_p10 = por %p126_p7, %p125_p5  ;;  %p6951_p11 = pnand %p4557_p8, %p133_p9 }
  0x16   : > { %8126 = sst [smem:[#allocation14_spill]] %s8125_s27  ;;  %s6843_s6 = smov [#allocation5]  }
  0x17   : > { %s8127_s28 = scalar_select %p6947_p10, 1, 0 }
  0x18   : > { %s8130_s1 = sld [smem:[#allocation45_spill]]  ;;  %p6507_p12 = pneg %p6951_p11 }
  0x19   : > { %8128 = sst [smem:[#allocation15_spill]] %s8127_s28  ;;  %s146_s7 = sshll.u32 %s6843_s6, 4  ;;  %s147_s7 = int_to_ptr.vmem [resolvable:$true] %s146_s7 }
  0x1a   : > { %p6508_p13 = pnand %p6507_p12, %p6927_p1  ;;  %s8131_s2 = sld [smem:[#allocation46_spill]] }
  0x1b   : > { %s6844_s11 = smov 192   ;;  %s6845_s15 = smov 12  }
  0x1c   : > { %s6846_s23 = smov [#allocation7]   ;;  %s29_s30 = sadd.s32 1, %s6833_s20 }
  0x1d   : > { %s161_s24 = sshll.u32 %s6846_s23, 4  ;;  %p30_p0 = scmp.ge.s32.totalorder %s29_s30, 2  ;;  %s162_s24 = int_to_ptr.vmem [resolvable:$true] %s161_s24 }
  0x1e   : > { %s144_s5 = sshll.u32 %s8130_s1, 4  ;;  %s32_s4 = sadd.s32 1, %s6837_s21  ;;  %s145_s5 = int_to_ptr.hbm [resolvable:$true] %s144_s5 }
  0x1f   : > { %6510 = dma.hbm_to_vmem [thread:$0]  (!%p6508_p13), %s145_s5, 36864, %s147_s7, [#allocation6], %s6844_s11, %s6844_s11, %s6845_s15  }
  0x20   : > { %s159_s10 = sshll.u32 %s8131_s2, 4  ;;  %s39_s6 = sadd.s32 1, %s6821_s17  ;;  %s160_s10 = int_to_ptr.hbm [resolvable:$true] %s159_s10 }
  0x21   : > { %6513 = dma.hbm_to_vmem [thread:$0]  (!%p6508_p13), %s160_s10, 16, %s162_s24, [#allocation6]  }
  0x22   : > { %p46_p2 = scmp.ne.s32.totalorder %s6821_s17, %s6817_s16  ;;  %s8254_s30 = smov (%p30_p0, %s29_s30), 0 }
  0x23   : > { %8132 = sst [smem:[#allocation16_spill]] %s8254_s30  ;;  %s8256_s4 = smov (!%p30_p0, %s32_s4), %s6837_s21 }
  0x24   : > { %p47_p3 = scmp.eq.s32.totalorder %s6841_s22, 0  ;;  %s105_s5 = ssub.s32 %s6833_s20, %s8254_s30 }
  0x25   : > { %p34_p5 = scmp.ge.s32.totalorder %s8256_s4, 2  ;;  %s109_s7 = sadd.s32 1, %s6809_s14 }
  0x26   : > { %p6977_p7 = por %p47_p3, %p46_p2  ;;  %p6524_p8 = scmp.lt.s32.totalorder %s6841_s22, 4 }
  0x27   : > { %s8258_s4 = smov (%p34_p5, %s8256_s4), 0  ;;  %s172_s9 = sand.u32 1, %s6821_s17  }
  0x28   : > { %8134 = sst [smem:[#allocation17_spill]] %s8258_s4  ;;  %s6119_s10 = sshll.u32 %s6837_s21, 9 }
  0x29   : > { %s36_s11 = ssub.s32 %s6837_s21, %s8258_s4  ;;  %s4561_s23 = sshll.u32 %s172_s9, 9 }
  0x2a   : > { %p37_p9 = scmp.eq.s32.totalorder %s36_s11, 0  ;;  %s106_s15 = sor.u32 %s105_s5, %s36_s11 }
  0x2b   : > { %p107_p12 = scmp.eq.s32.totalorder %s106_s15, 0  ;;  %s181_s20 = scalar_lea.hbm %s8108_s0, %s6119_s10 }
  0x2c   : > { %s6989_s24 = scalar_select %p37_p9, %s6821_s17, %s39_s6  }
  0x2d   : > { %s6992_s1 = scalar_select %p107_p12, %s6809_s14, %s109_s7  }
  0x2e   : > { %s182_s28 = sshll.u32 %s181_s20, 4  ;;  %s176_s12 = scalar_lea.vmem [#allocation2], %s4561_s23  ;;  %s183_s28 = int_to_ptr.hbm [resolvable:$true] %s182_s28 }
  0x2f   : > { %s184_s27 = sshll.u32 %s176_s12, 4  ;;  %p6515_p13 = pnand %p6524_p8, %p6977_p7  ;;  %s185_s27 = int_to_ptr.vmem [resolvable:$true] %s184_s27 }
  0x30   : > { %s173_s4 = scalar_lea.sflag [#allocation3], %s172_s9  ;;  %s6847_s5 = smov 256  }
  0x31   : > { %s6848_s11 = smov 16   ;;  %196 = sbr.rel (%p6951_p11) target bundleno = 1246 (0x4de), region = 32 }
  0x32   : > { %6517 = dma.hbm_to_vmem [thread:$0]  (!%p6515_p13), %s183_s28, 8192, %s185_s27, %s173_s4, %s6847_s5, %s6847_s5, %s6848_s11  }
  0x36   : > { %s198_s6 = sand.u32 1, %s6817_s16  }
  0x37   : > { %s7004_s2 = sshll.u32 %s198_s6, 9  ;;  %s199_s20 = scalar_lea.sflag [#allocation3], %s198_s6 }
  0x38   : > { %s202_s12 = scalar_lea.vmem [#allocation2], %s7004_s2 }
  0x39   : > { %6788 = dma.done.wait (%p6935_p4), %s199_s20, 8192  }
  0x3a   : > { %6790 = vsyncadd (%p6935_p4), %s199_s20, 4294959104 }
  0x3b   : > { %6792 = dma.done.wait (%p6927_p1), [#allocation6], 36880  }
  0x3c   : > { %6794 = vsyncadd (%p6927_p1), [#allocation6], 4294930416  ;;  %v4797_v0 = vld [vmem:[#allocation5 + $0x3a8] sm:$0xf]  ;;  %v6295_v1 = vld [vmem:[#allocation5 + $0x3b0] sm:$0xf0] }
  0x3d   : > { %v4893_v2 = vld [vmem:[#allocation5 + $0x468] sm:$0xf]  ;;  %v4798_v3 = vor.u32 %v6295_v1, %v4797_v0  ;;  %v6319_v4 = vld [vmem:[#allocation5 + $0x470] sm:$0xf0]  ;;  %v4785_v11 = vld [vmem:[#allocation5 + $0x390] sm:$0xf] }
  0x3e   : > { %v4989_v5 = vld [vmem:[#allocation5 + $0x528] sm:$0xf]  ;;  %v6343_v6 = vld [vmem:[#allocation5 + $0x530] sm:$0xf0]  ;;  %v4894_v7 = vor.u32 %v6319_v4, %v4893_v2  ;;  %v6292_v13 = vld [vmem:[#allocation5 + $0x398] sm:$0xf0] }
  0x3f   : > { %v4990_v8 = vor.u32 %v6343_v6, %v4989_v5  ;;  %v5085_v9 = vld [vmem:[#allocation5 + $0x5e8] sm:$0xf]  ;;  %v6367_v10 = vld [vmem:[#allocation5 + $0x5f0] sm:$0xf0]  ;;  %1210 = vmatpush.bf16.msra.mxu0 %v4798_v3  ;;  %v4881_v14 = vld [vmem:[#allocation5 + $0x450] sm:$0xf]  ;;  %v4786_v16 = vor.u32 %v6292_v13, %v4785_v11 }
  0x40   : > { %v5086_v12 = vor.u32 %v6367_v10, %v5085_v9  ;;  %v6316_v15 = vld [vmem:[#allocation5 + $0x458] sm:$0xf0]  ;;  %1254 = vmatpush.bf16.msra.mxu1 %v4894_v7  ;;  %v4977_v18 = vld [vmem:[#allocation5 + $0x510] sm:$0xf]  ;;  %v4773_v23 = vld [vmem:[#allocation5 + $0x378] sm:$0xf] }
  0x41   : > { %1298 = vmatpush.bf16.msra.mxu2 %v4990_v8  ;;  %v4882_v17 = vor.u32 %v6316_v15, %v4881_v14  ;;  %v6340_v19 = vld [vmem:[#allocation5 + $0x518] sm:$0xf0]  ;;  %v5073_v20 = vld [vmem:[#allocation5 + $0x5d0] sm:$0xf]  ;;  %v6289_v24 = vld [vmem:[#allocation5 + $0x380] sm:$0xf0] }
  0x42   : > { %1342 = vmatpush.bf16.msra.mxu3 %v5086_v12  ;;  %v4978_v21 = vor.u32 %v6340_v19, %v4977_v18  ;;  %v6364_v22 = vld [vmem:[#allocation5 + $0x5d8] sm:$0xf0]  ;;  %v4869_v26 = vld [vmem:[#allocation5 + $0x438] sm:$0xf]  ;;  %v6313_v27 = vld [vmem:[#allocation5 + $0x440] sm:$0xf0]  ;;  %v4774_v29 = vor.u32 %v6289_v24, %v4773_v23 }
  0x43   : > { %v5074_v25 = vor.u32 %v6364_v22, %v5073_v20  ;;  %v4965_v28 = vld [vmem:[#allocation5 + $0x4f8] sm:$0xf]  ;;  %1211 = vmatpush.bf16.msra.mxu0 %v4786_v16  ;;  %v6337_v30 = vld [vmem:[#allocation5 + $0x500] sm:$0xf0]  ;;  %v4870_v33 = vor.u32 %v6313_v27, %v4869_v26  ;;  %v4761_v35 = vld [vmem:[#allocation5 + $0x360] sm:$0xf] }
  0x44   : > { %v5061_v31 = vld [vmem:[#allocation5 + $0x5b8] sm:$0xf]  ;;  %v6361_v32 = vld [vmem:[#allocation5 + $0x5c0] sm:$0xf0]  ;;  %1255 = vmatpush.bf16.msra.mxu1 %v4882_v17  ;;  %v4966_v34 = vor.u32 %v6337_v30, %v4965_v28  ;;  %v6286_v36 = vld [vmem:[#allocation5 + $0x368] sm:$0xf0] }
  0x45   : > { %1299 = vmatpush.bf16.msra.mxu2 %v4978_v21  ;;  %v4857_v37 = vld [vmem:[#allocation5 + $0x420] sm:$0xf]  ;;  %v5062_v38 = vor.u32 %v6361_v32, %v5061_v31  ;;  %v6310_v39 = vld [vmem:[#allocation5 + $0x428] sm:$0xf0]  ;;  %v4762_v44 = vor.u32 %v6286_v36, %v4761_v35  ;;  %v4749_v47 = vld [vmem:[#allocation5 + $0x348] sm:$0xf] }
  0x46   : > { %1343 = vmatpush.bf16.msra.mxu3 %v5074_v25  ;;  %v4953_v40 = vld [vmem:[#allocation5 + $0x4e0] sm:$0xf]  ;;  %v6334_v41 = vld [vmem:[#allocation5 + $0x4e8] sm:$0xf0]  ;;  %v4858_v45 = vor.u32 %v6310_v39, %v4857_v37  ;;  %v6283_v48 = vld [vmem:[#allocation5 + $0x350] sm:$0xf0] }
  0x47   : > { %v5049_v42 = vld [vmem:[#allocation5 + $0x5a0] sm:$0xf]  ;;  %v6358_v43 = vld [vmem:[#allocation5 + $0x5a8] sm:$0xf0]  ;;  %1212 = vmatpush.bf16.msra.mxu0 %v4774_v29  ;;  %v4954_v46 = vor.u32 %v6334_v41, %v4953_v40  ;;  %v4845_v49 = vld [vmem:[#allocation5 + $0x408] sm:$0xf]  ;;  %v4750_v56 = vor.u32 %v6283_v48, %v4749_v47 }
  0x48   : > { %1256 = vmatpush.bf16.msra.mxu1 %v4870_v33  ;;  %v5050_v50 = vor.u32 %v6358_v43, %v5049_v42  ;;  %v6307_v51 = vld [vmem:[#allocation5 + $0x410] sm:$0xf0]  ;;  %v4941_v52 = vld [vmem:[#allocation5 + $0x4c8] sm:$0xf]  ;;  %v4737_v59 = vld [vmem:[#allocation5 + $0x330] sm:$0xf] }
  0x49   : > { %1300 = vmatpush.bf16.msra.mxu2 %v4966_v34  ;;  %v6331_v53 = vld [vmem:[#allocation5 + $0x4d0] sm:$0xf0]  ;;  %v5037_v54 = vld [vmem:[#allocation5 + $0x588] sm:$0xf]  ;;  %v4846_v57 = vor.u32 %v6307_v51, %v4845_v49  ;;  %v6280_v60 = vld [vmem:[#allocation5 + $0x338] sm:$0xf0] }
  0x4a   : > { %1344 = vmatpush.bf16.msra.mxu3 %v5062_v38  ;;  %v6355_v55 = vld [vmem:[#allocation5 + $0x590] sm:$0xf0]  ;;  %v4942_v58 = vor.u32 %v6331_v53, %v4941_v52  ;;  %v4833_v61 = vld [vmem:[#allocation5 + $0x3f0] sm:$0xf]  ;;  %v6304_v63 = vld [vmem:[#allocation5 + $0x3f8] sm:$0xf0]  ;;  %v4738_v4 = vor.u32 %v6280_v60, %v4737_v59 }
  0x4b   : > { %1213 = vmatpush.bf16.msra.mxu0 %v4762_v44  ;;  %v5038_v62 = vor.u32 %v6355_v55, %v5037_v54  ;;  %v4929_v0 = vld [vmem:[#allocation5 + $0x4b0] sm:$0xf]  ;;  %v6328_v1 = vld [vmem:[#allocation5 + $0x4b8] sm:$0xf0]  ;;  %s6120_s25 = smul.u32 224, %s6825_s18  ;;  %v4834_v5 = vor.u32 %v6304_v63, %v4833_v61  ;;  %s233_s27 = sand.u32 1, %s6805_s13  }
  0x4c   : > { %1257 = vmatpush.bf16.msra.mxu1 %v4858_v45  ;;  %v5025_v2 = vld [vmem:[#allocation5 + $0x570] sm:$0xf]  ;;  %v6352_v3 = vld [vmem:[#allocation5 + $0x578] sm:$0xf0]  ;;  %v4930_v6 = vor.u32 %v6328_v1, %v4929_v0  ;;  %v4725_v7 = vld [vmem:[#allocation5 + $0x318] sm:$0xf] }
  0x4d   : > { %1301 = vmatpush.bf16.msra.mxu2 %v4954_v46  ;;  %v6277_v8 = vld [vmem:[#allocation5 + $0x320] sm:$0xf0]  ;;  %v4821_v9 = vld [vmem:[#allocation5 + $0x3d8] sm:$0xf]  ;;  %v5026_v10 = vor.u32 %v6352_v3, %v5025_v2  ;;  %v4713_v16 = vld [vmem:[#allocation5 + $0x300] sm:$0xf]  ;;  %s7018_s26 = scalar_lea.vmem %s202_s12, %s6120_s25 [#allocation2] }
  0x4e   : > { %1345 = vmatpush.bf16.msra.mxu3 %v5050_v50  ;;  %v6301_v11 = vld [vmem:[#allocation5 + $0x3e0] sm:$0xf0]  ;;  %v4917_v12 = vld [vmem:[#allocation5 + $0x498] sm:$0xf]  ;;  %v4726_v17 = vor.u32 %v6277_v8, %v4725_v7  ;;  %v6274_v18 = vld [vmem:[#allocation5 + $0x308] sm:$0xf0] }
  0x4f   : > { %1214 = vmatpush.bf16.msra.mxu0 %v4750_v56  ;;  %v6325_v13 = vld [vmem:[#allocation5 + $0x4a0] sm:$0xf0]  ;;  %v5013_v14 = vld [vmem:[#allocation5 + $0x558] sm:$0xf]  ;;  %v4809_v19 = vld [vmem:[#allocation5 + $0x3c0] sm:$0xf]  ;;  %v4822_v21 = vor.u32 %v6301_v11, %v4821_v9  ;;  %v4714_v34 = vor.u32 %v6274_v18, %v4713_v16 }
  0x50   : > { %1258 = vmatpush.bf16.msra.mxu1 %v4846_v57  ;;  %v6349_v15 = vld [vmem:[#allocation5 + $0x560] sm:$0xf0]  ;;  %v6298_v20 = vld [vmem:[#allocation5 + $0x3c8] sm:$0xf0]  ;;  %v4918_v22 = vor.u32 %v6325_v13, %v4917_v12  ;;  %v4905_v23 = vld [vmem:[#allocation5 + $0x480] sm:$0xf] }
  0x51   : > { %1302 = vmatpush.bf16.msra.mxu2 %v4942_v58  ;;  %v6322_v24 = vld [vmem:[#allocation5 + $0x488] sm:$0xf0]  ;;  %v5001_v25 = vld [vmem:[#allocation5 + $0x540] sm:$0xf]  ;;  %v5014_v26 = vor.u32 %v6349_v15, %v5013_v14  ;;  %v6247_v29 = vld [vmem:[%s7018_s26 + $0x2c] sm:$0xf0]  ;;  %v4810_v38 = vor.u32 %v6298_v20, %v4809_v19 }
  0x52   : > { %1346 = vmatpush.bf16.msra.mxu3 %v5038_v62  ;;  %v6346_v27 = vld [vmem:[#allocation5 + $0x548] sm:$0xf0]  ;;  %v4601_v28 = vld [vmem:[%s7018_s26 + $0x20] sm:$0xf]  ;;  %v6245_v30 = vld [vmem:[%s7018_s26 + $0x24] sm:$0xf]  ;;  %v4906_v39 = vor.u32 %v6322_v24, %v4905_v23 }
  0x53   : > { %1215 = vmatpush.bf16.msra.mxu0 %v4738_v4  ;;  %v4603_v31 = vld [vmem:[%s7018_s26 + $0x30] sm:$0xf0]  ;;  %v6342_v32 = vld [vmem:[#allocation5 + $0x52c] sm:$0xf]  ;;  %v4991_v33 = vld [vmem:[#allocation5 + $0x534] sm:$0xf0]  ;;  %v5002_v43 = vor.u32 %v6346_v27, %v5001_v25  ;;  %v7028_v48 = vor.u32 %v6247_v29, %v4601_v28 }
  0x54   : > { %1259 = vmatpush.bf16.msra.mxu1 %v4834_v5  ;;  %v4609_v35 = vld [vmem:[%s7018_s26 + $0x28] sm:$0xf]  ;;  %v6366_v36 = vld [vmem:[#allocation5 + $0x5ec] sm:$0xf]  ;;  %v5087_v37 = vld [vmem:[#allocation5 + $0x5f4] sm:$0xf0]  ;;  %v4994_v44 = vor.u32 %v6342_v32, %v4991_v33  ;;  %v7030_v53 = vor.u32 %v6245_v30, %v4603_v31 }
  0x55   : > { %1303 = vmatpush.bf16.msra.mxu2 %v4930_v6  ;;  %v6248_v40 = vld [vmem:[%s7018_s26 + $0x34] sm:$0xf0]  ;;  %v6246_v41 = vld [vmem:[%s7018_s26 + $0x2c] sm:$0xf]  ;;  %v4611_v42 = vld [vmem:[%s7018_s26 + $0x38] sm:$0xf0]  ;;  %v5090_v49 = vor.u32 %v6366_v36, %v5087_v37 }
  0x56   : > { %1347 = vmatpush.bf16.msra.mxu3 %v5026_v10  ;;  %v6294_v45 = vld [vmem:[#allocation5 + $0x3ac] sm:$0xf]  ;;  %v4799_v46 = vld [vmem:[#allocation5 + $0x3b4] sm:$0xf0]  ;;  %v6339_v51 = vld [vmem:[#allocation5 + $0x514] sm:$0xf]  ;;  %v7032_v54 = vor.u32 %v6248_v40, %v4609_v35  ;;  %v7034_v57 = vor.u32 %v6246_v41, %v4611_v42 }
  0x57   : > { %1216 = vmatpush.bf16.msra.mxu0 %v4726_v17  ;;  %v6318_v47 = vld [vmem:[#allocation5 + $0x46c] sm:$0xf]  ;;  %v4895_v50 = vld [vmem:[#allocation5 + $0x474] sm:$0xf0]  ;;  %v4979_v52 = vld [vmem:[#allocation5 + $0x51c] sm:$0xf0]  ;;  %v4802_v58 = vor.u32 %v6294_v45, %v4799_v46 }
  0x58   : > { %1260 = vmatpush.bf16.msra.mxu1 %v4822_v21  ;;  %v6363_v55 = vld [vmem:[#allocation5 + $0x5d4] sm:$0xf]  ;;  %v5075_v56 = vld [vmem:[#allocation5 + $0x5dc] sm:$0xf0]  ;;  %v4898_v59 = vor.u32 %v6318_v47, %v4895_v50  ;;  %v4982_v60 = vor.u32 %v6339_v51, %v4979_v52  ;;  %v6336_v2 = vld [vmem:[#allocation5 + $0x4fc] sm:$0xf] }
  0x59   : > { %1304 = vmatpush.bf16.msra.mxu2 %v4918_v22  ;;  %v6291_v61 = vld [vmem:[#allocation5 + $0x394] sm:$0xf]  ;;  %v4787_v62 = vld [vmem:[#allocation5 + $0x39c] sm:$0xf0]  ;;  %v5078_v0 = vor.u32 %v6363_v55, %v5075_v56  ;;  %v4967_v3 = vld [vmem:[#allocation5 + $0x504] sm:$0xf0] }
  0x5a   : > { %1348 = vmatpush.bf16.msra.mxu3 %v5014_v26  ;;  %v6315_v63 = vld [vmem:[#allocation5 + $0x454] sm:$0xf]  ;;  %v4883_v1 = vld [vmem:[#allocation5 + $0x45c] sm:$0xf0]  ;;  %v6360_v4 = vld [vmem:[#allocation5 + $0x5bc] sm:$0xf]  ;;  %v4790_v6 = vor.u32 %v6291_v61, %v4787_v62  ;;  %v4970_v8 = vor.u32 %v6336_v2, %v4967_v3 }
  0x5b   : > { %1217 = vmatpush.bf16.msra.mxu0 %v4714_v34  ;;  %v5063_v5 = vld [vmem:[#allocation5 + $0x5c4] sm:$0xf0]  ;;  %v4886_v7 = vor.u32 %v6315_v63, %v4883_v1  ;;  %v6288_v9 = vld [vmem:[#allocation5 + $0x37c] sm:$0xf]  ;;  %v6333_v14 = vld [vmem:[#allocation5 + $0x4e4] sm:$0xf] }
  0x5c   : > { %1261 = vmatpush.bf16.msra.mxu1 %v4810_v38  ;;  %v4775_v10 = vld [vmem:[#allocation5 + $0x384] sm:$0xf0]  ;;  %v6312_v11 = vld [vmem:[#allocation5 + $0x43c] sm:$0xf]  ;;  %v5066_v12 = vor.u32 %v6360_v4, %v5063_v5  ;;  %v4955_v15 = vld [vmem:[#allocation5 + $0x4ec] sm:$0xf0] }
  0x5d   : > { %1305 = vmatpush.bf16.msra.mxu2 %v4906_v39  ;;  %v4871_v13 = vld [vmem:[#allocation5 + $0x444] sm:$0xf0]  ;;  %v6357_v16 = vld [vmem:[#allocation5 + $0x5a4] sm:$0xf]  ;;  %v5051_v17 = vld [vmem:[#allocation5 + $0x5ac] sm:$0xf0]  ;;  %v4778_v18 = vor.u32 %v6288_v9, %v4775_v10  ;;  %v4958_v20 = vor.u32 %v6333_v14, %v4955_v15 }
  0x5e   : > { %1349 = vmatpush.bf16.msra.mxu3 %v5002_v43  ;;  %1218 = vmatmul.bf16.vlgmr.msra.gmra.mxu0 %v7028_v48  ;;  %v4874_v19 = vor.u32 %v6312_v11, %v4871_v13  ;;  %v6285_v21 = vld [vmem:[#allocation5 + $0x364] sm:$0xf]  ;;  %v4763_v22 = vld [vmem:[#allocation5 + $0x36c] sm:$0xf0]  ;;  %v5054_v23 = vor.u32 %v6357_v16, %v5051_v17  ;;  %v4617_v26 = vld [vmem:[%s7018_s26 + $0x40] sm:$0xf] }
  0x5f   : > { %1262 = vmatmul.bf16.vlgmr.msra.gmra.mxu1 %v7030_v53  ;;  %1386 = vmatpush.bf16.msrb.mxu0 %v4802_v58  ;;  %v6309_v24 = vld [vmem:[#allocation5 + $0x424] sm:$0xf]  ;;  %v4859_v25 = vld [vmem:[#allocation5 + $0x42c] sm:$0xf0]  ;;  %v4619_v29 = vld [vmem:[%s7018_s26 + $0x50] sm:$0xf0]  ;;  %v4766_v32 = vor.u32 %v6285_v21, %v4763_v22 }
  0x60   : > { %1306 = vmatmul.bf16.vlgmr.msra.gmra.mxu2 %v7032_v54  ;;  %1430 = vmatpush.bf16.msrb.mxu1 %v4898_v59  ;;  %v6251_v27 = vld [vmem:[%s7018_s26 + $0x4c] sm:$0xf0]  ;;  %v6249_v28 = vld [vmem:[%s7018_s26 + $0x44] sm:$0xf]  ;;  %v4625_v30 = vld [vmem:[%s7018_s26 + $0x48] sm:$0xf]  ;;  %v4862_v35 = vor.u32 %v6309_v24, %v4859_v25 }
  0x61   : > { %1474 = vmatpush.bf16.msrb.mxu2 %v4994_v44  ;;  %1350 = vmatmul.bf16.vlgmr.msra.gmra.mxu3 %v7034_v57  ;;  %v6252_v31 = vld [vmem:[%s7018_s26 + $0x54] sm:$0xf0]  ;;  %v6250_v33 = vld [vmem:[%s7018_s26 + $0x4c] sm:$0xf]  ;;  %v4627_v34 = vld [vmem:[%s7018_s26 + $0x58] sm:$0xf0]  ;;  %v7048_v36 = vor.u32 %v6251_v27, %v4617_v26  ;;  %v7050_v37 = vor.u32 %v6249_v28, %v4619_v29 }
  0x62   : > { %1518 = vmatpush.bf16.msrb.mxu3 %v5090_v49  ;;  %v7052_v38 = vor.u32 %v6252_v31, %v4625_v30  ;;  %v7054_v39 = vor.u32 %v6250_v33, %v4627_v34  ;;  %v6330_v40 = vld [vmem:[#allocation5 + $0x4cc] sm:$0xf]  ;;  %v4943_v41 = vld [vmem:[#allocation5 + $0x4d4] sm:$0xf0]  ;;  %v4633_v55 = vld [vmem:[%s7018_s26 + $0x60] sm:$0xf] }
  0x63   : > { %1387 = vmatpush.bf16.msrb.mxu0 %v4790_v6  ;;  %v6354_v42 = vld [vmem:[#allocation5 + $0x58c] sm:$0xf]  ;;  %v4946_v43 = vor.u32 %v6330_v40, %v4943_v41  ;;  %v5039_v44 = vld [vmem:[#allocation5 + $0x594] sm:$0xf0]  ;;  %v6255_v56 = vld [vmem:[%s7018_s26 + $0x6c] sm:$0xf0] }
  0x64   : > { %1431 = vmatpush.bf16.msrb.mxu1 %v4886_v7  ;;  %v6282_v45 = vld [vmem:[#allocation5 + $0x34c] sm:$0xf]  ;;  %v4751_v46 = vld [vmem:[#allocation5 + $0x354] sm:$0xf0]  ;;  %v5042_v47 = vor.u32 %v6354_v42, %v5039_v44  ;;  %v6253_v58 = vld [vmem:[%s7018_s26 + $0x64] sm:$0xf] }
  0x65   : > { %1475 = vmatpush.bf16.msrb.mxu2 %v4982_v60  ;;  %v4754_v49 = vor.u32 %v6282_v45, %v4751_v46  ;;  %v6306_v50 = vld [vmem:[#allocation5 + $0x40c] sm:$0xf]  ;;  %v4847_v51 = vld [vmem:[#allocation5 + $0x414] sm:$0xf0]  ;;  %v4635_v59 = vld [vmem:[%s7018_s26 + $0x70] sm:$0xf0] }
  0x66   : > { %1519 = vmatpush.bf16.msrb.mxu3 %v5078_v0  ;;  %v4850_v52 = vor.u32 %v6306_v50, %v4847_v51  ;;  %v4641_v60 = vld [vmem:[%s7018_s26 + $0x68] sm:$0xf]  ;;  %v6256_v61 = vld [vmem:[%s7018_s26 + $0x74] sm:$0xf0]  ;;  %v6254_v62 = vld [vmem:[%s7018_s26 + $0x6c] sm:$0xf]  ;;  %v7068_v0 = vor.u32 %v6255_v56, %v4633_v55  ;;  %v7070_v1 = vor.u32 %v6253_v58, %v4635_v59 }
  0x67   : > { %1388 = vmatpush.bf16.msrb.mxu0 %v4778_v18  ;;  %v4643_v63 = vld [vmem:[%s7018_s26 + $0x78] sm:$0xf0]  ;;  %v7072_v2 = vor.u32 %v6256_v61, %v4641_v60  ;;  %v6327_v4 = vld [vmem:[#allocation5 + $0x4b4] sm:$0xf]  ;;  %v4931_v5 = vld [vmem:[#allocation5 + $0x4bc] sm:$0xf0] }
  0x68   : > { %1432 = vmatpush.bf16.msrb.mxu1 %v4874_v19  ;;  %v7074_v3 = vor.u32 %v6254_v62, %v4643_v63  ;;  %v6351_v6 = vld [vmem:[#allocation5 + $0x574] sm:$0xf]  ;;  %v4934_v7 = vor.u32 %v6327_v4, %v4931_v5  ;;  %v4739_v10 = vld [vmem:[#allocation5 + $0x33c] sm:$0xf0]  ;;  %v6259_v17 = vld [vmem:[%s7018_s26 + $0x8c] sm:$0xf0] }
  0x69   : > { %1476 = vmatpush.bf16.msrb.mxu2 %v4970_v8  ;;  %v5027_v8 = vld [vmem:[#allocation5 + $0x57c] sm:$0xf0]  ;;  %v6279_v9 = vld [vmem:[#allocation5 + $0x334] sm:$0xf]  ;;  %v6257_v18 = vld [vmem:[%s7018_s26 + $0x84] sm:$0xf] }
  0x6a   : > { %1520 = vmatpush.bf16.msrb.mxu3 %v5066_v12  ;;  %v5030_v11 = vor.u32 %v6351_v6, %v5027_v8  ;;  %v4742_v12 = vor.u32 %v6279_v9, %v4739_v10  ;;  %v6303_v13 = vld [vmem:[#allocation5 + $0x3f4] sm:$0xf]  ;;  %v4835_v14 = vld [vmem:[#allocation5 + $0x3fc] sm:$0xf0]  ;;  %v6260_v21 = vld [vmem:[%s7018_s26 + $0x94] sm:$0xf0] }
  0x6b   : > { %1389 = vmatpush.bf16.msrb.mxu0 %v4766_v32  ;;  %v4838_v15 = vor.u32 %v6303_v13, %v4835_v14  ;;  %v4649_v16 = vld [vmem:[%s7018_s26 + $0x80] sm:$0xf]  ;;  %v4651_v19 = vld [vmem:[%s7018_s26 + $0x90] sm:$0xf0]  ;;  %v6258_v22 = vld [vmem:[%s7018_s26 + $0x8c] sm:$0xf] }
  0x6c   : > { %1433 = vmatpush.bf16.msrb.mxu1 %v4862_v35  ;;  %v7088_v24 = vor.u32 %v6259_v17, %v4649_v16  ;;  %v7090_v25 = vor.u32 %v6257_v18, %v4651_v19  ;;  %v6324_v28 = vld [vmem:[#allocation5 + $0x49c] sm:$0xf]  ;;  %v4919_v29 = vld [vmem:[#allocation5 + $0x4a4] sm:$0xf0]  ;;  %v4665_v44 = vld [vmem:[%s7018_s26 + $0xa0] sm:$0xf] }
  0x6d   : > { %1477 = vmatpush.bf16.msrb.mxu2 %v4958_v20  ;;  %v4657_v20 = vld [vmem:[%s7018_s26 + $0x88] sm:$0xf]  ;;  %v6348_v30 = vld [vmem:[#allocation5 + $0x55c] sm:$0xf]  ;;  %v4922_v31 = vor.u32 %v6324_v28, %v4919_v29  ;;  %v6263_v45 = vld [vmem:[%s7018_s26 + $0xac] sm:$0xf0] }
  0x6e   : > { %1521 = vmatpush.bf16.msrb.mxu3 %v5054_v23  ;;  %1223 = vmatmul.bf16.gmra.mxu0 %v7048_v36  ;;  %v4659_v23 = vld [vmem:[%s7018_s26 + $0x98] sm:$0xf0]  ;;  %v7092_v26 = vor.u32 %v6260_v21, %v4657_v20  ;;  %v5015_v32 = vld [vmem:[#allocation5 + $0x564] sm:$0xf0]  ;;  %v6261_v46 = vld [vmem:[%s7018_s26 + $0xa4] sm:$0xf]  ;;  %v7108_v55 = vor.u32 %v6263_v45, %v4665_v44 }
  0x6f   : > { %1267 = vmatmul.bf16.gmra.mxu1 %v7050_v37  ;;  %1390 = vmatpush.bf16.msrb.mxu0 %v4754_v49  ;;  %v7094_v27 = vor.u32 %v6258_v22, %v4659_v23  ;;  %v6276_v33 = vld [vmem:[#allocation5 + $0x31c] sm:$0xf]  ;;  %v4727_v34 = vld [vmem:[#allocation5 + $0x324] sm:$0xf0]  ;;  %v5018_v35 = vor.u32 %v6348_v30, %v5015_v32  ;;  %v6264_v50 = vld [vmem:[%s7018_s26 + $0xb4] sm:$0xf0] }
  0x70   : > { %1311 = vmatmul.bf16.gmra.mxu2 %v7052_v38  ;;  %1434 = vmatpush.bf16.msrb.mxu1 %v4850_v52  ;;  %v4730_v40 = vor.u32 %v6276_v33, %v4727_v34  ;;  %v6300_v41 = vld [vmem:[#allocation5 + $0x3dc] sm:$0xf]  ;;  %v4823_v42 = vld [vmem:[#allocation5 + $0x3e4] sm:$0xf0]  ;;  %v6262_v51 = vld [vmem:[%s7018_s26 + $0xac] sm:$0xf] }
  0x71   : > { %1355 = vmatmul.bf16.gmra.mxu3 %v7054_v39  ;;  %1478 = vmatpush.bf16.msrb.mxu2 %v4946_v43  ;;  %v4826_v43 = vor.u32 %v6300_v41, %v4823_v42  ;;  %v4673_v49 = vld [vmem:[%s7018_s26 + $0xa8] sm:$0xf]  ;;  %v4675_v52 = vld [vmem:[%s7018_s26 + $0xb8] sm:$0xf0]  ;;  %v6321_v60 = vld [vmem:[#allocation5 + $0x484] sm:$0xf] }
  0x72   : > { %1522 = vmatpush.bf16.msrb.mxu3 %v5042_v47  ;;  %v4667_v47 = vld [vmem:[%s7018_s26 + $0xb0] sm:$0xf0]  ;;  %v7112_v58 = vor.u32 %v6264_v50, %v4673_v49  ;;  %v7114_v59 = vor.u32 %v6262_v51, %v4675_v52  ;;  %v4907_v61 = vld [vmem:[#allocation5 + $0x48c] sm:$0xf0]  ;;  %v6345_v62 = vld [vmem:[#allocation5 + $0x544] sm:$0xf] }
  0x73   : > { %1391 = vmatpush.bf16.msrb.mxu0 %v4742_v12  ;;  %v7110_v56 = vor.u32 %v6261_v46, %v4667_v47  ;;  %v4910_v63 = vor.u32 %v6321_v60, %v4907_v61  ;;  %v5003_v4 = vld [vmem:[#allocation5 + $0x54c] sm:$0xf0]  ;;  %v6273_v5 = vld [vmem:[#allocation5 + $0x304] sm:$0xf]  ;;  %v4681_v12 = vld [vmem:[%s7018_s26 + $0xc0] sm:$0xf] }
  0x74   : > { %1435 = vmatpush.bf16.msrb.mxu1 %v4838_v15  ;;  %v4715_v6 = vld [vmem:[#allocation5 + $0x30c] sm:$0xf0]  ;;  %v6297_v9 = vld [vmem:[#allocation5 + $0x3c4] sm:$0xf]  ;;  %v4683_v15 = vld [vmem:[%s7018_s26 + $0xd0] sm:$0xf0] }
  0x75   : > { %1479 = vmatpush.bf16.msrb.mxu2 %v4934_v7  ;;  %v5006_v7 = vor.u32 %v6345_v62, %v5003_v4  ;;  %v4718_v8 = vor.u32 %v6273_v5, %v4715_v6  ;;  %v4811_v10 = vld [vmem:[#allocation5 + $0x3cc] sm:$0xf0]  ;;  %v6265_v14 = vld [vmem:[%s7018_s26 + $0xc4] sm:$0xf]  ;;  %v4689_v16 = vld [vmem:[%s7018_s26 + $0xc8] sm:$0xf] }
  0x76   : > { %1523 = vmatpush.bf16.msrb.mxu3 %v5030_v11  ;;  %v4814_v11 = vor.u32 %v6297_v9, %v4811_v10  ;;  %v6267_v13 = vld [vmem:[%s7018_s26 + $0xcc] sm:$0xf0]  ;;  %v6268_v17 = vld [vmem:[%s7018_s26 + $0xd4] sm:$0xf0]  ;;  %v6266_v18 = vld [vmem:[%s7018_s26 + $0xcc] sm:$0xf]  ;;  %v7130_v21 = vor.u32 %v6265_v14, %v4683_v15 }
  0x77   : > { %1392 = vmatpush.bf16.msrb.mxu0 %v4730_v40  ;;  %v4691_v19 = vld [vmem:[%s7018_s26 + $0xd8] sm:$0xf0]  ;;  %v7128_v20 = vor.u32 %v6267_v13, %v4681_v12  ;;  %v7132_v22 = vor.u32 %v6268_v17, %v4689_v16  ;;  %v4997_v28 = vld [vmem:[#allocation5 + $0x530] sm:$0xf]  ;;  %v4697_v44 = vld [vmem:[%s7018_s26 + $0xe0] sm:$0xf] }
  0x78   : > { %1436 = vmatpush.bf16.msrb.mxu1 %v4826_v43  ;;  %v7134_v23 = vor.u32 %v6266_v18, %v4691_v19  ;;  %v6344_v29 = vld [vmem:[#allocation5 + $0x538] sm:$0xf0]  ;;  %v5093_v30 = vld [vmem:[#allocation5 + $0x5f0] sm:$0xf]  ;;  %v6269_v46 = vld [vmem:[%s7018_s26 + $0xe4] sm:$0xf] }
  0x79   : > { %1480 = vmatpush.bf16.msrb.mxu2 %v4922_v31  ;;  %v4998_v31 = vor.u32 %v6344_v29, %v4997_v28  ;;  %v6368_v32 = vld [vmem:[#allocation5 + $0x5f8] sm:$0xf0]  ;;  %v4805_v33 = vld [vmem:[#allocation5 + $0x3b0] sm:$0xf]  ;;  %v4699_v47 = vld [vmem:[%s7018_s26 + $0xf0] sm:$0xf0] }
  0x7a   : > { %1524 = vmatpush.bf16.msrb.mxu3 %v5018_v35  ;;  %v6296_v34 = vld [vmem:[#allocation5 + $0x3b8] sm:$0xf0]  ;;  %v5094_v35 = vor.u32 %v6368_v32, %v5093_v30  ;;  %v4901_v41 = vld [vmem:[#allocation5 + $0x470] sm:$0xf]  ;;  %v4705_v49 = vld [vmem:[%s7018_s26 + $0xe8] sm:$0xf]  ;;  %v7150_v61 = vor.u32 %v6269_v46, %v4699_v47 }
  0x7b   : > { %1393 = vmatpush.bf16.msrb.mxu0 %v4718_v8  ;;  %v4806_v40 = vor.u32 %v6296_v34, %v4805_v33  ;;  %v6320_v42 = vld [vmem:[#allocation5 + $0x478] sm:$0xf0]  ;;  %v6271_v45 = vld [vmem:[%s7018_s26 + $0xec] sm:$0xf0]  ;;  %v6272_v50 = vld [vmem:[%s7018_s26 + $0xf4] sm:$0xf0] }
  0x7c   : > { %1437 = vmatpush.bf16.msrb.mxu1 %v4814_v11  ;;  %v4902_v43 = vor.u32 %v6320_v42, %v4901_v41  ;;  %v6270_v51 = vld [vmem:[%s7018_s26 + $0xec] sm:$0xf]  ;;  %v4707_v52 = vld [vmem:[%s7018_s26 + $0xf8] sm:$0xf0]  ;;  %v7148_v60 = vor.u32 %v6271_v45, %v4697_v44  ;;  %v7152_v62 = vor.u32 %v6272_v50, %v4705_v49  ;;  %v4985_v4 = vld [vmem:[#allocation5 + $0x518] sm:$0xf] }
  0x7d   : > { %1481 = vmatpush.bf16.msrb.mxu2 %v4910_v63  ;;  %v7154_v63 = vor.u32 %v6270_v51, %v4707_v52  ;;  %v6341_v5 = vld [vmem:[#allocation5 + $0x520] sm:$0xf0]  ;;  %v4793_v9 = vld [vmem:[#allocation5 + $0x398] sm:$0xf]  ;;  %v4973_v16 = vld [vmem:[#allocation5 + $0x500] sm:$0xf] }
  0x7e   : > { %1228 = vmatmul.bf16.gmra.mxu0 %v7068_v0  ;;  %1525 = vmatpush.bf16.msrb.mxu3 %v5006_v7  ;;  %v4986_v6 = vor.u32 %v6341_v5, %v4985_v4  ;;  %v5081_v7 = vld [vmem:[#allocation5 + $0x5d8] sm:$0xf]  ;;  %v6365_v8 = vld [vmem:[#allocation5 + $0x5e0] sm:$0xf0]  ;;  %v6338_v17 = vld [vmem:[#allocation5 + $0x508] sm:$0xf0] }
  0x7f   : > { %1272 = vmatmul.bf16.gmra.mxu1 %v7070_v1  ;;  %1562 = vmatpush.bf16.msra.mxu0 %v4806_v40  ;;  %v5082_v10 = vor.u32 %v6365_v8, %v5081_v7  ;;  %v6293_v11 = vld [vmem:[#allocation5 + $0x3a0] sm:$0xf0]  ;;  %v4889_v12 = vld [vmem:[#allocation5 + $0x458] sm:$0xf]  ;;  %v5069_v18 = vld [vmem:[#allocation5 + $0x5c0] sm:$0xf]  ;;  %v4974_v19 = vor.u32 %v6338_v17, %v4973_v16 }
  0x80   : > { %1316 = vmatmul.bf16.gmra.mxu2 %v7072_v2  ;;  %1606 = vmatpush.bf16.msra.mxu1 %v4902_v43  ;;  %v6317_v13 = vld [vmem:[#allocation5 + $0x460] sm:$0xf0]  ;;  %v4794_v14 = vor.u32 %v6293_v11, %v4793_v9  ;;  %v6362_v28 = vld [vmem:[#allocation5 + $0x5c8] sm:$0xf0]  ;;  %v4781_v30 = vld [vmem:[#allocation5 + $0x380] sm:$0xf] }
  0x81   : > { %1360 = vmatmul.bf16.gmra.mxu3 %v7074_v3  ;;  %1650 = vmatpush.bf16.msra.mxu2 %v4998_v31  ;;  %v4890_v15 = vor.u32 %v6317_v13, %v4889_v12  ;;  %v5070_v29 = vor.u32 %v6362_v28, %v5069_v18  ;;  %v6290_v31 = vld [vmem:[#allocation5 + $0x388] sm:$0xf0]  ;;  %v4877_v32 = vld [vmem:[#allocation5 + $0x440] sm:$0xf]  ;;  %v4961_v40 = vld [vmem:[#allocation5 + $0x4e8] sm:$0xf] }
  0x82   : > { %1694 = vmatpush.bf16.msra.mxu3 %v5094_v35  ;;  %v4782_v33 = vor.u32 %v6290_v31, %v4781_v30  ;;  %v6314_v34 = vld [vmem:[#allocation5 + $0x448] sm:$0xf0]  ;;  %v6335_v41 = vld [vmem:[#allocation5 + $0x4f0] sm:$0xf0]  ;;  %v5057_v46 = vld [vmem:[#allocation5 + $0x5a8] sm:$0xf] }
  0x83   : > { %1563 = vmatpush.bf16.msra.mxu0 %v4794_v14  ;;  %v4878_v35 = vor.u32 %v6314_v34, %v4877_v32  ;;  %v4962_v42 = vor.u32 %v6335_v41, %v4961_v40  ;;  %v6359_v47 = vld [vmem:[#allocation5 + $0x5b0] sm:$0xf0]  ;;  %v4769_v49 = vld [vmem:[#allocation5 + $0x368] sm:$0xf]  ;;  %v4949_v14 = vld [vmem:[#allocation5 + $0x4d0] sm:$0xf] }
  0x84   : > { %1607 = vmatpush.bf16.msra.mxu1 %v4890_v15  ;;  %v5058_v50 = vor.u32 %v6359_v47, %v5057_v46  ;;  %v6287_v51 = vld [vmem:[#allocation5 + $0x370] sm:$0xf0]  ;;  %v4865_v52 = vld [vmem:[#allocation5 + $0x428] sm:$0xf]  ;;  %v6332_v15 = vld [vmem:[#allocation5 + $0x4d8] sm:$0xf0] }
  0x85   : > { %1651 = vmatpush.bf16.msra.mxu2 %v4986_v6  ;;  %v6311_v4 = vld [vmem:[#allocation5 + $0x430] sm:$0xf0]  ;;  %v4770_v5 = vor.u32 %v6287_v51, %v4769_v49  ;;  %v5045_v16 = vld [vmem:[#allocation5 + $0x590] sm:$0xf]  ;;  %v4950_v17 = vor.u32 %v6332_v15, %v4949_v14  ;;  %v6356_v18 = vld [vmem:[#allocation5 + $0x598] sm:$0xf0] }
  0x86   : > { %1695 = vmatpush.bf16.msra.mxu3 %v5082_v10  ;;  %v4866_v6 = vor.u32 %v6311_v4, %v4865_v52  ;;  %v6284_v40 = vld [vmem:[#allocation5 + $0x358] sm:$0xf0]  ;;  %v4853_v41 = vld [vmem:[#allocation5 + $0x410] sm:$0xf]  ;;  %v4937_v4 = vld [vmem:[#allocation5 + $0x4b8] sm:$0xf] }
  0x87   : > { %1564 = vmatpush.bf16.msra.mxu0 %v4782_v33  ;;  %v4841_v14 = vld [vmem:[#allocation5 + $0x3f8] sm:$0xf]  ;;  %v6305_v15 = vld [vmem:[#allocation5 + $0x400] sm:$0xf0]  ;;  %s6493_s28 = smul.u32 112, %s233_s27  ;;  %s4422_s5 = scalar_lea.sflag [#allocation4], %s233_s27 }
  0x88   : > { %1608 = vmatpush.bf16.msra.mxu1 %v4878_v35  ;;  %v4757_v35 = vld [vmem:[#allocation5 + $0x350] sm:$0xf]  ;;  %s4429_s30 = smul.u32 14, %s6825_s18  ;;  %s6735_s12 = scalar_lea.hbm %s8111_s3, 448 }
  0x89   : > { %1652 = vmatpush.bf16.msra.mxu2 %v4974_v19  ;;  %v5046_v19 = vor.u32 %v6356_v18, %v5045_v16  ;;  %v4842_v16 = vor.u32 %v6305_v15, %v4841_v14  ;;  %s7972_s29 = scalar_lea.vmem [#allocation8], %s6493_s28  ;;  %s6494_s4 = smul.u32 28, %s6829_s19 }
  0x8a   : > { %1696 = vmatpush.bf16.msra.mxu3 %v5070_v29  ;;  %s4436_s15 = sshll.u32 %s7972_s29, 4  ;;  %s4437_s15 = int_to_ptr.vmem [resolvable:$true] %s4436_s15 }
  0x8b   : > { %1565 = vmatpush.bf16.msra.mxu0 %v4770_v5  ;;  %v6329_v5 = vld [vmem:[#allocation5 + $0x4c0] sm:$0xf0]  ;;  %s4433_s7 = sadd.s32 %s6494_s4, %s4429_s30 }
  0x8c   : > { %1609 = vmatpush.bf16.msra.mxu1 %v4866_v6  ;;  %v5033_v6 = vld [vmem:[#allocation5 + $0x578] sm:$0xf]  ;;  %s6116_s18 = sshll.u32 %s4433_s7, 3 }
  0x8d   : > { %1653 = vmatpush.bf16.msra.mxu2 %v4962_v42  ;;  %v4758_v42 = vor.u32 %v6284_v40, %v4757_v35  ;;  %s4435_s9 = scalar_lea.hbm %s8111_s3, %s6116_s18 }
  0x8e   : > { %1233 = vmatmul.bf16.gmra.mxu0 %v7088_v24  ;;  %1697 = vmatpush.bf16.msra.mxu3 %v5058_v50  ;;  %s4438_s23 = sshll.u32 %s4435_s9, 4  ;;  %s4439_s23 = int_to_ptr.hbm [resolvable:$true] %s4438_s23 }
  0x8f   : > { %1277 = vmatmul.bf16.gmra.mxu1 %v7090_v25  ;;  %1566 = vmatpush.bf16.msra.mxu0 %v4758_v42  ;;  %s6729_s11 = sshra.s32 %s4439_s23, 4  ;;  %s6730_s11 = int_to_ptr.hbm [resolvable:$true] %s6729_s11 }
  0x90   : > { %1321 = vmatmul.bf16.gmra.mxu2 %v7092_v26  ;;  %s6731_s6 = scalar_lea.hbm %s6730_s11, 112  ;;  %p6736_p0 = scmp.lt.s32.totalorder %s6730_s11, %s8111_s3 }
  0x91   : > { %1365 = vmatmul.bf16.gmra.mxu3 %v7094_v27  ;;  %1654 = vmatpush.bf16.msra.mxu2 %v4950_v17  ;;  %p6732_p1 = scmp.ne.s32.totalorder %s6730_s11, %s6731_s6  ;;  %p6737_p2 = scmp.lt.s32.totalorder %s6735_s12, %s6731_s6 }
  0x92   : > { %1698 = vmatpush.bf16.msra.mxu3 %v5046_v19 }
  0x93   : > { %p6733_p4 = pnand %p6732_p1, %p6941_p6  ;;  %p6738_p3 = por %p6737_p2, %p6736_p0 }
  0x95   : > { %p6734_p11 = pneg %p6733_p4 }
  0x97   : > { %p6739_p5 = pnand %p6738_p3, %p6734_p11 }
  0x9e   : > { %1238 = vmatmul.bf16.gmra.mxu0 %v7108_v55 }
  0x9f   : > { %1282 = vmatmul.bf16.gmra.mxu1 %v7110_v56 }
  0xa0   : > { %1326 = vmatmul.bf16.gmra.mxu2 %v7112_v58 }
  0xa1   : > { %1370 = vmatmul.bf16.gmra.mxu3 %v7114_v59 }
  0xae   : > { %1243 = vmatmul.bf16.gmra.mxu0 %v7128_v20 }
  0xaf   : > { %1287 = vmatmul.bf16.gmra.mxu1 %v7130_v21 }
  0xb0   : > { %1331 = vmatmul.bf16.gmra.mxu2 %v7132_v22 }
  0xb1   : > { %1375 = vmatmul.bf16.gmra.mxu3 %v7134_v23 }
  0xbe   : > { %1248 = vmatmul.bf16.gmra.mxu0 %v7148_v60 }
  0xbf   : > { %1292 = vmatmul.bf16.gmra.mxu1 %v7150_v61 }
  0xc0   : > { %1336 = vmatmul.bf16.gmra.mxu2 %v7152_v62 }
  0xc1   : > { %1380 = vmatmul.bf16.gmra.mxu3 %v7154_v63 }
  0xce   : > { %1394 = vmatmul.bf16.vlgmr.msrb.gmra.mxu0 %v7028_v48 }
  0xcf   : > { %1438 = vmatmul.bf16.vlgmr.msrb.gmra.mxu1 %v7030_v53 }
  0xd0   : > { %1482 = vmatmul.bf16.vlgmr.msrb.gmra.mxu2 %v7032_v54 }
  0xd1   : > { %1526 = vmatmul.bf16.vlgmr.msrb.gmra.mxu3 %v7034_v57 }
  0xdb   : > { %v1219_v43 = vpop.f32.mrf.mxu0 }
  0xdc   : > { %v1263_v44 = vpop.f32.mrf.mxu1 }
  0xdd   : > { %v1264_v45 = vadd.f32 %v1263_v44, %v1219_v43  ;;  %v6308_v43 = vld [vmem:[#allocation5 + $0x418] sm:$0xf0] }
  0xde   : > { %1399 = vmatmul.bf16.gmra.mxu0 %v7048_v36  ;;  %v4854_v44 = vor.u32 %v6308_v43, %v4853_v41 }
  0xdf   : > { %1443 = vmatmul.bf16.gmra.mxu1 %v7050_v37 }
  0xe0   : > { %1487 = vmatmul.bf16.gmra.mxu2 %v7052_v38  ;;  %1610 = vmatpush.bf16.msra.mxu1 %v4854_v44  ;;  %v4925_v44 = vld [vmem:[#allocation5 + $0x4a0] sm:$0xf] }
  0xe1   : > { %1531 = vmatmul.bf16.gmra.mxu3 %v7054_v39 }
  0xe3   : > { %v1307_v7 = vpop.f32.mrf.mxu2  ;;  %v1221_v10 = vpop.f32.mrf.mxu0 }
  0xe4   : > { %v1308_v8 = vadd.f32 %v1307_v7, %v1264_v45  ;;  %v1351_v9 = vpop.f32.mrf.mxu3  ;;  %v1265_v11 = vpop.f32.mrf.mxu1  ;;  %v4938_v7 = vor.u32 %v6329_v5, %v4937_v4  ;;  %1611 = vmatpush.bf16.msra.mxu1 %v4842_v16 }
  0xe5   : > { %v1266_v13 = vadd.f32 %v1265_v11, %v1221_v10  ;;  %v6281_v10 = vld [vmem:[#allocation5 + $0x340] sm:$0xf0] }
  0xe6   : > { %v7168_v12 = vadd.f32 %v1351_v9, %v1308_v8  ;;  %v6353_v8 = vld [vmem:[#allocation5 + $0x580] sm:$0xf0]  ;;  %v4745_v9 = vld [vmem:[#allocation5 + $0x338] sm:$0xf]  ;;  %1655 = vmatpush.bf16.msra.mxu2 %v4938_v7  ;;  %v6302_v7 = vld [vmem:[#allocation5 + $0x3e8] sm:$0xf0] }
  0xe7   : > { %v5034_v11 = vor.u32 %v6353_v8, %v5033_v6  ;;  %v4829_v6 = vld [vmem:[#allocation5 + $0x3e0] sm:$0xf] }
  0xe8   : > { %v4830_v8 = vor.u32 %v6302_v7, %v4829_v6 }
  0xe9   : > { %1699 = vmatpush.bf16.msra.mxu3 %v5034_v11 }
  0xea   : > { %1612 = vmatpush.bf16.msra.mxu1 %v4830_v8 }
  0xeb   : > { %v1309_v28 = vpop.f32.mrf.mxu2  ;;  %v1224_v31 = vpop.f32.mrf.mxu0 }
  0xec   : > { %v1310_v29 = vadd.f32 %v1309_v28, %v1266_v13  ;;  %v1353_v30 = vpop.f32.mrf.mxu3  ;;  %v1268_v32 = vpop.f32.mrf.mxu1  ;;  %v4746_v13 = vor.u32 %v6281_v10, %v4745_v9 }
  0xed   : > { %v1269_v34 = vadd.f32 %v1268_v32, %v1224_v31 }
  0xee   : > { %v7170_v33 = vadd.f32 %v1353_v30, %v1310_v29  ;;  %1404 = vmatmul.bf16.gmra.mxu0 %v7068_v0 }
  0xef   : > { %1448 = vmatmul.bf16.gmra.mxu1 %v7070_v1  ;;  %1567 = vmatpush.bf16.msra.mxu0 %v4746_v13 }
  0xf0   : > { %1492 = vmatmul.bf16.gmra.mxu2 %v7072_v2 }
  0xf1   : > { %1536 = vmatmul.bf16.gmra.mxu3 %v7074_v3 }
  0xf3   : > { %v1312_v45 = vpop.f32.mrf.mxu2  ;;  %v1226_v49 = vpop.f32.mrf.mxu0 }
  0xf4   : > { %v1313_v46 = vadd.f32 %v1312_v45, %v1269_v34  ;;  %v1356_v47 = vpop.f32.mrf.mxu3  ;;  %v1270_v50 = vpop.f32.mrf.mxu1  ;;  %v6326_v45 = vld [vmem:[#allocation5 + $0x4a8] sm:$0xf0] }
  0xf5   : > { %v1271_v52 = vadd.f32 %v1270_v50, %v1226_v49  ;;  %v6350_v49 = vld [vmem:[#allocation5 + $0x568] sm:$0xf0]  ;;  %v4733_v50 = vld [vmem:[#allocation5 + $0x320] sm:$0xf] }
  0xf6   : > { %v7176_v51 = vadd.f32 %v1356_v47, %v1313_v46  ;;  %v5021_v46 = vld [vmem:[#allocation5 + $0x560] sm:$0xf]  ;;  %v4926_v47 = vor.u32 %v6326_v45, %v4925_v44  ;;  %v4721_v44 = vld [vmem:[#allocation5 + $0x308] sm:$0xf] }
  0xf7   : > { %v5022_v4 = vor.u32 %v6350_v49, %v5021_v46  ;;  %v6275_v46 = vld [vmem:[#allocation5 + $0x310] sm:$0xf0] }
  0xf8   : > { %1656 = vmatpush.bf16.msra.mxu2 %v4926_v47  ;;  %v4817_v47 = vld [vmem:[#allocation5 + $0x3c8] sm:$0xf]  ;;  %v6299_v49 = vld [vmem:[#allocation5 + $0x3d0] sm:$0xf0] }
  0xf9   : > { %1700 = vmatpush.bf16.msra.mxu3 %v5022_v4 }
  0xfb   : > { %v1314_v17 = vpop.f32.mrf.mxu2  ;;  %v1229_v28 = vpop.f32.mrf.mxu0 }
  0xfc   : > { %v1315_v18 = vadd.f32 %v1314_v17, %v1271_v52  ;;  %v1358_v19 = vpop.f32.mrf.mxu3  ;;  %v1273_v29 = vpop.f32.mrf.mxu1  ;;  %v6278_v52 = vld [vmem:[#allocation5 + $0x328] sm:$0xf0]  ;;  %v4913_v17 = vld [vmem:[#allocation5 + $0x488] sm:$0xf] }
  0xfd   : > { %v1274_v31 = vadd.f32 %v1273_v29, %v1229_v28  ;;  %v4734_v5 = vor.u32 %v6278_v52, %v4733_v50  ;;  %v4722_v50 = vor.u32 %v6275_v46, %v4721_v44  ;;  %v4818_v52 = vor.u32 %v6299_v49, %v4817_v47  ;;  %v5389_v44 = vld [vmem:[#allocation5 + $0x168] sm:$0xf]  ;;  %v6195_v46 = vld [vmem:[#allocation5 + $0x170] sm:$0xf0] }
  0xfe   : > { %v7178_v30 = vadd.f32 %v1358_v19, %v1315_v18  ;;  %1409 = vmatmul.bf16.gmra.mxu0 %v7088_v24  ;;  %v6323_v18 = vld [vmem:[#allocation5 + $0x490] sm:$0xf0]  ;;  %v5390_v47 = vor.u32 %v6195_v46, %v5389_v44 }
  0xff   : > { %1453 = vmatmul.bf16.gmra.mxu1 %v7090_v25  ;;  %1568 = vmatpush.bf16.msra.mxu0 %v4734_v5  ;;  %v4914_v19 = vor.u32 %v6323_v18, %v4913_v17  ;;  %v6243_v17 = vld [vmem:[#allocation5 + $0x2f0] sm:$0xf0] }
 0x100   : > { %1497 = vmatmul.bf16.gmra.mxu2 %v7092_v26  ;;  %1613 = vmatpush.bf16.msra.mxu1 %v4818_v52 }
 0x101   : > { %1541 = vmatmul.bf16.gmra.mxu3 %v7094_v27  ;;  %1657 = vmatpush.bf16.msra.mxu2 %v4914_v19 }
 0x103   : > { %v1317_v32 = vpop.f32.mrf.mxu2  ;;  %v1231_v40 = vpop.f32.mrf.mxu0  ;;  %1569 = vmatpush.bf16.msra.mxu0 %v4722_v50 }
 0x104   : > { %v1318_v34 = vadd.f32 %v1317_v32, %v1274_v31  ;;  %v1361_v35 = vpop.f32.mrf.mxu3  ;;  %v1275_v41 = vpop.f32.mrf.mxu1  ;;  %2434 = vmatpush.bf16.msrb.mxu1 %v5390_v47 }
 0x105   : > { %v1276_v43 = vadd.f32 %v1275_v41, %v1231_v40  ;;  %v5009_v41 = vld [vmem:[#allocation5 + $0x548] sm:$0xf] }
 0x106   : > { %v7184_v42 = vadd.f32 %v1361_v35, %v1318_v34 }
 0x10b   : > { %v1319_v9 = vpop.f32.mrf.mxu2  ;;  %v1234_v13 = vpop.f32.mrf.mxu0 }
 0x10c   : > { %v1320_v10 = vadd.f32 %v1319_v9, %v1276_v43  ;;  %v1363_v11 = vpop.f32.mrf.mxu3  ;;  %v1278_v14 = vpop.f32.mrf.mxu1  ;;  %v6347_v43 = vld [vmem:[#allocation5 + $0x550] sm:$0xf0] }
 0x10d   : > { %v1279_v16 = vadd.f32 %v1278_v14, %v1234_v13  ;;  %v5010_v45 = vor.u32 %v6347_v43, %v5009_v41  ;;  %v6219_v13 = vld [vmem:[#allocation5 + $0x230] sm:$0xf0]  ;;  %v5581_v14 = vld [vmem:[#allocation5 + $0x2e8] sm:$0xf] }
 0x10e   : > { %v7186_v15 = vadd.f32 %v1363_v11, %v1320_v10  ;;  %1414 = vmatmul.bf16.gmra.mxu0 %v7108_v55  ;;  %v5485_v11 = vld [vmem:[#allocation5 + $0x228] sm:$0xf]  ;;  %v5582_v19 = vor.u32 %v6243_v17, %v5581_v14  ;;  %v6171_v43 = vld [vmem:[#allocation5 + $0xb0] sm:$0xf0]  ;;  %v6240_v14 = vld [vmem:[#allocation5 + $0x2d8] sm:$0xf0] }
 0x10f   : > { %1458 = vmatmul.bf16.gmra.mxu1 %v7110_v56  ;;  %1701 = vmatpush.bf16.msra.mxu3 %v5010_v45  ;;  %v5293_v41 = vld [vmem:[#allocation5 + $0xa8] sm:$0xf] }
 0x110   : > { %1502 = vmatmul.bf16.gmra.mxu2 %v7112_v58  ;;  %v5294_v45 = vor.u32 %v6171_v43, %v5293_v41 }
 0x111   : > { %1546 = vmatmul.bf16.gmra.mxu3 %v7114_v59 }
 0x112   : > { %2390 = vmatpush.bf16.msrb.mxu0 %v5294_v45 }
 0x113   : > { %v1322_v28 = vpop.f32.mrf.mxu2  ;;  %v1236_v32 = vpop.f32.mrf.mxu0  ;;  %2522 = vmatpush.bf16.msrb.mxu3 %v5582_v19  ;;  %v5377_v19 = vld [vmem:[#allocation5 + $0x150] sm:$0xf] }
 0x114   : > { %v1323_v29 = vadd.f32 %v1322_v28, %v1279_v16  ;;  %v1366_v31 = vpop.f32.mrf.mxu3  ;;  %v1280_v34 = vpop.f32.mrf.mxu1  ;;  %v5486_v16 = vor.u32 %v6219_v13, %v5485_v11  ;;  %v5569_v13 = vld [vmem:[#allocation5 + $0x2d0] sm:$0xf] }
 0x115   : > { %v1281_v40 = vadd.f32 %v1280_v34, %v1236_v32  ;;  %v5570_v17 = vor.u32 %v6240_v14, %v5569_v13  ;;  %v6237_v14 = vld [vmem:[#allocation5 + $0x2c0] sm:$0xf0] }
 0x116   : > { %v7192_v35 = vadd.f32 %v1366_v31, %v1323_v29  ;;  %2478 = vmatpush.bf16.msrb.mxu2 %v5486_v16  ;;  %v5281_v16 = vld [vmem:[#allocation5 + $0x90] sm:$0xf] }
 0x117   : > { %2523 = vmatpush.bf16.msrb.mxu3 %v5570_v17  ;;  %v5269_v17 = vld [vmem:[#allocation5 + $0x78] sm:$0xf] }
 0x11b   : > { %v1324_v4 = vpop.f32.mrf.mxu2  ;;  %v1239_v7 = vpop.f32.mrf.mxu0 }
 0x11c   : > { %v1325_v5 = vadd.f32 %v1324_v4, %v1281_v40  ;;  %v1368_v6 = vpop.f32.mrf.mxu3  ;;  %v1283_v8 = vpop.f32.mrf.mxu1 }
 0x11d   : > { %v1284_v10 = vadd.f32 %v1283_v8, %v1239_v7  ;;  %v5473_v8 = vld [vmem:[#allocation5 + $0x210] sm:$0xf] }
 0x11e   : > { %v7194_v9 = vadd.f32 %v1368_v6, %v1325_v5  ;;  %1419 = vmatmul.bf16.gmra.mxu0 %v7128_v20 }
 0x11f   : > { %1463 = vmatmul.bf16.gmra.mxu1 %v7130_v21 }
 0x120   : > { %1507 = vmatmul.bf16.gmra.mxu2 %v7132_v22 }
 0x121   : > { %1551 = vmatmul.bf16.gmra.mxu3 %v7134_v23 }
 0x123   : > { %v1327_v18 = vpop.f32.mrf.mxu2  ;;  %v1241_v31 = vpop.f32.mrf.mxu0 }
 0x124   : > { %v1328_v28 = vadd.f32 %v1327_v18, %v1284_v10  ;;  %v1371_v29 = vpop.f32.mrf.mxu3  ;;  %v1285_v32 = vpop.f32.mrf.mxu1  ;;  %v6216_v10 = vld [vmem:[#allocation5 + $0x218] sm:$0xf0] }
 0x125   : > { %v1286_v40 = vadd.f32 %v1285_v32, %v1241_v31  ;;  %v5474_v11 = vor.u32 %v6216_v10, %v5473_v8  ;;  %v6168_v18 = vld [vmem:[#allocation5 + $0x98] sm:$0xf0]  ;;  %v5461_v10 = vld [vmem:[#allocation5 + $0x1f8] sm:$0xf] }
 0x126   : > { %v7200_v34 = vadd.f32 %v1371_v29, %v1328_v28  ;;  %v6192_v28 = vld [vmem:[#allocation5 + $0x158] sm:$0xf0]  ;;  %v5282_v31 = vor.u32 %v6168_v18, %v5281_v16  ;;  %v6165_v18 = vld [vmem:[#allocation5 + $0x80] sm:$0xf0] }
 0x127   : > { %2479 = vmatpush.bf16.msrb.mxu2 %v5474_v11  ;;  %v5378_v32 = vor.u32 %v6192_v28, %v5377_v19  ;;  %v6213_v11 = vld [vmem:[#allocation5 + $0x200] sm:$0xf0]  ;;  %v5365_v19 = vld [vmem:[#allocation5 + $0x138] sm:$0xf]  ;;  %v5270_v28 = vor.u32 %v6165_v18, %v5269_v17  ;;  %v5353_v17 = vld [vmem:[#allocation5 + $0x120] sm:$0xf] }
 0x128   : > { %2391 = vmatpush.bf16.msrb.mxu0 %v5282_v31  ;;  %v5462_v13 = vor.u32 %v6213_v11, %v5461_v10  ;;  %v5545_v11 = vld [vmem:[#allocation5 + $0x2a0] sm:$0xf]  ;;  %v6186_v18 = vld [vmem:[#allocation5 + $0x128] sm:$0xf0] }
 0x129   : > { %2435 = vmatpush.bf16.msrb.mxu1 %v5378_v32 }
 0x12b   : > { %v1329_v49 = vpop.f32.mrf.mxu2  ;;  %v1244_v4 = vpop.f32.mrf.mxu0  ;;  %2480 = vmatpush.bf16.msrb.mxu2 %v5462_v13  ;;  %v5257_v13 = vld [vmem:[#allocation5 + $0x60] sm:$0xf] }
 0x12c   : > { %v1330_v50 = vadd.f32 %v1329_v49, %v1286_v40  ;;  %v1373_v52 = vpop.f32.mrf.mxu3  ;;  %v1288_v5 = vpop.f32.mrf.mxu1  ;;  %2392 = vmatpush.bf16.msrb.mxu0 %v5270_v28  ;;  %v5354_v28 = vor.u32 %v6186_v18, %v5353_v17 }
 0x12d   : > { %v1289_v7 = vadd.f32 %v1288_v5, %v1244_v4 }
 0x12e   : > { %v7202_v6 = vadd.f32 %v1373_v52, %v1330_v50  ;;  %1424 = vmatmul.bf16.gmra.mxu0 %v7148_v60 }
 0x12f   : > { %1468 = vmatmul.bf16.gmra.mxu1 %v7150_v61 }
 0x130   : > { %1512 = vmatmul.bf16.gmra.mxu2 %v7152_v62 }
 0x131   : > { %1556 = vmatmul.bf16.gmra.mxu3 %v7154_v63 }
 0x133   : > { %v1332_v29 = vpop.f32.mrf.mxu2  ;;  %v1246_v43 = vpop.f32.mrf.mxu0 }
 0x134   : > { %v1333_v40 = vadd.f32 %v1332_v29, %v1289_v7  ;;  %v1376_v41 = vpop.f32.mrf.mxu3  ;;  %v1290_v44 = vpop.f32.mrf.mxu1  ;;  %v5557_v7 = vld [vmem:[#allocation5 + $0x2b8] sm:$0xf]  ;;  %v6189_v29 = vld [vmem:[#allocation5 + $0x140] sm:$0xf0] }
 0x135   : > { %v1291_v46 = vadd.f32 %v1290_v44, %v1246_v43  ;;  %v5558_v16 = vor.u32 %v6237_v14, %v5557_v7  ;;  %v5366_v32 = vor.u32 %v6189_v29, %v5365_v19  ;;  %v5449_v44 = vld [vmem:[#allocation5 + $0x1e0] sm:$0xf]  ;;  %v6234_v7 = vld [vmem:[#allocation5 + $0x2a8] sm:$0xf0] }
 0x136   : > { %v7208_v45 = vadd.f32 %v1376_v41, %v1333_v40  ;;  %v5546_v14 = vor.u32 %v6234_v7, %v5545_v11  ;;  %v6159_v11 = vld [vmem:[#allocation5 + $0x50] sm:$0xf0]  ;;  %v5341_v7 = vld [vmem:[#allocation5 + $0x108] sm:$0xf] }
 0x137   : > { %2524 = vmatpush.bf16.msrb.mxu3 %v5558_v16  ;;  %2436 = vmatpush.bf16.msrb.mxu1 %v5366_v32  ;;  %v6162_v16 = vld [vmem:[#allocation5 + $0x68] sm:$0xf0] }
 0x138   : > { %v5258_v19 = vor.u32 %v6162_v16, %v5257_v13 }
 0x13a   : > { %2393 = vmatpush.bf16.msrb.mxu0 %v5258_v19 }
 0x13b   : > { %v1334_v47 = vpop.f32.mrf.mxu2  ;;  %v1249_v52 = vpop.f32.mrf.mxu0  ;;  %2525 = vmatpush.bf16.msrb.mxu3 %v5546_v14  ;;  %2437 = vmatpush.bf16.msrb.mxu1 %v5354_v28  ;;  %v6183_v14 = vld [vmem:[#allocation5 + $0x110] sm:$0xf0] }
 0x13c   : > { %v1335_v49 = vadd.f32 %v1334_v47, %v1291_v46  ;;  %v1378_v50 = vpop.f32.mrf.mxu3  ;;  %v1293_v4 = vpop.f32.mrf.mxu1  ;;  %v5342_v16 = vor.u32 %v6183_v14, %v5341_v7 }
 0x13d   : > { %v1294_v8 = vadd.f32 %v1293_v4, %v1249_v52 }
 0x13e   : > { %v7210_v5 = vadd.f32 %v1378_v50, %v1335_v49  ;;  %1570 = vmatmul.bf16.vlgmr.msra.gmra.mxu0 %v7028_v48 }
 0x13f   : > { %1614 = vmatmul.bf16.vlgmr.msra.gmra.mxu1 %v7030_v53 }
 0x140   : > { %1658 = vmatmul.bf16.vlgmr.msra.gmra.mxu2 %v7032_v54  ;;  %2438 = vmatpush.bf16.msrb.mxu1 %v5342_v16 }
 0x141   : > { %1702 = vmatmul.bf16.vlgmr.msra.gmra.mxu3 %v7034_v57  ;;  %v6210_v57 = vld [vmem:[#allocation5 + $0x1e8] sm:$0xf0] }
 0x142   : > { %v5450_v46 = vor.u32 %v6210_v57, %v5449_v44 }
 0x143   : > { %v1337_v31 = vpop.f32.mrf.mxu2  ;;  %v1251_v41 = vpop.f32.mrf.mxu0 }
 0x144   : > { %v1338_v40 = vadd.f32 %v1337_v31, %v1294_v8  ;;  %v1381_v48 = vpop.f32.mrf.mxu3  ;;  %v1295_v43 = vpop.f32.mrf.mxu1  ;;  %2481 = vmatpush.bf16.msrb.mxu2 %v5450_v46 }
 0x145   : > { %v1296_v54 = vadd.f32 %v1295_v43, %v1251_v41  ;;  %v5437_v43 = vld [vmem:[#allocation5 + $0x1c8] sm:$0xf] }
 0x146   : > { %v7216_v53 = vadd.f32 %v1381_v48, %v1338_v40 }
 0x14b   : > { %v1339_v47 = vpop.f32.mrf.mxu2  ;;  %v1395_v52 = vpop.f32.mrf.mxu0 }
 0x14c   : > { %v1340_v49 = vadd.f32 %v1339_v47, %v1296_v54  ;;  %v1383_v50 = vpop.f32.mrf.mxu3  ;;  %v1439_v4 = vpop.f32.mrf.mxu1  ;;  %v6207_v54 = vld [vmem:[#allocation5 + $0x1d0] sm:$0xf0] }
 0x14d   : > { %v1440_v8 = vadd.f32 %v1439_v4, %v1395_v52  ;;  %v5438_v44 = vor.u32 %v6207_v54, %v5437_v43  ;;  %v5233_v43 = vld [vmem:[#allocation5 + $0x30] sm:$0xf] }
 0x14e   : > { %v7218_v10 = vadd.f32 %v1383_v50, %v1340_v49  ;;  %1575 = vmatmul.bf16.gmra.mxu0 %v7048_v36 }
 0x14f   : > { %1619 = vmatmul.bf16.gmra.mxu1 %v7050_v37  ;;  %v5533_v37 = vld [vmem:[#allocation5 + $0x288] sm:$0xf]  ;;  %2482 = vmatpush.bf16.msrb.mxu2 %v5438_v44  ;;  %v6180_v44 = vld [vmem:[#allocation5 + $0xf8] sm:$0xf0] }
 0x150   : > { %1663 = vmatmul.bf16.gmra.mxu2 %v7052_v38  ;;  %v6231_v38 = vld [vmem:[#allocation5 + $0x290] sm:$0xf0] }
 0x151   : > { %1707 = vmatmul.bf16.gmra.mxu3 %v7054_v39  ;;  %v5534_v57 = vor.u32 %v6231_v38, %v5533_v37 }
 0x153   : > { %v1483_v29 = vpop.f32.mrf.mxu2  ;;  %v1397_v40 = vpop.f32.mrf.mxu0  ;;  %2526 = vmatpush.bf16.msrb.mxu3 %v5534_v57 }
 0x154   : > { %v1484_v31 = vadd.f32 %v1483_v29, %v1440_v8  ;;  %v1527_v32 = vpop.f32.mrf.mxu3  ;;  %v1441_v36 = vpop.f32.mrf.mxu1  ;;  %v5245_v8 = vld [vmem:[#allocation5 + $0x48] sm:$0xf] }
 0x155   : > { %v1442_v41 = vadd.f32 %v1441_v36, %v1397_v40  ;;  %v5246_v13 = vor.u32 %v6159_v11, %v5245_v8  ;;  %v6204_v40 = vld [vmem:[#allocation5 + $0x1b8] sm:$0xf0]  ;;  %v5521_v36 = vld [vmem:[#allocation5 + $0x270] sm:$0xf] }
 0x156   : > { %v7224_v48 = vadd.f32 %v1527_v32, %v1484_v31 }
 0x157   : > { %2394 = vmatpush.bf16.msrb.mxu0 %v5246_v13 }
 0x158   : > { %8135 = vst [vmem:[#allocation18_spill] sm:$0xff] %v7224_v48 }
 0x15b   : > { %v1485_v39 = vpop.f32.mrf.mxu2  ;;  %v1400_v49 = vpop.f32.mrf.mxu0 }
 0x15c   : > { %v1486_v46 = vadd.f32 %v1485_v39, %v1442_v41  ;;  %v1529_v47 = vpop.f32.mrf.mxu3  ;;  %v1444_v50 = vpop.f32.mrf.mxu1 }
 0x15d   : > { %v1445_v4 = vadd.f32 %v1444_v50, %v1400_v49 }
 0x15e   : > { %v7226_v52 = vadd.f32 %v1529_v47, %v1486_v46  ;;  %1580 = vmatmul.bf16.gmra.mxu0 %v7068_v0  ;;  %v5425_v0 = vld [vmem:[#allocation5 + $0x1b0] sm:$0xf] }
 0x15f   : > { %1624 = vmatmul.bf16.gmra.mxu1 %v7070_v1  ;;  %v5426_v41 = vor.u32 %v6204_v40, %v5425_v0  ;;  %v6228_v1 = vld [vmem:[#allocation5 + $0x278] sm:$0xf0]  ;;  %v6153_v0 = vld [vmem:[#allocation5 + $0x20] sm:$0xf0] }
 0x160   : > { %8136 = vst [vmem:[#allocation19_spill] sm:$0xff] %v7226_v52  ;;  %1668 = vmatmul.bf16.gmra.mxu2 %v7072_v2  ;;  %v6156_v2 = vld [vmem:[#allocation5 + $0x38] sm:$0xf0]  ;;  %v5522_v54 = vor.u32 %v6228_v1, %v5521_v36  ;;  %v6177_v36 = vld [vmem:[#allocation5 + $0xe0] sm:$0xf0] }
 0x161   : > { %1712 = vmatmul.bf16.gmra.mxu3 %v7074_v3  ;;  %v5234_v37 = vor.u32 %v6156_v2, %v5233_v43  ;;  %v5329_v3 = vld [vmem:[#allocation5 + $0xf0] sm:$0xf]  ;;  %2483 = vmatpush.bf16.msrb.mxu2 %v5426_v41 }
 0x162   : > { %v5330_v38 = vor.u32 %v6180_v44, %v5329_v3  ;;  %2527 = vmatpush.bf16.msrb.mxu3 %v5522_v54  ;;  %v5401_v44 = vld [vmem:[#allocation5 + $0x180] sm:$0xf] }
 0x163   : > { %v1488_v17 = vpop.f32.mrf.mxu2  ;;  %v1402_v28 = vpop.f32.mrf.mxu0  ;;  %2395 = vmatpush.bf16.msrb.mxu0 %v5234_v37 }
 0x164   : > { %v1489_v18 = vadd.f32 %v1488_v17, %v1445_v4  ;;  %v1532_v19 = vpop.f32.mrf.mxu3  ;;  %v1446_v29 = vpop.f32.mrf.mxu1  ;;  %2439 = vmatpush.bf16.msrb.mxu1 %v5330_v38  ;;  %v6198_v38 = vld [vmem:[#allocation5 + $0x188] sm:$0xf0] }
 0x165   : > { %v1447_v32 = vadd.f32 %v1446_v29, %v1402_v28  ;;  %v5509_v28 = vld [vmem:[#allocation5 + $0x258] sm:$0xf] }
 0x166   : > { %v7232_v31 = vadd.f32 %v1532_v19, %v1489_v18  ;;  %v5413_v18 = vld [vmem:[#allocation5 + $0x198] sm:$0xf]  ;;  %v6201_v19 = vld [vmem:[#allocation5 + $0x1a0] sm:$0xf0] }
 0x167   : > { %v5414_v29 = vor.u32 %v6201_v19, %v5413_v18 }
 0x168   : > { %8137 = vst [vmem:[#allocation20_spill] sm:$0xff] %v7232_v31 }
 0x169   : > { %2484 = vmatpush.bf16.msrb.mxu2 %v5414_v29 }
 0x16b   : > { %v1490_v57 = vpop.f32.mrf.mxu2  ;;  %v1405_v47 = vpop.f32.mrf.mxu0 }
 0x16c   : > { %v1491_v39 = vadd.f32 %v1490_v57, %v1447_v32  ;;  %v1534_v46 = vpop.f32.mrf.mxu3  ;;  %v1449_v49 = vpop.f32.mrf.mxu1  ;;  %v6225_v32 = vld [vmem:[#allocation5 + $0x260] sm:$0xf0]  ;;  %v5402_v57 = vor.u32 %v6198_v38, %v5401_v44  ;;  %v6170_v38 = vld [vmem:[#allocation5 + $0xac] sm:$0xf] }
 0x16d   : > { %v1450_v4 = vadd.f32 %v1449_v49, %v1405_v47 }
 0x16e   : > { %v7234_v50 = vadd.f32 %v1534_v46, %v1491_v39  ;;  %1585 = vmatmul.bf16.gmra.mxu0 %v7088_v24  ;;  %v5221_v24 = vld [vmem:[#allocation5 + $0x18] sm:$0xf]  ;;  %2485 = vmatpush.bf16.msrb.mxu2 %v5402_v57  ;;  %v6194_v57 = vld [vmem:[#allocation5 + $0x16c] sm:$0xf] }
 0x16f   : > { %1629 = vmatmul.bf16.gmra.mxu1 %v7090_v25  ;;  %v5510_v25 = vor.u32 %v6225_v32, %v5509_v28  ;;  %v5222_v40 = vor.u32 %v6153_v0, %v5221_v24 }
 0x170   : > { %8138 = vst [vmem:[#allocation21_spill] sm:$0xff] %v7234_v50  ;;  %1673 = vmatmul.bf16.gmra.mxu2 %v7092_v26  ;;  %v5317_v26 = vld [vmem:[#allocation5 + $0xd8] sm:$0xf] }
 0x171   : > { %1717 = vmatmul.bf16.gmra.mxu3 %v7094_v27  ;;  %v5318_v27 = vor.u32 %v6177_v36, %v5317_v26  ;;  %2396 = vmatpush.bf16.msrb.mxu0 %v5222_v40  ;;  %v6218_v40 = vld [vmem:[#allocation5 + $0x22c] sm:$0xf]  ;;  %v5487_v26 = vld [vmem:[#allocation5 + $0x234] sm:$0xf0] }
 0x172   : > { %2528 = vmatpush.bf16.msrb.mxu3 %v5510_v25  ;;  %v6242_v36 = vld [vmem:[#allocation5 + $0x2ec] sm:$0xf] }
 0x173   : > { %v1493_v8 = vpop.f32.mrf.mxu2  ;;  %v1407_v13 = vpop.f32.mrf.mxu0  ;;  %2440 = vmatpush.bf16.msrb.mxu1 %v5318_v27  ;;  %v5490_v27 = vor.u32 %v6218_v40, %v5487_v26 }
 0x174   : > { %v1494_v11 = vadd.f32 %v1493_v8, %v1450_v4  ;;  %v1537_v7 = vpop.f32.mrf.mxu3  ;;  %v1451_v14 = vpop.f32.mrf.mxu1 }
 0x175   : > { %v1452_v17 = vadd.f32 %v1451_v14, %v1407_v13  ;;  %v5209_v13 = vld [vmem:[#allocation5] sm:$0xf]  ;;  %v6150_v14 = vld [vmem:[#allocation5 + $0x8] sm:$0xf0]  ;;  %2654 = vmatpush.bf16.msra.mxu2 %v5490_v27 }
 0x176   : > { %v7240_v16 = vadd.f32 %v1537_v7, %v1494_v11  ;;  %v5497_v7 = vld [vmem:[#allocation5 + $0x240] sm:$0xf] }
 0x177   : > { %v5097_v27 = vld [vmem:[%s7018_s26] sm:$0xf] }
 0x178   : > { %8139 = vst [vmem:[#allocation22_spill] sm:$0xff] %v7240_v16 }
 0x17b   : > { %v1495_v41 = vpop.f32.mrf.mxu2  ;;  %v1410_v2 = vpop.f32.mrf.mxu0 }
 0x17c   : > { %v1496_v1 = vadd.f32 %v1495_v41, %v1452_v17  ;;  %v1539_v43 = vpop.f32.mrf.mxu3  ;;  %v1454_v54 = vpop.f32.mrf.mxu1  ;;  %v6174_v17 = vld [vmem:[#allocation5 + $0xc8] sm:$0xf0]  ;;  %v5583_v41 = vld [vmem:[#allocation5 + $0x2f4] sm:$0xf0] }
 0x17d   : > { %v1455_v3 = vadd.f32 %v1454_v54, %v1410_v2 }
 0x17e   : > { %v7242_v37 = vadd.f32 %v1539_v43, %v1496_v1  ;;  %1590 = vmatmul.bf16.gmra.mxu0 %v7108_v55  ;;  %v6222_v55 = vld [vmem:[#allocation5 + $0x248] sm:$0xf0]  ;;  %v5586_v43 = vor.u32 %v6242_v36, %v5583_v41  ;;  %v6123_v41 = vld [vmem:[%s7018_s26 + $0xc] sm:$0xf0] }
 0x17f   : > { %1634 = vmatmul.bf16.gmra.mxu1 %v7110_v56  ;;  %v5498_v56 = vor.u32 %v6222_v55, %v5497_v7 }
 0x180   : > { %8140 = vst [vmem:[#allocation23_spill] sm:$0xff] %v7242_v37  ;;  %1678 = vmatmul.bf16.gmra.mxu2 %v7112_v58  ;;  %v5305_v58 = vld [vmem:[#allocation5 + $0xc0] sm:$0xf] }
 0x181   : > { %1722 = vmatmul.bf16.gmra.mxu3 %v7114_v59  ;;  %v5210_v59 = vor.u32 %v6150_v14, %v5209_v13  ;;  %v5306_v18 = vor.u32 %v6174_v17, %v5305_v58  ;;  %v5475_v14 = vld [vmem:[#allocation5 + $0x21c] sm:$0xf0]  ;;  %v6239_v17 = vld [vmem:[#allocation5 + $0x2d4] sm:$0xf] }
 0x182   : > { %2529 = vmatpush.bf16.msrb.mxu3 %v5498_v56  ;;  %v6215_v56 = vld [vmem:[#allocation5 + $0x214] sm:$0xf] }
 0x183   : > { %v1498_v39 = vpop.f32.mrf.mxu2  ;;  %v1412_v49 = vpop.f32.mrf.mxu0  ;;  %2397 = vmatpush.bf16.msrb.mxu0 %v5210_v59  ;;  %2441 = vmatpush.bf16.msrb.mxu1 %v5306_v18  ;;  %v5478_v58 = vor.u32 %v6215_v56, %v5475_v14  ;;  %v5571_v59 = vld [vmem:[#allocation5 + $0x2dc] sm:$0xf0]  ;;  %v6236_v56 = vld [vmem:[#allocation5 + $0x2bc] sm:$0xf] }
 0x184   : > { %v1499_v46 = vadd.f32 %v1498_v39, %v1455_v3  ;;  %v1542_v47 = vpop.f32.mrf.mxu3  ;;  %v1456_v4 = vpop.f32.mrf.mxu1  ;;  %v5391_v39 = vld [vmem:[#allocation5 + $0x174] sm:$0xf0]  ;;  %v5574_v18 = vor.u32 %v6239_v17, %v5571_v59  ;;  %v6164_v59 = vld [vmem:[#allocation5 + $0x7c] sm:$0xf] }
 0x185   : > { %v1457_v11 = vadd.f32 %v1456_v4, %v1412_v49  ;;  %2655 = vmatpush.bf16.msra.mxu2 %v5478_v58  ;;  %v5559_v58 = vld [vmem:[#allocation5 + $0x2c4] sm:$0xf0] }
 0x186   : > { %v7248_v8 = vadd.f32 %v1542_v47, %v1499_v46  ;;  %2698 = vmatpush.bf16.msra.mxu3 %v5586_v43  ;;  %v5394_v46 = vor.u32 %v6194_v57, %v5391_v39  ;;  %v5099_v43 = vld [vmem:[%s7018_s26 + $0x10] sm:$0xf0]  ;;  %v5562_v17 = vor.u32 %v6236_v56, %v5559_v58 }
 0x188   : > { %8141 = vst [vmem:[#allocation24_spill] sm:$0xff] %v7248_v8  ;;  %2610 = vmatpush.bf16.msra.mxu1 %v5394_v46  ;;  %v6146_v8 = vld [vmem:[%s7018_s26 + $0xcc] sm:$0xf] }
 0x18a   : > { %2699 = vmatpush.bf16.msra.mxu3 %v5574_v18  ;;  %v5271_v18 = vld [vmem:[#allocation5 + $0x84] sm:$0xf0] }
 0x18b   : > { %v1500_v19 = vpop.f32.mrf.mxu2  ;;  %v1415_v32 = vpop.f32.mrf.mxu0 }
 0x18c   : > { %v1501_v28 = vadd.f32 %v1500_v19, %v1457_v11  ;;  %v1544_v29 = vpop.f32.mrf.mxu3  ;;  %v1459_v24 = vpop.f32.mrf.mxu1  ;;  %v6167_v19 = vld [vmem:[#allocation5 + $0x94] sm:$0xf] }
 0x18d   : > { %v1460_v25 = vadd.f32 %v1459_v24, %v1415_v32  ;;  %v5379_v24 = vld [vmem:[#allocation5 + $0x15c] sm:$0xf0] }
 0x18e   : > { %v7250_v0 = vadd.f32 %v1544_v29, %v1501_v28  ;;  %1595 = vmatmul.bf16.gmra.mxu0 %v7128_v20  ;;  %v5283_v28 = vld [vmem:[#allocation5 + $0x9c] sm:$0xf0]  ;;  %v6191_v29 = vld [vmem:[#allocation5 + $0x154] sm:$0xf]  ;;  %2700 = vmatpush.bf16.msra.mxu3 %v5562_v17 }
 0x18f   : > { %1639 = vmatmul.bf16.gmra.mxu1 %v7130_v21 }
 0x190   : > { %8142 = vst [vmem:[#allocation25_spill] sm:$0xff] %v7250_v0  ;;  %1683 = vmatmul.bf16.gmra.mxu2 %v7132_v22  ;;  %v5295_v22 = vld [vmem:[#allocation5 + $0xb4] sm:$0xf0] }
 0x191   : > { %1727 = vmatmul.bf16.gmra.mxu3 %v7134_v23  ;;  %v5298_v23 = vor.u32 %v6170_v38, %v5295_v22  ;;  %v7274_v38 = vor.u32 %v6123_v41, %v5097_v27  ;;  %v5451_v27 = vld [vmem:[#allocation5 + $0x1ec] sm:$0xf0] }
 0x193   : > { %v1503_v1 = vpop.f32.mrf.mxu2  ;;  %v1417_v3 = vpop.f32.mrf.mxu0  ;;  %2566 = vmatpush.bf16.msra.mxu0 %v5298_v23 }
 0x194   : > { %v1504_v2 = vadd.f32 %v1503_v1, %v1460_v25  ;;  %v1547_v54 = vpop.f32.mrf.mxu3  ;;  %v1461_v44 = vpop.f32.mrf.mxu1  ;;  %v5382_v25 = vor.u32 %v6191_v29, %v5379_v24  ;;  %v6121_v1 = vld [vmem:[%s7018_s26 + $0x4] sm:$0xf]  ;;  %v5274_v29 = vor.u32 %v6164_v59, %v5271_v18 }
 0x195   : > { %v1462_v21 = vadd.f32 %v1461_v44, %v1417_v3  ;;  %v6122_v3 = vld [vmem:[%s7018_s26 + $0xc] sm:$0xf]  ;;  %v5107_v44 = vld [vmem:[%s7018_s26 + $0x18] sm:$0xf0]  ;;  %v7276_v39 = vor.u32 %v6121_v1, %v5099_v43  ;;  %v5113_v1 = vld [vmem:[%s7018_s26 + $0x20] sm:$0xf] }
 0x196   : > { %v7256_v20 = vadd.f32 %v1547_v54, %v1504_v2  ;;  %2611 = vmatpush.bf16.msra.mxu1 %v5382_v25  ;;  %v5105_v2 = vld [vmem:[%s7018_s26 + $0x8] sm:$0xf]  ;;  %v6124_v54 = vld [vmem:[%s7018_s26 + $0x14] sm:$0xf0]  ;;  %v6127_v43 = vld [vmem:[%s7018_s26 + $0x2c] sm:$0xf0] }
 0x197   : > { %v7278_v46 = vor.u32 %v6124_v54, %v5105_v2  ;;  %v6125_v2 = vld [vmem:[%s7018_s26 + $0x24] sm:$0xf]  ;;  %v5115_v54 = vld [vmem:[%s7018_s26 + $0x30] sm:$0xf0] }
 0x198   : > { %8143 = vst [vmem:[#allocation26_spill] sm:$0xff] %v7256_v20  ;;  %v6233_v18 = vld [vmem:[#allocation5 + $0x2a4] sm:$0xf] }
 0x19b   : > { %v1505_v47 = vpop.f32.mrf.mxu2  ;;  %v1420_v11 = vpop.f32.mrf.mxu0 }
 0x19c   : > { %v1506_v49 = vadd.f32 %v1505_v47, %v1462_v21  ;;  %v1549_v4 = vpop.f32.mrf.mxu3  ;;  %v1464_v7 = vpop.f32.mrf.mxu1 }
 0x19d   : > { %v1465_v13 = vadd.f32 %v1464_v7, %v1420_v11  ;;  %v6212_v7 = vld [vmem:[#allocation5 + $0x1fc] sm:$0xf] }
 0x19e   : > { %v7258_v55 = vadd.f32 %v1549_v4, %v1506_v49  ;;  %1600 = vmatmul.bf16.gmra.mxu0 %v7148_v60  ;;  %v5286_v60 = vor.u32 %v6167_v19, %v5283_v28  ;;  %v7280_v49 = vor.u32 %v6122_v3, %v5107_v44  ;;  %v6188_v19 = vld [vmem:[#allocation5 + $0x13c] sm:$0xf]  ;;  %v5121_v3 = vld [vmem:[%s7018_s26 + $0x28] sm:$0xf]  ;;  %v6128_v44 = vld [vmem:[%s7018_s26 + $0x34] sm:$0xf0] }
 0x19f   : > { %1644 = vmatmul.bf16.gmra.mxu1 %v7150_v61  ;;  %v7302_v56 = vor.u32 %v6128_v44, %v5121_v3  ;;  %v6230_v3 = vld [vmem:[#allocation5 + $0x28c] sm:$0xf] }
 0x1a0   : > { %8144 = vst [vmem:[#allocation27_spill] sm:$0xff] %v7258_v55  ;;  %1688 = vmatmul.bf16.gmra.mxu2 %v7152_v62  ;;  %2567 = vmatpush.bf16.msra.mxu0 %v5286_v60 }
 0x1a1   : > { %1732 = vmatmul.bf16.gmra.mxu3 %v7154_v63 }
 0x1a3   : > { %v1508_v32 = vpop.f32.mrf.mxu2  ;;  %v1422_v63 = vpop.f32.mrf.mxu0 }
 0x1a4   : > { %v1509_v61 = vadd.f32 %v1508_v32, %v1465_v13  ;;  %v1552_v62 = vpop.f32.mrf.mxu3  ;;  %v1466_v40 = vpop.f32.mrf.mxu1  ;;  %v5463_v13 = vld [vmem:[#allocation5 + $0x204] sm:$0xf0]  ;;  %2568 = vmatpush.bf16.msra.mxu0 %v5274_v29 }
 0x1a5   : > { %v1467_v36 = vadd.f32 %v1466_v40, %v1422_v63  ;;  %v5466_v14 = vor.u32 %v6212_v7, %v5463_v13  ;;  %v5367_v32 = vld [vmem:[#allocation5 + $0x144] sm:$0xf0]  ;;  %v7300_v13 = vor.u32 %v6125_v2, %v5115_v54  ;;  %v6206_v2 = vld [vmem:[#allocation5 + $0x1cc] sm:$0xf]  ;;  %v5439_v54 = vld [vmem:[#allocation5 + $0x1d4] sm:$0xf0] }
 0x1a6   : > { %v7264_v26 = vadd.f32 %v1552_v62, %v1509_v61  ;;  %v5370_v62 = vor.u32 %v6188_v19, %v5367_v32  ;;  %v5547_v19 = vld [vmem:[#allocation5 + $0x2ac] sm:$0xf0]  ;;  %v5442_v44 = vor.u32 %v6206_v2, %v5439_v54  ;;  %v5247_v2 = vld [vmem:[#allocation5 + $0x54] sm:$0xf0]  ;;  %v6182_v54 = vld [vmem:[#allocation5 + $0x10c] sm:$0xf] }
 0x1a7   : > { %2656 = vmatpush.bf16.msra.mxu2 %v5466_v14  ;;  %v5550_v29 = vor.u32 %v6233_v18, %v5547_v19  ;;  %v5259_v32 = vld [vmem:[#allocation5 + $0x6c] sm:$0xf0]  ;;  %v6130_v18 = vld [vmem:[%s7018_s26 + $0x4c] sm:$0xf]  ;;  %v5139_v19 = vld [vmem:[%s7018_s26 + $0x58] sm:$0xf0] }
 0x1a8   : > { %8145 = vst [vmem:[#allocation28_spill] sm:$0xff] %v7264_v26  ;;  %2612 = vmatpush.bf16.msra.mxu1 %v5370_v62 }
 0x1a9   : > { %2701 = vmatpush.bf16.msra.mxu3 %v5550_v29 }
 0x1ab   : > { %v1510_v21 = vpop.f32.mrf.mxu2  ;;  %v1425_v23 = vpop.f32.mrf.mxu0 }
 0x1ac   : > { %v1511_v22 = vadd.f32 %v1510_v21, %v1467_v36  ;;  %v1554_v57 = vpop.f32.mrf.mxu3  ;;  %v1469_v47 = vpop.f32.mrf.mxu1  ;;  %v6209_v36 = vld [vmem:[#allocation5 + $0x1e4] sm:$0xf]  ;;  %v6126_v21 = vld [vmem:[%s7018_s26 + $0x2c] sm:$0xf] }
 0x1ad   : > { %v1470_v11 = vadd.f32 %v1469_v47, %v1425_v23  ;;  %v5454_v41 = vor.u32 %v6209_v36, %v5451_v27  ;;  %v7298_v23 = vor.u32 %v6127_v43, %v5113_v1 }
 0x1ae   : > { %v7282_v4 = vadd.f32 %v1554_v57, %v1511_v22  ;;  %2398 = vmatmul.bf16.vlgmr.msrb.gmra.mxu0 %v7274_v38  ;;  %v5123_v22 = vld [vmem:[%s7018_s26 + $0x38] sm:$0xf0] }
 0x1af   : > { %2442 = vmatmul.bf16.vlgmr.msrb.gmra.mxu1 %v7276_v39  ;;  %2657 = vmatpush.bf16.msra.mxu2 %v5454_v41  ;;  %v7304_v58 = vor.u32 %v6126_v21, %v5123_v22  ;;  %v5535_v21 = vld [vmem:[#allocation5 + $0x294] sm:$0xf0]  ;;  %v5129_v22 = vld [vmem:[%s7018_s26 + $0x40] sm:$0xf] }
 0x1b0   : > { %8146 = vst [vmem:[#allocation29_spill] sm:$0xff] %v7282_v4  ;;  %2486 = vmatmul.bf16.vlgmr.msrb.gmra.mxu2 %v7278_v46 }
 0x1b1   : > { %2530 = vmatmul.bf16.vlgmr.msrb.gmra.mxu3 %v7280_v49 }
 0x1b3   : > { %v1513_v28 = vpop.f32.mrf.mxu2  ;;  %v1427_v61 = vpop.f32.mrf.mxu0  ;;  %2658 = vmatpush.bf16.msra.mxu2 %v5442_v44 }
 0x1b4   : > { %v1514_v60 = vadd.f32 %v1513_v28, %v1470_v11  ;;  %v1557_v24 = vpop.f32.mrf.mxu3  ;;  %v1471_v63 = vpop.f32.mrf.mxu1  ;;  %v6161_v28 = vld [vmem:[#allocation5 + $0x64] sm:$0xf] }
 0x1b5   : > { %v1472_v40 = vadd.f32 %v1471_v63, %v1427_v61  ;;  %v5262_v61 = vor.u32 %v6161_v28, %v5259_v32 }
 0x1b6   : > { %v7288_v25 = vadd.f32 %v1557_v24, %v1514_v60  ;;  %v6185_v60 = vld [vmem:[#allocation5 + $0x124] sm:$0xf]  ;;  %v5355_v24 = vld [vmem:[#allocation5 + $0x12c] sm:$0xf0] }
 0x1b7   : > { %v5358_v62 = vor.u32 %v6185_v60, %v5355_v24  ;;  %2569 = vmatpush.bf16.msra.mxu0 %v5262_v61 }
 0x1b8   : > { %8147 = vst [vmem:[#allocation30_spill] sm:$0xff] %v7288_v25 }
 0x1b9   : > { %2613 = vmatpush.bf16.msra.mxu1 %v5358_v62 }
 0x1bb   : > { %v1515_v57 = vpop.f32.mrf.mxu2  ;;  %v1571_v7 = vpop.f32.mrf.mxu0 }
 0x1bc   : > { %v1516_v47 = vadd.f32 %v1515_v57, %v1472_v40  ;;  %v1559_v11 = vpop.f32.mrf.mxu3  ;;  %v1615_v14 = vpop.f32.mrf.mxu1  ;;  %v6131_v57 = vld [vmem:[%s7018_s26 + $0x4c] sm:$0xf0] }
 0x1bd   : > { %v1616_v59 = vadd.f32 %v1615_v14, %v1571_v7  ;;  %v5131_v7 = vld [vmem:[%s7018_s26 + $0x50] sm:$0xf0]  ;;  %v5137_v14 = vld [vmem:[%s7018_s26 + $0x48] sm:$0xf]  ;;  %v7322_v29 = vor.u32 %v6131_v57, %v5129_v22 }
 0x1be   : > { %v7306_v17 = vadd.f32 %v1559_v11, %v1516_v47  ;;  %2403 = vmatmul.bf16.gmra.mxu0 %v7298_v23  ;;  %v6129_v47 = vld [vmem:[%s7018_s26 + $0x44] sm:$0xf]  ;;  %v5538_v11 = vor.u32 %v6230_v3, %v5535_v21 }
 0x1bf   : > { %2447 = vmatmul.bf16.gmra.mxu1 %v7300_v13  ;;  %v7324_v61 = vor.u32 %v6129_v47, %v5131_v7 }
 0x1c0   : > { %8148 = vst [vmem:[#allocation31_spill] sm:$0xff] %v7306_v17  ;;  %2491 = vmatmul.bf16.gmra.mxu2 %v7302_v56  ;;  %2702 = vmatpush.bf16.msra.mxu3 %v5538_v11  ;;  %v5171_v17 = vld [vmem:[%s7018_s26 + $0x98] sm:$0xf0] }
 0x1c1   : > { %2535 = vmatmul.bf16.gmra.mxu3 %v7304_v58 }
 0x1c3   : > { %v1659_v63 = vpop.f32.mrf.mxu2  ;;  %v1573_v27 = vpop.f32.mrf.mxu0 }
 0x1c4   : > { %v1660_v40 = vadd.f32 %v1659_v63, %v1616_v59  ;;  %v1703_v36 = vpop.f32.mrf.mxu3  ;;  %v1617_v41 = vpop.f32.mrf.mxu1  ;;  %v6132_v59 = vld [vmem:[%s7018_s26 + $0x54] sm:$0xf0] }
 0x1c5   : > { %v1618_v43 = vadd.f32 %v1617_v41, %v1573_v27  ;;  %v7326_v62 = vor.u32 %v6132_v59, %v5137_v14  ;;  %v6158_v41 = vld [vmem:[#allocation5 + $0x4c] sm:$0xf]  ;;  %v5145_v59 = vld [vmem:[%s7018_s26 + $0x60] sm:$0xf] }
 0x1c6   : > { %v7312_v1 = vadd.f32 %v1703_v36, %v1660_v40  ;;  %v7328_v40 = vor.u32 %v6130_v18, %v5139_v19  ;;  %v5250_v3 = vor.u32 %v6158_v41, %v5247_v2  ;;  %v6135_v18 = vld [vmem:[%s7018_s26 + $0x6c] sm:$0xf0]  ;;  %v6203_v19 = vld [vmem:[#allocation5 + $0x1b4] sm:$0xf]  ;;  %v6133_v41 = vld [vmem:[%s7018_s26 + $0x64] sm:$0xf] }
 0x1c8   : > { %8149 = vst [vmem:[#allocation32_spill] sm:$0xff] %v7312_v1  ;;  %2570 = vmatpush.bf16.msra.mxu0 %v5250_v3  ;;  %v6179_v3 = vld [vmem:[#allocation5 + $0xf4] sm:$0xf] }
 0x1cb   : > { %v1661_v28 = vpop.f32.mrf.mxu2  ;;  %v1576_v24 = vpop.f32.mrf.mxu0 }
 0x1cc   : > { %v1662_v32 = vadd.f32 %v1661_v28, %v1618_v43  ;;  %v1705_v60 = vpop.f32.mrf.mxu3  ;;  %v1620_v63 = vpop.f32.mrf.mxu1  ;;  %v5343_v43 = vld [vmem:[#allocation5 + $0x114] sm:$0xf0]  ;;  %v5427_v28 = vld [vmem:[#allocation5 + $0x1bc] sm:$0xf0] }
 0x1cd   : > { %v1621_v27 = vadd.f32 %v1620_v63, %v1576_v24  ;;  %v5346_v44 = vor.u32 %v6182_v54, %v5343_v43  ;;  %v5523_v24 = vld [vmem:[#allocation5 + $0x27c] sm:$0xf0]  ;;  %v6155_v63 = vld [vmem:[#allocation5 + $0x34] sm:$0xf] }
 0x1ce   : > { %v7330_v36 = vadd.f32 %v1705_v60, %v1662_v32  ;;  %2408 = vmatmul.bf16.gmra.mxu0 %v7322_v29  ;;  %v6227_v32 = vld [vmem:[#allocation5 + $0x274] sm:$0xf]  ;;  %v5430_v60 = vor.u32 %v6203_v19, %v5427_v28  ;;  %v5331_v43 = vld [vmem:[#allocation5 + $0xfc] sm:$0xf0] }
 0x1cf   : > { %2452 = vmatmul.bf16.gmra.mxu1 %v7324_v61  ;;  %v5526_v2 = vor.u32 %v6227_v32, %v5523_v24 }
 0x1d0   : > { %8150 = vst [vmem:[#allocation33_spill] sm:$0xff] %v7330_v36  ;;  %2496 = vmatmul.bf16.gmra.mxu2 %v7326_v62  ;;  %2614 = vmatpush.bf16.msra.mxu1 %v5346_v44  ;;  %v5147_v44 = vld [vmem:[%s7018_s26 + $0x70] sm:$0xf0]  ;;  %v7346_v36 = vor.u32 %v6135_v18, %v5145_v59 }
 0x1d1   : > { %2540 = vmatmul.bf16.gmra.mxu3 %v7328_v40  ;;  %2659 = vmatpush.bf16.msra.mxu2 %v5430_v60  ;;  %v7348_v32 = vor.u32 %v6133_v41, %v5147_v44  ;;  %v6200_v44 = vld [vmem:[#allocation5 + $0x19c] sm:$0xf] }
 0x1d2   : > { %2703 = vmatpush.bf16.msra.mxu3 %v5526_v2 }
 0x1d3   : > { %v1664_v21 = vpop.f32.mrf.mxu2  ;;  %v1578_v47 = vpop.f32.mrf.mxu0 }
 0x1d4   : > { %v1665_v22 = vadd.f32 %v1664_v21, %v1621_v27  ;;  %v1708_v57 = vpop.f32.mrf.mxu3  ;;  %v1622_v11 = vpop.f32.mrf.mxu1  ;;  %v5235_v27 = vld [vmem:[#allocation5 + $0x3c] sm:$0xf0]  ;;  %v5153_v21 = vld [vmem:[%s7018_s26 + $0x68] sm:$0xf] }
 0x1d5   : > { %v1623_v14 = vadd.f32 %v1622_v11, %v1578_v47  ;;  %v5238_v54 = vor.u32 %v6155_v63, %v5235_v27  ;;  %v6134_v47 = vld [vmem:[%s7018_s26 + $0x6c] sm:$0xf]  ;;  %v5155_v11 = vld [vmem:[%s7018_s26 + $0x78] sm:$0xf0] }
 0x1d6   : > { %v7336_v7 = vadd.f32 %v1708_v57, %v1665_v22  ;;  %v6136_v22 = vld [vmem:[%s7018_s26 + $0x74] sm:$0xf0]  ;;  %v5334_v57 = vor.u32 %v6179_v3, %v5331_v43  ;;  %v7352_v60 = vor.u32 %v6134_v47, %v5155_v11  ;;  %v6139_v43 = vld [vmem:[%s7018_s26 + $0x8c] sm:$0xf0]  ;;  %v5511_v47 = vld [vmem:[#allocation5 + $0x264] sm:$0xf0] }
 0x1d7   : > { %2571 = vmatpush.bf16.msra.mxu0 %v5238_v54  ;;  %v7350_v24 = vor.u32 %v6136_v22, %v5153_v21  ;;  %v5415_v21 = vld [vmem:[#allocation5 + $0x1a4] sm:$0xf0]  ;;  %v6224_v22 = vld [vmem:[#allocation5 + $0x25c] sm:$0xf] }
 0x1d8   : > { %8151 = vst [vmem:[#allocation34_spill] sm:$0xff] %v7336_v7  ;;  %2615 = vmatpush.bf16.msra.mxu1 %v5334_v57  ;;  %v5418_v57 = vor.u32 %v6200_v44, %v5415_v21  ;;  %v6152_v11 = vld [vmem:[#allocation5 + $0x1c] sm:$0xf] }
 0x1da   : > { %2660 = vmatpush.bf16.msra.mxu2 %v5418_v57 }
 0x1db   : > { %v1666_v7 = vpop.f32.mrf.mxu2  ;;  %v1581_v1 = vpop.f32.mrf.mxu0 }
 0x1dc   : > { %v1667_v19 = vadd.f32 %v1666_v7, %v1623_v14  ;;  %v1710_v28 = vpop.f32.mrf.mxu3  ;;  %v1625_v63 = vpop.f32.mrf.mxu1 }
 0x1dd   : > { %v1626_v2 = vadd.f32 %v1625_v63, %v1581_v1  ;;  %v5161_v1 = vld [vmem:[%s7018_s26 + $0x80] sm:$0xf]  ;;  %v5514_v63 = vor.u32 %v6224_v22, %v5511_v47 }
 0x1de   : > { %v7354_v27 = vadd.f32 %v1710_v28, %v1667_v19  ;;  %2413 = vmatmul.bf16.gmra.mxu0 %v7346_v36  ;;  %v5223_v19 = vld [vmem:[#allocation5 + $0x24] sm:$0xf0]  ;;  %v6137_v28 = vld [vmem:[%s7018_s26 + $0x84] sm:$0xf]  ;;  %v7370_v4 = vor.u32 %v6139_v43, %v5161_v1 }
 0x1df   : > { %2457 = vmatmul.bf16.gmra.mxu1 %v7348_v32  ;;  %2704 = vmatpush.bf16.msra.mxu3 %v5514_v63 }
 0x1e0   : > { %8152 = vst [vmem:[#allocation35_spill] sm:$0xff] %v7354_v27  ;;  %2501 = vmatmul.bf16.gmra.mxu2 %v7350_v24  ;;  %v6138_v27 = vld [vmem:[%s7018_s26 + $0x8c] sm:$0xf] }
 0x1e1   : > { %2545 = vmatmul.bf16.gmra.mxu3 %v7352_v60 }
 0x1e3   : > { %v1669_v7 = vpop.f32.mrf.mxu2  ;;  %v1583_v18 = vpop.f32.mrf.mxu0 }
 0x1e4   : > { %v1670_v14 = vadd.f32 %v1669_v7, %v1626_v2  ;;  %v1713_v59 = vpop.f32.mrf.mxu3  ;;  %v1627_v41 = vpop.f32.mrf.mxu1  ;;  %v5226_v2 = vor.u32 %v6152_v11, %v5223_v19  ;;  %v6176_v7 = vld [vmem:[#allocation5 + $0xdc] sm:$0xf]  ;;  %v7376_v19 = vor.u32 %v6138_v27, %v5171_v17 }
 0x1e5   : > { %v1628_v3 = vadd.f32 %v1627_v41, %v1583_v18  ;;  %v5169_v18 = vld [vmem:[%s7018_s26 + $0x88] sm:$0xf]  ;;  %v6140_v41 = vld [vmem:[%s7018_s26 + $0x94] sm:$0xf0] }
 0x1e6   : > { %v7360_v54 = vadd.f32 %v1713_v59, %v1670_v14  ;;  %v5319_v14 = vld [vmem:[#allocation5 + $0xe4] sm:$0xf0]  ;;  %v5163_v59 = vld [vmem:[%s7018_s26 + $0x90] sm:$0xf0]  ;;  %2572 = vmatpush.bf16.msra.mxu0 %v5226_v2  ;;  %v7374_v47 = vor.u32 %v6140_v41, %v5169_v18  ;;  %v6221_v2 = vld [vmem:[#allocation5 + $0x244] sm:$0xf] }
 0x1e7   : > { %v7372_v22 = vor.u32 %v6137_v28, %v5163_v59  ;;  %v6149_v59 = vld [vmem:[#allocation5 + $0x4] sm:$0xf]  ;;  %v5211_v41 = vld [vmem:[#allocation5 + $0xc] sm:$0xf0] }
 0x1e8   : > { %8153 = vst [vmem:[#allocation36_spill] sm:$0xff] %v7360_v54  ;;  %v5322_v54 = vor.u32 %v6176_v7, %v5319_v14  ;;  %v5499_v14 = vld [vmem:[#allocation5 + $0x24c] sm:$0xf0] }
 0x1e9   : > { %v5502_v18 = vor.u32 %v6221_v2, %v5499_v14 }
 0x1ea   : > { %2616 = vmatpush.bf16.msra.mxu1 %v5322_v54  ;;  %v5403_v54 = vld [vmem:[#allocation5 + $0x18c] sm:$0xf0] }
 0x1eb   : > { %v1671_v25 = vpop.f32.mrf.mxu2  ;;  %v1586_v26 = vpop.f32.mrf.mxu0  ;;  %2705 = vmatpush.bf16.msra.mxu3 %v5502_v18 }
 0x1ec   : > { %v1672_v44 = vadd.f32 %v1671_v25, %v1628_v3  ;;  %v1715_v21 = vpop.f32.mrf.mxu3  ;;  %v1630_v11 = vpop.f32.mrf.mxu1  ;;  %v6197_v25 = vld [vmem:[#allocation5 + $0x184] sm:$0xf] }
 0x1ed   : > { %v1631_v7 = vadd.f32 %v1630_v11, %v1586_v26  ;;  %v5406_v3 = vor.u32 %v6197_v25, %v5403_v54  ;;  %v5177_v11 = vld [vmem:[%s7018_s26 + $0xa0] sm:$0xf]  ;;  %v6141_v25 = vld [vmem:[%s7018_s26 + $0xa4] sm:$0xf]  ;;  %v5214_v54 = vor.u32 %v6149_v59, %v5211_v41 }
 0x1ee   : > { %v7378_v57 = vadd.f32 %v1715_v21, %v1672_v44  ;;  %2418 = vmatmul.bf16.gmra.mxu0 %v7370_v4  ;;  %v6173_v44 = vld [vmem:[#allocation5 + $0xc4] sm:$0xf]  ;;  %v5307_v21 = vld [vmem:[#allocation5 + $0xcc] sm:$0xf0] }
 0x1ef   : > { %2462 = vmatmul.bf16.gmra.mxu1 %v7372_v22  ;;  %2661 = vmatpush.bf16.msra.mxu2 %v5406_v3  ;;  %v5310_v3 = vor.u32 %v6173_v44, %v5307_v21  ;;  %v6220_v21 = vld [vmem:[#allocation5 + $0x238] sm:$0xf0] }
 0x1f0   : > { %8154 = vst [vmem:[#allocation37_spill] sm:$0xff] %v7378_v57  ;;  %2506 = vmatmul.bf16.gmra.mxu2 %v7374_v47  ;;  %v5185_v57 = vld [vmem:[%s7018_s26 + $0xa8] sm:$0xf]  ;;  %2573 = vmatpush.bf16.msra.mxu0 %v5214_v54 }
 0x1f1   : > { %2550 = vmatmul.bf16.gmra.mxu3 %v7376_v19  ;;  %2617 = vmatpush.bf16.msra.mxu1 %v5310_v3 }
 0x1f3   : > { %v1674_v1 = vpop.f32.mrf.mxu2  ;;  %v1588_v27 = vpop.f32.mrf.mxu0 }
 0x1f4   : > { %v1675_v43 = vadd.f32 %v1674_v1, %v1631_v7  ;;  %v1718_v17 = vpop.f32.mrf.mxu3  ;;  %v1632_v26 = vpop.f32.mrf.mxu1  ;;  %v6143_v7 = vld [vmem:[%s7018_s26 + $0xac] sm:$0xf0]  ;;  %v5179_v1 = vld [vmem:[%s7018_s26 + $0xb0] sm:$0xf0] }
 0x1f5   : > { %v1633_v63 = vadd.f32 %v1632_v26, %v1588_v27  ;;  %v5187_v27 = vld [vmem:[%s7018_s26 + $0xb8] sm:$0xf0]  ;;  %v7396_v20 = vor.u32 %v6141_v25, %v5179_v1 }
 0x1f6   : > { %v7384_v28 = vadd.f32 %v1718_v17, %v1675_v43  ;;  %v6144_v43 = vld [vmem:[%s7018_s26 + $0xb4] sm:$0xf0]  ;;  %v6142_v17 = vld [vmem:[%s7018_s26 + $0xac] sm:$0xf] }
 0x1f7   : > { %v7398_v0 = vor.u32 %v6144_v43, %v5185_v57  ;;  %v7400_v41 = vor.u32 %v6142_v17, %v5187_v27  ;;  %v6244_v57 = vld [vmem:[#allocation5 + $0x2f8] sm:$0xf0] }
 0x1f8   : > { %8155 = vst [vmem:[#allocation38_spill] sm:$0xff] %v7384_v28  ;;  %v7394_v28 = vor.u32 %v6143_v7, %v5177_v11  ;;  %v5589_v11 = vld [vmem:[#allocation5 + $0x2f0] sm:$0xf] }
 0x1f9   : > { %v5590_v54 = vor.u32 %v6244_v57, %v5589_v11  ;;  %v6145_v11 = vld [vmem:[%s7018_s26 + $0xc4] sm:$0xf] }
 0x1fb   : > { %v1676_v26 = vpop.f32.mrf.mxu2  ;;  %v1591_v55 = vpop.f32.mrf.mxu0  ;;  %2874 = vmatpush.bf16.msrb.mxu3 %v5590_v54  ;;  %v5203_v54 = vld [vmem:[%s7018_s26 + $0xd8] sm:$0xf0] }
 0x1fc   : > { %v1677_v2 = vadd.f32 %v1676_v26, %v1633_v63  ;;  %v1720_v14 = vpop.f32.mrf.mxu3  ;;  %v1635_v59 = vpop.f32.mrf.mxu1  ;;  %v5493_v63 = vld [vmem:[#allocation5 + $0x230] sm:$0xf]  ;;  %v7424_v16 = vor.u32 %v6146_v8, %v5203_v54 }
 0x1fd   : > { %v1636_v18 = vadd.f32 %v1635_v59, %v1591_v55  ;;  %v5494_v7 = vor.u32 %v6220_v21, %v5493_v63  ;;  %v5301_v26 = vld [vmem:[#allocation5 + $0xb0] sm:$0xf]  ;;  %v6196_v63 = vld [vmem:[#allocation5 + $0x178] sm:$0xf0]  ;;  %v5193_v21 = vld [vmem:[%s7018_s26 + $0xc0] sm:$0xf] }
 0x1fe   : > { %v7402_v44 = vadd.f32 %v1720_v14, %v1677_v2  ;;  %2423 = vmatmul.bf16.gmra.mxu0 %v7394_v28  ;;  %v6172_v2 = vld [vmem:[#allocation5 + $0xb8] sm:$0xf0]  ;;  %v5397_v14 = vld [vmem:[#allocation5 + $0x170] sm:$0xf] }
 0x1ff   : > { %2467 = vmatmul.bf16.gmra.mxu1 %v7396_v20  ;;  %2830 = vmatpush.bf16.msrb.mxu2 %v5494_v7  ;;  %v5302_v59 = vor.u32 %v6172_v2, %v5301_v26  ;;  %v5398_v57 = vor.u32 %v6196_v63, %v5397_v14  ;;  %v6148_v7 = vld [vmem:[%s7018_s26 + $0xd4] sm:$0xf0] }
 0x200   : > { %8156 = vst [vmem:[#allocation39_spill] sm:$0xff] %v7402_v44  ;;  %2511 = vmatmul.bf16.gmra.mxu2 %v7398_v0  ;;  %v5201_v44 = vld [vmem:[%s7018_s26 + $0xc8] sm:$0xf] }
 0x201   : > { %2555 = vmatmul.bf16.gmra.mxu3 %v7400_v41  ;;  %2742 = vmatpush.bf16.msrb.mxu0 %v5302_v59  ;;  %v7422_v26 = vor.u32 %v6148_v7, %v5201_v44  ;;  %v5481_v59 = vld [vmem:[#allocation5 + $0x218] sm:$0xf]  ;;  %v6241_v44 = vld [vmem:[#allocation5 + $0x2e0] sm:$0xf0] }
 0x202   : > { %2786 = vmatpush.bf16.msrb.mxu1 %v5398_v57  ;;  %v6217_v57 = vld [vmem:[#allocation5 + $0x220] sm:$0xf0] }
 0x203   : > { %v1679_v25 = vpop.f32.mrf.mxu2  ;;  %v1593_v1 = vpop.f32.mrf.mxu0  ;;  %v6193_v7 = vld [vmem:[#allocation5 + $0x160] sm:$0xf0] }
 0x204   : > { %v1680_v3 = vadd.f32 %v1679_v25, %v1636_v18  ;;  %v1723_v55 = vpop.f32.mrf.mxu3  ;;  %v1637_v43 = vpop.f32.mrf.mxu1  ;;  %v6147_v18 = vld [vmem:[%s7018_s26 + $0xcc] sm:$0xf0]  ;;  %v5195_v25 = vld [vmem:[%s7018_s26 + $0xd0] sm:$0xf0] }
 0x205   : > { %v1638_v27 = vadd.f32 %v1637_v43, %v1593_v1  ;;  %v7420_v37 = vor.u32 %v6145_v11, %v5195_v25  ;;  %v6169_v11 = vld [vmem:[#allocation5 + $0xa0] sm:$0xf0]  ;;  %v5385_v25 = vld [vmem:[#allocation5 + $0x158] sm:$0xf] }
 0x206   : > { %v7408_v17 = vadd.f32 %v1723_v55, %v1680_v3  ;;  %v7418_v55 = vor.u32 %v6147_v18, %v5193_v21  ;;  %v5577_v21 = vld [vmem:[#allocation5 + $0x2d8] sm:$0xf] }
 0x207   : > { %v5289_v18 = vld [vmem:[#allocation5 + $0x98] sm:$0xf]  ;;  %v5578_v8 = vor.u32 %v6241_v44, %v5577_v21 }
 0x208   : > { %8157 = vst [vmem:[#allocation40_spill] sm:$0xff] %v7408_v17  ;;  %v5290_v54 = vor.u32 %v6169_v11, %v5289_v18  ;;  %v5469_v18 = vld [vmem:[#allocation5 + $0x200] sm:$0xf]  ;;  %v6214_v11 = vld [vmem:[#allocation5 + $0x208] sm:$0xf0] }
 0x209   : > { %2875 = vmatpush.bf16.msrb.mxu3 %v5578_v8  ;;  %v5565_v8 = vld [vmem:[#allocation5 + $0x2c0] sm:$0xf] }
 0x20a   : > { %2743 = vmatpush.bf16.msrb.mxu0 %v5290_v54  ;;  %v6190_v54 = vld [vmem:[#allocation5 + $0x148] sm:$0xf0] }
 0x20b   : > { %v1681_v3 = vpop.f32.mrf.mxu2  ;;  %v1596_v17 = vpop.f32.mrf.mxu0 }
 0x20c   : > { %v1682_v1 = vadd.f32 %v1681_v3, %v1638_v27  ;;  %v1725_v43 = vpop.f32.mrf.mxu3  ;;  %v1640_v2 = vpop.f32.mrf.mxu1  ;;  %v5482_v27 = vor.u32 %v6217_v57, %v5481_v59  ;;  %v5386_v3 = vor.u32 %v6193_v7, %v5385_v25  ;;  %v6238_v25 = vld [vmem:[#allocation5 + $0x2c8] sm:$0xf0] }
 0x20d   : > { %v1641_v63 = vadd.f32 %v1640_v2, %v1596_v17  ;;  %v6166_v7 = vld [vmem:[#allocation5 + $0x88] sm:$0xf0] }
 0x20e   : > { %v7426_v14 = vadd.f32 %v1725_v43, %v1682_v1  ;;  %2428 = vmatmul.bf16.gmra.mxu0 %v7418_v55  ;;  %2831 = vmatpush.bf16.msrb.mxu2 %v5482_v27 }
 0x20f   : > { %2472 = vmatmul.bf16.gmra.mxu1 %v7420_v37 }
 0x210   : > { %8158 = vst [vmem:[#allocation41_spill] sm:$0xff] %v7426_v14  ;;  %2516 = vmatmul.bf16.gmra.mxu2 %v7422_v26  ;;  %2787 = vmatpush.bf16.msrb.mxu1 %v5386_v3 }
 0x211   : > { %2560 = vmatmul.bf16.gmra.mxu3 %v7424_v16 }
 0x213   : > { %v1684_v17 = vpop.f32.mrf.mxu2  ;;  %v1598_v2 = vpop.f32.mrf.mxu0 }
 0x214   : > { %v1685_v1 = vadd.f32 %v1684_v17, %v1641_v63  ;;  %v1728_v43 = vpop.f32.mrf.mxu3  ;;  %v1642_v14 = vpop.f32.mrf.mxu1  ;;  %v5470_v63 = vor.u32 %v6214_v11, %v5469_v18  ;;  %v5457_v18 = vld [vmem:[#allocation5 + $0x1e8] sm:$0xf]  ;;  %v6211_v11 = vld [vmem:[#allocation5 + $0x1f0] sm:$0xf0] }
 0x215   : > { %v1643_v57 = vadd.f32 %v1642_v14, %v1598_v2  ;;  %v5566_v14 = vor.u32 %v6238_v25, %v5565_v8 }
 0x216   : > { %v7432_v59 = vadd.f32 %v1728_v43, %v1685_v1  ;;  %2832 = vmatpush.bf16.msrb.mxu2 %v5470_v63  ;;  %v5458_v63 = vor.u32 %v6211_v11, %v5457_v18 }
 0x217   : > { %2876 = vmatpush.bf16.msrb.mxu3 %v5566_v14 }
 0x21a   : > { %2833 = vmatpush.bf16.msrb.mxu2 %v5458_v63 }
 0x21b   : > { %v1686_v50 = vpop.f32.mrf.mxu2  ;;  %v1601_v21 = vpop.f32.mrf.mxu0 }
 0x21c   : > { %v1687_v31 = vadd.f32 %v1686_v50, %v1643_v57  ;;  %v1730_v27 = vpop.f32.mrf.mxu3  ;;  %v1645_v44 = vpop.f32.mrf.mxu1  ;;  %v5277_v50 = vld [vmem:[#allocation5 + $0x80] sm:$0xf] }
 0x21d   : > { %v1646_v48 = vadd.f32 %v1645_v44, %v1601_v21  ;;  %v5278_v17 = vor.u32 %v6166_v7, %v5277_v50 }
 0x21e   : > { %v7434_v52 = vadd.f32 %v1730_v27, %v1687_v31  ;;  %2574 = vmatmul.bf16.vlgmr.msra.gmra.mxu0 %v7274_v38  ;;  %v5373_v31 = vld [vmem:[#allocation5 + $0x140] sm:$0xf] }
 0x21f   : > { %2618 = vmatmul.bf16.vlgmr.msra.gmra.mxu1 %v7276_v39  ;;  %v5374_v1 = vor.u32 %v6190_v54, %v5373_v31  ;;  %2744 = vmatpush.bf16.msrb.mxu0 %v5278_v17  ;;  %v5553_v54 = vld [vmem:[#allocation5 + $0x2a8] sm:$0xf]  ;;  %v6235_v17 = vld [vmem:[#allocation5 + $0x2b0] sm:$0xf0] }
 0x220   : > { %2662 = vmatmul.bf16.vlgmr.msra.gmra.mxu2 %v7278_v46 }
 0x221   : > { %2706 = vmatmul.bf16.vlgmr.msra.gmra.mxu3 %v7280_v49  ;;  %2788 = vmatpush.bf16.msrb.mxu1 %v5374_v1  ;;  %v5554_v1 = vor.u32 %v6235_v17, %v5553_v54  ;;  %v6208_v54 = vld [vmem:[#allocation5 + $0x1d8] sm:$0xf0]  ;;  %v5541_v17 = vld [vmem:[#allocation5 + $0x290] sm:$0xf] }
 0x223   : > { %v1689_v3 = vpop.f32.mrf.mxu2  ;;  %v1603_v57 = vpop.f32.mrf.mxu0  ;;  %2877 = vmatpush.bf16.msrb.mxu3 %v5554_v1 }
 0x224   : > { %v1690_v43 = vadd.f32 %v1689_v3, %v1646_v48  ;;  %v1733_v2 = vpop.f32.mrf.mxu3  ;;  %v1647_v27 = vpop.f32.mrf.mxu1 }
 0x225   : > { %v1648_v44 = vadd.f32 %v1647_v27, %v1603_v57  ;;  %v5361_v57 = vld [vmem:[#allocation5 + $0x128] sm:$0xf] }
 0x226   : > { %v7440_v21 = vadd.f32 %v1733_v2, %v1690_v43  ;;  %v5265_v43 = vld [vmem:[#allocation5 + $0x68] sm:$0xf]  ;;  %v6163_v2 = vld [vmem:[#allocation5 + $0x70] sm:$0xf0] }
 0x227   : > { %v5266_v27 = vor.u32 %v6163_v2, %v5265_v43  ;;  %v6232_v2 = vld [vmem:[#allocation5 + $0x298] sm:$0xf0] }
 0x229   : > { %2745 = vmatpush.bf16.msrb.mxu0 %v5266_v27 }
 0x22b   : > { %v1691_v8 = vpop.f32.mrf.mxu2  ;;  %v2399_v50 = vpop.f32.mrf.mxu0 }
 0x22c   : > { %v1692_v25 = vadd.f32 %v1691_v8, %v1648_v44  ;;  %v1735_v14 = vpop.f32.mrf.mxu3  ;;  %v2400_v7 = vadd.f32 %v2399_v50, %v7168_v12  ;;  %v2443_v31 = vpop.f32.mrf.mxu1  ;;  %v6187_v44 = vld [vmem:[#allocation5 + $0x130] sm:$0xf0] }
 0x22d   : > { %v5362_v12 = vor.u32 %v6187_v44, %v5361_v57 }
 0x22e   : > { %v7443_v48 = vadd.f32 %v1735_v14, %v1692_v25  ;;  %v2444_v3 = vadd.f32 %v2443_v31, %v2400_v7  ;;  %2579 = vmatmul.bf16.gmra.mxu0 %v7298_v23  ;;  %v5445_v31 = vld [vmem:[#allocation5 + $0x1d0] sm:$0xf] }
 0x22f   : > { %2623 = vmatmul.bf16.gmra.mxu1 %v7300_v13  ;;  %v5446_v43 = vor.u32 %v6208_v54, %v5445_v31 }
 0x230   : > { %8159 = vst [vmem:[#allocation42_spill] sm:$0xff] %v7443_v48  ;;  %2667 = vmatmul.bf16.gmra.mxu2 %v7302_v56  ;;  %2789 = vmatpush.bf16.msrb.mxu1 %v5362_v12  ;;  %v5542_v48 = vor.u32 %v6232_v2, %v5541_v17 }
 0x231   : > { %2711 = vmatmul.bf16.gmra.mxu3 %v7304_v58  ;;  %2834 = vmatpush.bf16.msrb.mxu2 %v5446_v43 }
 0x232   : > { %2878 = vmatpush.bf16.msrb.mxu3 %v5542_v48 }
 0x233   : > { %v2487_v18 = vpop.f32.mrf.mxu2  ;;  %v2401_v8 = vpop.f32.mrf.mxu0 }
 0x234   : > { %v2488_v11 = vadd.f32 %v2487_v18, %v2444_v3  ;;  %v2531_v63 = vpop.f32.mrf.mxu3  ;;  %v2402_v25 = vadd.f32 %v2401_v8, %v7170_v33  ;;  %v2445_v14 = vpop.f32.mrf.mxu1  ;;  %v5253_v18 = vld [vmem:[#allocation5 + $0x50] sm:$0xf] }
 0x236   : > { %v7450_v50 = vadd.f32 %v2531_v63, %v2488_v11  ;;  %v2446_v7 = vadd.f32 %v2445_v14, %v2402_v25  ;;  %v6160_v11 = vld [vmem:[#allocation5 + $0x58] sm:$0xf0]  ;;  %v5349_v63 = vld [vmem:[#allocation5 + $0x110] sm:$0xf] }
 0x237   : > { %v5254_v25 = vor.u32 %v6160_v11, %v5253_v18  ;;  %v6184_v14 = vld [vmem:[#allocation5 + $0x118] sm:$0xf0]  ;;  %v5241_v18 = vld [vmem:[#allocation5 + $0x38] sm:$0xf]  ;;  %v6157_v11 = vld [vmem:[#allocation5 + $0x40] sm:$0xf0] }
 0x238   : > { %v5350_v48 = vor.u32 %v6184_v14, %v5349_v63  ;;  %v5337_v14 = vld [vmem:[#allocation5 + $0xf8] sm:$0xf] }
 0x239   : > { %2746 = vmatpush.bf16.msrb.mxu0 %v5254_v25  ;;  %v5242_v25 = vor.u32 %v6157_v11, %v5241_v18  ;;  %v5421_v11 = vld [vmem:[#allocation5 + $0x1a0] sm:$0xf] }
 0x23a   : > { %2790 = vmatpush.bf16.msrb.mxu1 %v5350_v48  ;;  %v6181_v48 = vld [vmem:[#allocation5 + $0x100] sm:$0xf0] }
 0x23b   : > { %v2489_v1 = vpop.f32.mrf.mxu2  ;;  %v2404_v3 = vpop.f32.mrf.mxu0 }
 0x23c   : > { %v2490_v57 = vadd.f32 %v2489_v1, %v2446_v7  ;;  %v2533_v27 = vpop.f32.mrf.mxu3  ;;  %v2405_v44 = vadd.f32 %v2404_v3, %v7176_v51  ;;  %v2448_v12 = vpop.f32.mrf.mxu1  ;;  %v5529_v3 = vld [vmem:[#allocation5 + $0x278] sm:$0xf] }
 0x23d   : > { %2747 = vmatpush.bf16.msrb.mxu0 %v5242_v25 }
 0x23e   : > { %v7453_v33 = vadd.f32 %v2533_v27, %v2490_v57  ;;  %v2449_v8 = vadd.f32 %v2448_v12, %v2405_v44  ;;  %2584 = vmatmul.bf16.gmra.mxu0 %v7322_v29  ;;  %v5433_v57 = vld [vmem:[#allocation5 + $0x1b8] sm:$0xf]  ;;  %v6205_v27 = vld [vmem:[#allocation5 + $0x1c0] sm:$0xf0] }
 0x23f   : > { %2628 = vmatmul.bf16.gmra.mxu1 %v7324_v61  ;;  %v5434_v44 = vor.u32 %v6205_v27, %v5433_v57  ;;  %v6229_v12 = vld [vmem:[#allocation5 + $0x280] sm:$0xf0] }
 0x240   : > { %2672 = vmatmul.bf16.gmra.mxu2 %v7326_v62  ;;  %v5530_v63 = vor.u32 %v6229_v12, %v5529_v3 }
 0x241   : > { %2716 = vmatmul.bf16.gmra.mxu3 %v7328_v40  ;;  %2835 = vmatpush.bf16.msrb.mxu2 %v5434_v44 }
 0x242   : > { %2879 = vmatpush.bf16.msrb.mxu3 %v5530_v63  ;;  %v6202_v63 = vld [vmem:[#allocation5 + $0x1a8] sm:$0xf0] }
 0x243   : > { %v2492_v51 = vpop.f32.mrf.mxu2  ;;  %v2406_v54 = vpop.f32.mrf.mxu0 }
 0x244   : > { %v2493_v7 = vadd.f32 %v2492_v51, %v2449_v8  ;;  %v2536_v31 = vpop.f32.mrf.mxu3  ;;  %v2407_v17 = vadd.f32 %v2406_v54, %v7178_v30  ;;  %v2450_v43 = vpop.f32.mrf.mxu1  ;;  %v5338_v8 = vor.u32 %v6181_v48, %v5337_v14  ;;  %v5422_v14 = vor.u32 %v6202_v63, %v5421_v11  ;;  %v5517_v48 = vld [vmem:[#allocation5 + $0x260] sm:$0xf]  ;;  %v5409_v63 = vld [vmem:[#allocation5 + $0x188] sm:$0xf] }
 0x246   : > { %v7460_v2 = vadd.f32 %v2536_v31, %v2493_v7  ;;  %v2451_v1 = vadd.f32 %v2450_v43, %v2407_v17  ;;  %2791 = vmatpush.bf16.msrb.mxu1 %v5338_v8  ;;  %v6226_v8 = vld [vmem:[#allocation5 + $0x268] sm:$0xf0]  ;;  %2836 = vmatpush.bf16.msrb.mxu2 %v5422_v14  ;;  %v6199_v14 = vld [vmem:[#allocation5 + $0x190] sm:$0xf0] }
 0x24b   : > { %v2494_v51 = vpop.f32.mrf.mxu2  ;;  %v2409_v31 = vpop.f32.mrf.mxu0 }
 0x24c   : > { %v2495_v30 = vadd.f32 %v2494_v51, %v2451_v1  ;;  %v2538_v7 = vpop.f32.mrf.mxu3  ;;  %v2410_v54 = vadd.f32 %v2409_v31, %v7184_v42  ;;  %v2453_v17 = vpop.f32.mrf.mxu1  ;;  %v5229_v51 = vld [vmem:[#allocation5 + $0x20] sm:$0xf] }
 0x24d   : > { %v5325_v31 = vld [vmem:[#allocation5 + $0xe0] sm:$0xf] }
 0x24e   : > { %v7463_v43 = vadd.f32 %v2538_v7, %v2495_v30  ;;  %v2454_v57 = vadd.f32 %v2453_v17, %v2410_v54  ;;  %2589 = vmatmul.bf16.gmra.mxu0 %v7346_v36  ;;  %v5518_v30 = vor.u32 %v6226_v8, %v5517_v48  ;;  %v6154_v7 = vld [vmem:[#allocation5 + $0x28] sm:$0xf0]  ;;  %v5410_v48 = vor.u32 %v6199_v14, %v5409_v63 }
 0x24f   : > { %2633 = vmatmul.bf16.gmra.mxu1 %v7348_v32  ;;  %v6178_v54 = vld [vmem:[#allocation5 + $0xe8] sm:$0xf0]  ;;  %v5230_v17 = vor.u32 %v6154_v7, %v5229_v51 }
 0x250   : > { %2677 = vmatmul.bf16.gmra.mxu2 %v7350_v24  ;;  %2880 = vmatpush.bf16.msrb.mxu3 %v5518_v30 }
 0x251   : > { %2721 = vmatmul.bf16.gmra.mxu3 %v7352_v60  ;;  %2748 = vmatpush.bf16.msrb.mxu0 %v5230_v17  ;;  %v6223_v17 = vld [vmem:[#allocation5 + $0x250] sm:$0xf0] }
 0x252   : > { %2837 = vmatpush.bf16.msrb.mxu2 %v5410_v48 }
 0x253   : > { %v2497_v27 = vpop.f32.mrf.mxu2  ;;  %v2411_v44 = vpop.f32.mrf.mxu0 }
 0x254   : > { %v2498_v3 = vadd.f32 %v2497_v27, %v2454_v57  ;;  %v2541_v1 = vpop.f32.mrf.mxu3  ;;  %v2412_v12 = vadd.f32 %v2411_v44, %v7186_v15  ;;  %v2455_v18 = vpop.f32.mrf.mxu1  ;;  %v5326_v57 = vor.u32 %v6178_v54, %v5325_v31  ;;  %v5505_v54 = vld [vmem:[#allocation5 + $0x248] sm:$0xf] }
 0x256   : > { %v7470_v42 = vadd.f32 %v2541_v1, %v2498_v3  ;;  %v2456_v25 = vadd.f32 %v2455_v18, %v2412_v12  ;;  %2792 = vmatpush.bf16.msrb.mxu1 %v5326_v57 }
 0x25b   : > { %v2499_v27 = vpop.f32.mrf.mxu2  ;;  %v2414_v1 = vpop.f32.mrf.mxu0 }
 0x25c   : > { %v2500_v15 = vadd.f32 %v2499_v27, %v2456_v25  ;;  %v2543_v3 = vpop.f32.mrf.mxu3  ;;  %v2415_v44 = vadd.f32 %v2414_v1, %v7192_v35  ;;  %v2458_v12 = vpop.f32.mrf.mxu1  ;;  %v5506_v27 = vor.u32 %v6223_v17, %v5505_v54  ;;  %v5313_v1 = vld [vmem:[#allocation5 + $0xc8] sm:$0xf] }
 0x25d   : > { %v6106_v54 = vld [vmem:[#allocation5 + $0x8e8] sm:$0xf] }
 0x25e   : > { %v7473_v18 = vadd.f32 %v2543_v3, %v2500_v15  ;;  %v2459_v11 = vadd.f32 %v2458_v12, %v2415_v44  ;;  %2594 = vmatmul.bf16.gmra.mxu0 %v7370_v4  ;;  %v5217_v15 = vld [vmem:[#allocation5 + $0x8] sm:$0xf]  ;;  %v6151_v3 = vld [vmem:[#allocation5 + $0x10] sm:$0xf0]  ;;  %2881 = vmatpush.bf16.msrb.mxu3 %v5506_v27 }
 0x25f   : > { %2638 = vmatmul.bf16.gmra.mxu1 %v7372_v22  ;;  %v5218_v44 = vor.u32 %v6151_v3, %v5217_v15  ;;  %v6175_v12 = vld [vmem:[#allocation5 + $0xd0] sm:$0xf0] }
 0x260   : > { %2682 = vmatmul.bf16.gmra.mxu2 %v7374_v47  ;;  %v5314_v63 = vor.u32 %v6175_v12, %v5313_v1 }
 0x261   : > { %2726 = vmatmul.bf16.gmra.mxu3 %v7376_v19  ;;  %2749 = vmatpush.bf16.msrb.mxu0 %v5218_v44 }
 0x262   : > { %2793 = vmatpush.bf16.msrb.mxu1 %v5314_v63 }
 0x263   : > { %v2502_v25 = vpop.f32.mrf.mxu2  ;;  %v2416_v30 = vpop.f32.mrf.mxu0 }
 0x264   : > { %v2503_v8 = vadd.f32 %v2502_v25, %v2459_v11  ;;  %v2546_v51 = vpop.f32.mrf.mxu3  ;;  %v2417_v35 = vadd.f32 %v2416_v30, %v7194_v9  ;;  %v2460_v7 = vpop.f32.mrf.mxu1 }
 0x266   : > { %v7480_v31 = vadd.f32 %v2546_v51, %v2503_v8  ;;  %v2461_v57 = vadd.f32 %v2460_v7, %v2417_v35  ;;  %v6010_v35 = vld [vmem:[#allocation5 + $0x828] sm:$0xf]  ;;  %v6467_v7 = vld [vmem:[#allocation5 + $0x830] sm:$0xf0] }
 0x267   : > { %v6011_v17 = vor.u32 %v6467_v7, %v6010_v35 }
 0x269   : > { %3819 = vmatpush.bf16.msra.mxu2 %v6011_v17 }
 0x26b   : > { %v2504_v11 = vpop.f32.mrf.mxu2  ;;  %v2419_v9 = vpop.f32.mrf.mxu0 }
 0x26c   : > { %v2505_v14 = vadd.f32 %v2504_v11, %v2461_v57  ;;  %v2548_v48 = vpop.f32.mrf.mxu3  ;;  %v2420_v25 = vadd.f32 %v2419_v9, %v7200_v34  ;;  %v2463_v8 = vpop.f32.mrf.mxu1  ;;  %v6491_v57 = vld [vmem:[#allocation5 + $0x8f0] sm:$0xf0]  ;;  %v5818_v11 = vld [vmem:[#allocation5 + $0x6a8] sm:$0xf] }
 0x26d   : > { %v6107_v15 = vor.u32 %v6491_v57, %v6106_v54 }
 0x26e   : > { %v7483_v51 = vadd.f32 %v2548_v48, %v2505_v14  ;;  %v2464_v30 = vadd.f32 %v2463_v8, %v2420_v25  ;;  %2599 = vmatmul.bf16.gmra.mxu0 %v7394_v28  ;;  %v6419_v14 = vld [vmem:[#allocation5 + $0x6b0] sm:$0xf0]  ;;  %v5914_v48 = vld [vmem:[#allocation5 + $0x768] sm:$0xf] }
 0x26f   : > { %2643 = vmatmul.bf16.gmra.mxu1 %v7396_v20  ;;  %3863 = vmatpush.bf16.msra.mxu3 %v6107_v15  ;;  %v5819_v25 = vor.u32 %v6419_v14, %v5818_v11  ;;  %v6443_v8 = vld [vmem:[#allocation5 + $0x770] sm:$0xf0]  ;;  %v5806_v11 = vld [vmem:[#allocation5 + $0x690] sm:$0xf]  ;;  %v6416_v14 = vld [vmem:[#allocation5 + $0x698] sm:$0xf0] }
 0x270   : > { %2687 = vmatmul.bf16.gmra.mxu2 %v7398_v0  ;;  %v5915_v35 = vor.u32 %v6443_v8, %v5914_v48  ;;  %v5902_v48 = vld [vmem:[#allocation5 + $0x750] sm:$0xf]  ;;  %v5807_v8 = vor.u32 %v6416_v14, %v5806_v11 }
 0x271   : > { %2731 = vmatmul.bf16.gmra.mxu3 %v7400_v41  ;;  %3731 = vmatpush.bf16.msra.mxu0 %v5819_v25 }
 0x272   : > { %3775 = vmatpush.bf16.msra.mxu1 %v5915_v35 }
 0x273   : > { %v2507_v27 = vpop.f32.mrf.mxu2  ;;  %v2421_v1 = vpop.f32.mrf.mxu0 }
 0x274   : > { %v2508_v34 = vadd.f32 %v2507_v27, %v2464_v30  ;;  %v2551_v3 = vpop.f32.mrf.mxu3  ;;  %v2422_v44 = vadd.f32 %v2421_v1, %v7202_v6  ;;  %v2465_v12 = vpop.f32.mrf.mxu1 }
 0x275   : > { %3732 = vmatpush.bf16.msra.mxu0 %v5807_v8 }
 0x276   : > { %v7490_v63 = vadd.f32 %v2551_v3, %v2508_v34  ;;  %v2466_v9 = vadd.f32 %v2465_v12, %v2422_v44  ;;  %v5998_v34 = vld [vmem:[#allocation5 + $0x810] sm:$0xf]  ;;  %v6464_v3 = vld [vmem:[#allocation5 + $0x818] sm:$0xf0] }
 0x277   : > { %v5999_v1 = vor.u32 %v6464_v3, %v5998_v34  ;;  %v6094_v44 = vld [vmem:[#allocation5 + $0x8d0] sm:$0xf]  ;;  %v6488_v12 = vld [vmem:[#allocation5 + $0x8d8] sm:$0xf0] }
 0x279   : > { %3820 = vmatpush.bf16.msra.mxu2 %v5999_v1 }
 0x27b   : > { %v2509_v7 = vpop.f32.mrf.mxu2  ;;  %v2424_v57 = vpop.f32.mrf.mxu0 }
 0x27c   : > { %v2510_v30 = vadd.f32 %v2509_v7, %v2466_v9  ;;  %v2553_v54 = vpop.f32.mrf.mxu3  ;;  %v2425_v17 = vadd.f32 %v2424_v57, %v7208_v45  ;;  %v2468_v6 = vpop.f32.mrf.mxu1  ;;  %v6095_v45 = vor.u32 %v6488_v12, %v6094_v44  ;;  %v6440_v9 = vld [vmem:[#allocation5 + $0x758] sm:$0xf0] }
 0x27d   : > { %v5903_v35 = vor.u32 %v6440_v9, %v5902_v48  ;;  %v6461_v48 = vld [vmem:[#allocation5 + $0x800] sm:$0xf0]  ;;  %v6082_v9 = vld [vmem:[#allocation5 + $0x8b8] sm:$0xf] }
 0x27e   : > { %v7493_v27 = vadd.f32 %v2553_v54, %v2510_v30  ;;  %v2469_v15 = vadd.f32 %v2468_v6, %v2425_v17  ;;  %2604 = vmatmul.bf16.gmra.mxu0 %v7418_v55  ;;  %3864 = vmatpush.bf16.msra.mxu3 %v6095_v45 }
 0x27f   : > { %2648 = vmatmul.bf16.gmra.mxu1 %v7420_v37 }
 0x280   : > { %8160 = vst [vmem:[#allocation43_spill] sm:$0xff] %v7493_v27  ;;  %2692 = vmatmul.bf16.gmra.mxu2 %v7422_v26  ;;  %3776 = vmatpush.bf16.msra.mxu1 %v5903_v35  ;;  %v6413_v35 = vld [vmem:[#allocation5 + $0x680] sm:$0xf0] }
 0x281   : > { %2736 = vmatmul.bf16.gmra.mxu3 %v7424_v16 }
 0x283   : > { %v2512_v25 = vpop.f32.mrf.mxu2  ;;  %v2426_v54 = vpop.f32.mrf.mxu0 }
 0x284   : > { %v2513_v7 = vadd.f32 %v2512_v25, %v2469_v15  ;;  %v2556_v30 = vpop.f32.mrf.mxu3  ;;  %v2427_v57 = vadd.f32 %v2426_v54, %v7210_v5  ;;  %v2470_v17 = vpop.f32.mrf.mxu1  ;;  %v5986_v15 = vld [vmem:[#allocation5 + $0x7f8] sm:$0xf]  ;;  %v6485_v25 = vld [vmem:[#allocation5 + $0x8c0] sm:$0xf0] }
 0x285   : > { %v5987_v5 = vor.u32 %v6461_v48, %v5986_v15  ;;  %v6083_v8 = vor.u32 %v6485_v25, %v6082_v9  ;;  %v6437_v54 = vld [vmem:[#allocation5 + $0x740] sm:$0xf0] }
 0x286   : > { %v7500_v6 = vadd.f32 %v2556_v30, %v2513_v7  ;;  %v2471_v34 = vadd.f32 %v2470_v17, %v2427_v57  ;;  %v5890_v7 = vld [vmem:[#allocation5 + $0x738] sm:$0xf]  ;;  %v8161_v9 = vld [vmem:[#allocation18_spill] sm:$0xff] }
 0x287   : > { %3821 = vmatpush.bf16.msra.mxu2 %v5987_v5  ;;  %3865 = vmatpush.bf16.msra.mxu3 %v6083_v8  ;;  %v5891_v57 = vor.u32 %v6437_v54, %v5890_v7  ;;  %v6410_v54 = vld [vmem:[#allocation5 + $0x668] sm:$0xf0] }
 0x289   : > { %3777 = vmatpush.bf16.msra.mxu1 %v5891_v57 }
 0x28b   : > { %v2514_v3 = vpop.f32.mrf.mxu2  ;;  %v2429_v12 = vpop.f32.mrf.mxu0 }
 0x28c   : > { %v2515_v1 = vadd.f32 %v2514_v3, %v2471_v34  ;;  %v2558_v44 = vpop.f32.mrf.mxu3  ;;  %v2430_v27 = vadd.f32 %v2429_v12, %v7216_v53  ;;  %v2473_v11 = vpop.f32.mrf.mxu1  ;;  %v5794_v53 = vld [vmem:[#allocation5 + $0x678] sm:$0xf] }
 0x28d   : > { %v5795_v30 = vor.u32 %v6413_v35, %v5794_v53  ;;  %v6070_v53 = vld [vmem:[#allocation5 + $0x8a0] sm:$0xf] }
 0x28e   : > { %v7503_v14 = vadd.f32 %v2558_v44, %v2515_v1  ;;  %v2474_v45 = vadd.f32 %v2473_v11, %v2430_v27  ;;  %2750 = vmatmul.bf16.vlgmr.msrb.gmra.mxu0 %v7274_v38  ;;  %v5974_v1 = vld [vmem:[#allocation5 + $0x7e0] sm:$0xf]  ;;  %v6458_v44 = vld [vmem:[#allocation5 + $0x7e8] sm:$0xf0] }
 0x28f   : > { %2794 = vmatmul.bf16.vlgmr.msrb.gmra.mxu1 %v7276_v39  ;;  %3733 = vmatpush.bf16.msra.mxu0 %v5795_v30  ;;  %v5975_v12 = vor.u32 %v6458_v44, %v5974_v1  ;;  %v5782_v30 = vld [vmem:[#allocation5 + $0x660] sm:$0xf] }
 0x290   : > { %2838 = vmatmul.bf16.vlgmr.msrb.gmra.mxu2 %v7278_v46  ;;  %v5783_v57 = vor.u32 %v6410_v54, %v5782_v30  ;;  %v5770_v54 = vld [vmem:[#allocation5 + $0x648] sm:$0xf] }
 0x291   : > { %2882 = vmatmul.bf16.vlgmr.msrb.gmra.mxu3 %v7280_v49  ;;  %3822 = vmatpush.bf16.msra.mxu2 %v5975_v12 }
 0x293   : > { %v2517_v27 = vpop.f32.mrf.mxu2  ;;  %v2431_v34 = vpop.f32.mrf.mxu0  ;;  %3734 = vmatpush.bf16.msra.mxu0 %v5783_v57  ;;  %v5866_v57 = vld [vmem:[#allocation5 + $0x708] sm:$0xf] }
 0x294   : > { %v2518_v38 = vadd.f32 %v2517_v27, %v2474_v45  ;;  %v2561_v17 = vpop.f32.mrf.mxu3  ;;  %v2432_v39 = vadd.f32 %v2431_v34, %v7218_v10  ;;  %v2475_v3 = vpop.f32.mrf.mxu1  ;;  %v6482_v10 = vld [vmem:[#allocation5 + $0x8a8] sm:$0xf0]  ;;  %v5878_v27 = vld [vmem:[#allocation5 + $0x720] sm:$0xf] }
 0x295   : > { %v6071_v7 = vor.u32 %v6482_v10, %v6070_v53  ;;  %v8164_v10 = vld [vmem:[#allocation20_spill] sm:$0xff] }
 0x296   : > { %v7510_v46 = vadd.f32 %v2561_v17, %v2518_v38  ;;  %v2476_v49 = vadd.f32 %v2475_v3, %v2432_v39  ;;  %v6434_v38 = vld [vmem:[#allocation5 + $0x728] sm:$0xf0] }
 0x297   : > { %v5879_v17 = vor.u32 %v6434_v38, %v5878_v27  ;;  %3866 = vmatpush.bf16.msra.mxu3 %v6071_v7  ;;  %v6407_v27 = vld [vmem:[#allocation5 + $0x650] sm:$0xf0] }
 0x299   : > { %3778 = vmatpush.bf16.msra.mxu1 %v5879_v17  ;;  %v5771_v17 = vor.u32 %v6407_v27, %v5770_v54 }
 0x29b   : > { %v2519_v11 = vpop.f32.mrf.mxu2  ;;  %v2575_v5 = vpop.f32.mrf.mxu0  ;;  %3735 = vmatpush.bf16.msra.mxu0 %v5771_v17 }
 0x29c   : > { %v2520_v15 = vadd.f32 %v2519_v11, %v2476_v49  ;;  %v2563_v48 = vpop.f32.mrf.mxu3  ;;  %v2576_v45 = vadd.f32 %v2575_v5, %v8161_v9  ;;  %v2619_v25 = vpop.f32.mrf.mxu1  ;;  %v8162_v49 = vld [vmem:[#allocation19_spill] sm:$0xff]  ;;  %v6479_v5 = vld [vmem:[#allocation5 + $0x890] sm:$0xf0] }
 0x29d   : > { %v5962_v11 = vld [vmem:[#allocation5 + $0x7c8] sm:$0xf] }
 0x29e   : > { %v7513_v8 = vadd.f32 %v2563_v48, %v2520_v15  ;;  %v2620_v35 = vadd.f32 %v2619_v25, %v2576_v45  ;;  %2755 = vmatmul.bf16.gmra.mxu0 %v7298_v23  ;;  %v6058_v15 = vld [vmem:[#allocation5 + $0x888] sm:$0xf] }
 0x29f   : > { %2799 = vmatmul.bf16.gmra.mxu1 %v7300_v13 }
 0x2a0   : > { %2843 = vmatmul.bf16.gmra.mxu2 %v7302_v56  ;;  %v6455_v56 = vld [vmem:[#allocation5 + $0x7d0] sm:$0xf0] }
 0x2a1   : > { %2887 = vmatmul.bf16.gmra.mxu3 %v7304_v58  ;;  %v5963_v48 = vor.u32 %v6455_v56, %v5962_v11  ;;  %v6059_v58 = vor.u32 %v6479_v5, %v6058_v15  ;;  %v5950_v15 = vld [vmem:[#allocation5 + $0x7b0] sm:$0xf] }
 0x2a3   : > { %v2663_v34 = vpop.f32.mrf.mxu2  ;;  %v2577_v23 = vpop.f32.mrf.mxu0  ;;  %3823 = vmatpush.bf16.msra.mxu2 %v5963_v48  ;;  %3867 = vmatpush.bf16.msra.mxu3 %v6059_v58  ;;  %v6452_v48 = vld [vmem:[#allocation5 + $0x7b8] sm:$0xf0]  ;;  %v5758_v58 = vld [vmem:[#allocation5 + $0x630] sm:$0xf] }
 0x2a4   : > { %v2664_v39 = vadd.f32 %v2663_v34, %v2620_v35  ;;  %v2707_v3 = vpop.f32.mrf.mxu3  ;;  %v2578_v1 = vadd.f32 %v2577_v23, %v8162_v49  ;;  %v2621_v44 = vpop.f32.mrf.mxu1  ;;  %v6431_v34 = vld [vmem:[#allocation5 + $0x710] sm:$0xf0]  ;;  %v5951_v5 = vor.u32 %v6452_v48, %v5950_v15  ;;  %v5938_v15 = vld [vmem:[#allocation5 + $0x798] sm:$0xf]  ;;  %v6449_v48 = vld [vmem:[#allocation5 + $0x7a0] sm:$0xf0] }
 0x2a6   : > { %v7520_v12 = vadd.f32 %v2707_v3, %v2664_v39  ;;  %v2622_v13 = vadd.f32 %v2621_v44, %v2578_v1  ;;  %v5867_v39 = vor.u32 %v6431_v34, %v5866_v57  ;;  %v8166_v44 = vld [vmem:[#allocation21_spill] sm:$0xff]  ;;  %v8168_v57 = vld [vmem:[#allocation22_spill] sm:$0xff] }
 0x2a7   : > { %3824 = vmatpush.bf16.msra.mxu2 %v5951_v5  ;;  %v5939_v5 = vor.u32 %v6449_v48, %v5938_v15 }
 0x2a8   : > { %8163 = vst [vmem:[#allocation18_spill] sm:$0xff] %v7520_v12  ;;  %3779 = vmatpush.bf16.msra.mxu1 %v5867_v39 }
 0x2ab   : > { %v2665_v9 = vpop.f32.mrf.mxu2  ;;  %v2580_v53 = vpop.f32.mrf.mxu0  ;;  %3825 = vmatpush.bf16.msra.mxu2 %v5939_v5 }
 0x2ac   : > { %v2666_v45 = vadd.f32 %v2665_v9, %v2622_v13  ;;  %v2709_v25 = vpop.f32.mrf.mxu3  ;;  %v2581_v35 = vadd.f32 %v2580_v53, %v8164_v10  ;;  %v2624_v7 = vpop.f32.mrf.mxu1  ;;  %v6404_v9 = vld [vmem:[#allocation5 + $0x638] sm:$0xf0] }
 0x2ad   : > { %v6428_v53 = vld [vmem:[#allocation5 + $0x6f8] sm:$0xf0] }
 0x2ae   : > { %v7523_v30 = vadd.f32 %v2709_v25, %v2666_v45  ;;  %v2625_v38 = vadd.f32 %v2624_v7, %v2581_v35  ;;  %2760 = vmatmul.bf16.gmra.mxu0 %v7322_v29  ;;  %v5759_v45 = vor.u32 %v6404_v9, %v5758_v58  ;;  %v5854_v25 = vld [vmem:[#allocation5 + $0x6f0] sm:$0xf]  ;;  %v5842_v9 = vld [vmem:[#allocation5 + $0x6d8] sm:$0xf] }
 0x2af   : > { %2804 = vmatmul.bf16.gmra.mxu1 %v7324_v61  ;;  %v6046_v61 = vld [vmem:[#allocation5 + $0x870] sm:$0xf]  ;;  %v5855_v10 = vor.u32 %v6428_v53, %v5854_v25 }
 0x2b0   : > { %8165 = vst [vmem:[#allocation19_spill] sm:$0xff] %v7523_v30  ;;  %2848 = vmatmul.bf16.gmra.mxu2 %v7326_v62  ;;  %v6476_v62 = vld [vmem:[#allocation5 + $0x878] sm:$0xf0]  ;;  %3736 = vmatpush.bf16.msra.mxu0 %v5759_v45  ;;  %v6465_v30 = vld [vmem:[#allocation5 + $0x820] sm:$0xf0] }
 0x2b1   : > { %2892 = vmatmul.bf16.gmra.mxu3 %v7328_v40  ;;  %v6047_v40 = vor.u32 %v6476_v62, %v6046_v61  ;;  %3780 = vmatpush.bf16.msra.mxu1 %v5855_v10  ;;  %v6473_v62 = vld [vmem:[#allocation5 + $0x860] sm:$0xf0] }
 0x2b3   : > { %v2668_v3 = vpop.f32.mrf.mxu2  ;;  %v2582_v1 = vpop.f32.mrf.mxu0  ;;  %3868 = vmatpush.bf16.msra.mxu3 %v6047_v40 }
 0x2b4   : > { %v2669_v23 = vadd.f32 %v2668_v3, %v2625_v38  ;;  %v2712_v49 = vpop.f32.mrf.mxu3  ;;  %v2583_v13 = vadd.f32 %v2582_v1, %v8166_v44  ;;  %v2626_v11 = vpop.f32.mrf.mxu1  ;;  %v8170_v44 = vld [vmem:[#allocation23_spill] sm:$0xff] }
 0x2b6   : > { %v7530_v56 = vadd.f32 %v2712_v49, %v2669_v23  ;;  %v2627_v29 = vadd.f32 %v2626_v11, %v2583_v13 }
 0x2b8   : > { %8167 = vst [vmem:[#allocation20_spill] sm:$0xff] %v7530_v56 }
 0x2bb   : > { %v2670_v35 = vpop.f32.mrf.mxu2  ;;  %v2585_v27 = vpop.f32.mrf.mxu0 }
 0x2bc   : > { %v2671_v7 = vadd.f32 %v2670_v35, %v2627_v29  ;;  %v2714_v54 = vpop.f32.mrf.mxu3  ;;  %v2586_v38 = vadd.f32 %v2585_v27, %v8168_v57  ;;  %v2629_v17 = vpop.f32.mrf.mxu1 }
 0x2be   : > { %v7533_v34 = vadd.f32 %v2714_v54, %v2671_v7  ;;  %v2630_v39 = vadd.f32 %v2629_v17, %v2586_v38  ;;  %2765 = vmatmul.bf16.gmra.mxu0 %v7346_v36  ;;  %v6034_v36 = vld [vmem:[#allocation5 + $0x858] sm:$0xf]  ;;  %v5926_v17 = vld [vmem:[#allocation5 + $0x780] sm:$0xf] }
 0x2bf   : > { %2809 = vmatmul.bf16.gmra.mxu1 %v7348_v32  ;;  %v5746_v32 = vld [vmem:[#allocation5 + $0x618] sm:$0xf]  ;;  %v6035_v58 = vor.u32 %v6473_v62, %v6034_v36  ;;  %v6398_v36 = vld [vmem:[#allocation5 + $0x608] sm:$0xf0] }
 0x2c0   : > { %8169 = vst [vmem:[#allocation21_spill] sm:$0xff] %v7533_v34  ;;  %2853 = vmatmul.bf16.gmra.mxu2 %v7350_v24  ;;  %v6401_v24 = vld [vmem:[#allocation5 + $0x620] sm:$0xf0]  ;;  %v8172_v7 = vld [vmem:[#allocation24_spill] sm:$0xff] }
 0x2c1   : > { %2897 = vmatmul.bf16.gmra.mxu3 %v7352_v60  ;;  %v6425_v60 = vld [vmem:[#allocation5 + $0x6e0] sm:$0xf0]  ;;  %v5747_v40 = vor.u32 %v6401_v24, %v5746_v32  ;;  %v6422_v32 = vld [vmem:[#allocation5 + $0x6c8] sm:$0xf0] }
 0x2c2   : > { %v5843_v45 = vor.u32 %v6425_v60, %v5842_v9  ;;  %3869 = vmatpush.bf16.msra.mxu3 %v6035_v58 }
 0x2c3   : > { %v2673_v3 = vpop.f32.mrf.mxu2  ;;  %v2587_v1 = vpop.f32.mrf.mxu0  ;;  %3737 = vmatpush.bf16.msra.mxu0 %v5747_v40 }
 0x2c4   : > { %v2674_v23 = vadd.f32 %v2673_v3, %v2630_v39  ;;  %v2717_v49 = vpop.f32.mrf.mxu3  ;;  %v2588_v13 = vadd.f32 %v2587_v1, %v8170_v44  ;;  %v2631_v11 = vpop.f32.mrf.mxu1  ;;  %3781 = vmatpush.bf16.msra.mxu1 %v5843_v45  ;;  %v6446_v39 = vld [vmem:[#allocation5 + $0x788] sm:$0xf0]  ;;  %v8176_v45 = vld [vmem:[#allocation26_spill] sm:$0xff] }
 0x2c5   : > { %v5927_v3 = vor.u32 %v6446_v39, %v5926_v17  ;;  %v6108_v17 = vld [vmem:[#allocation5 + $0x8f4] sm:$0xf0] }
 0x2c6   : > { %v7540_v29 = vadd.f32 %v2717_v49, %v2674_v23  ;;  %v2632_v61 = vadd.f32 %v2631_v11, %v2588_v13  ;;  %v8174_v13 = vld [vmem:[#allocation25_spill] sm:$0xff] }
 0x2c7   : > { %3826 = vmatpush.bf16.msra.mxu2 %v5927_v3 }
 0x2c8   : > { %8171 = vst [vmem:[#allocation22_spill] sm:$0xff] %v7540_v29 }
 0x2cb   : > { %v2675_v25 = vpop.f32.mrf.mxu2  ;;  %v2590_v35 = vpop.f32.mrf.mxu0 }
 0x2cc   : > { %v2676_v53 = vadd.f32 %v2675_v25, %v2632_v61  ;;  %v2719_v10 = vpop.f32.mrf.mxu3  ;;  %v2591_v54 = vadd.f32 %v2590_v35, %v8172_v7  ;;  %v2634_v27 = vpop.f32.mrf.mxu1  ;;  %v6470_v61 = vld [vmem:[#allocation5 + $0x848] sm:$0xf0] }
 0x2cd   : > { %v6466_v7 = vld [vmem:[#allocation5 + $0x82c] sm:$0xf] }
 0x2ce   : > { %v7543_v57 = vadd.f32 %v2719_v10, %v2676_v53  ;;  %v2635_v38 = vadd.f32 %v2634_v27, %v2591_v54  ;;  %2770 = vmatmul.bf16.gmra.mxu0 %v7370_v4  ;;  %v6022_v4 = vld [vmem:[#allocation5 + $0x840] sm:$0xf]  ;;  %v6012_v54 = vld [vmem:[#allocation5 + $0x834] sm:$0xf0]  ;;  %v6490_v27 = vld [vmem:[#allocation5 + $0x8ec] sm:$0xf] }
 0x2cf   : > { %2814 = vmatmul.bf16.gmra.mxu1 %v7372_v22  ;;  %v6023_v5 = vor.u32 %v6470_v61, %v6022_v4  ;;  %v6111_v3 = vor.u32 %v6490_v27, %v6108_v17  ;;  %v5916_v61 = vld [vmem:[#allocation5 + $0x774] sm:$0xf0]  ;;  %v6439_v27 = vld [vmem:[#allocation5 + $0x754] sm:$0xf]  ;;  %v5904_v17 = vld [vmem:[#allocation5 + $0x75c] sm:$0xf0] }
 0x2d0   : > { %8173 = vst [vmem:[#allocation23_spill] sm:$0xff] %v7543_v57  ;;  %2858 = vmatmul.bf16.gmra.mxu2 %v7374_v47  ;;  %v5734_v47 = vld [vmem:[#allocation5 + $0x600] sm:$0xf] }
 0x2d1   : > { %2902 = vmatmul.bf16.gmra.mxu3 %v7376_v19  ;;  %v5830_v19 = vld [vmem:[#allocation5 + $0x6c0] sm:$0xf]  ;;  %v5735_v62 = vor.u32 %v6398_v36, %v5734_v47 }
 0x2d2   : > { %3870 = vmatpush.bf16.msra.mxu3 %v6023_v5  ;;  %v5831_v58 = vor.u32 %v6422_v32, %v5830_v19 }
 0x2d3   : > { %v2678_v23 = vpop.f32.mrf.mxu2  ;;  %v2592_v44 = vpop.f32.mrf.mxu0  ;;  %3738 = vmatpush.bf16.msra.mxu0 %v5735_v62  ;;  %v8180_v62 = vld [vmem:[#allocation28_spill] sm:$0xff] }
 0x2d4   : > { %v2679_v49 = vadd.f32 %v2678_v23, %v2635_v38  ;;  %v2722_v1 = vpop.f32.mrf.mxu3  ;;  %v2593_v11 = vadd.f32 %v2592_v44, %v8174_v13  ;;  %v2636_v15 = vpop.f32.mrf.mxu1  ;;  %3782 = vmatpush.bf16.msra.mxu1 %v5831_v58  ;;  %v6015_v38 = vor.u32 %v6466_v7, %v6012_v54  ;;  %v8178_v44 = vld [vmem:[#allocation27_spill] sm:$0xff]  ;;  %v6415_v7 = vld [vmem:[#allocation5 + $0x694] sm:$0xf]  ;;  %v5808_v54 = vld [vmem:[#allocation5 + $0x69c] sm:$0xf0] }
 0x2d6   : > { %v7550_v48 = vadd.f32 %v2722_v1, %v2679_v49  ;;  %v2637_v22 = vadd.f32 %v2636_v15, %v2593_v11  ;;  %3995 = vmatpush.bf16.msrb.mxu2 %v6015_v38  ;;  %4039 = vmatpush.bf16.msrb.mxu3 %v6111_v3  ;;  %v5820_v11 = vld [vmem:[#allocation5 + $0x6b4] sm:$0xf0] }
 0x2d7   : > { %v8182_v3 = vld [vmem:[#allocation29_spill] sm:$0xff] }
 0x2d8   : > { %8175 = vst [vmem:[#allocation24_spill] sm:$0xff] %v7550_v48 }
 0x2db   : > { %v2680_v24 = vpop.f32.mrf.mxu2  ;;  %v2595_v40 = vpop.f32.mrf.mxu0 }
 0x2dc   : > { %v2681_v9 = vadd.f32 %v2680_v24, %v2637_v22  ;;  %v2724_v60 = vpop.f32.mrf.mxu3  ;;  %v2596_v25 = vadd.f32 %v2595_v40, %v8176_v45  ;;  %v2639_v53 = vpop.f32.mrf.mxu1  ;;  %v6000_v40 = vld [vmem:[#allocation5 + $0x81c] sm:$0xf0] }
 0x2de   : > { %v7553_v10 = vadd.f32 %v2724_v60, %v2681_v9  ;;  %v2640_v35 = vadd.f32 %v2639_v53, %v2596_v25  ;;  %2775 = vmatmul.bf16.gmra.mxu0 %v7394_v28  ;;  %v6463_v60 = vld [vmem:[#allocation5 + $0x814] sm:$0xf]  ;;  %v6096_v53 = vld [vmem:[#allocation5 + $0x8dc] sm:$0xf0] }
 0x2df   : > { %2819 = vmatmul.bf16.gmra.mxu1 %v7396_v20  ;;  %v6003_v45 = vor.u32 %v6463_v60, %v6000_v40  ;;  %v6487_v25 = vld [vmem:[#allocation5 + $0x8d4] sm:$0xf] }
 0x2e0   : > { %8177 = vst [vmem:[#allocation25_spill] sm:$0xff] %v7553_v10  ;;  %2863 = vmatmul.bf16.gmra.mxu2 %v7398_v0  ;;  %v6418_v0 = vld [vmem:[#allocation5 + $0x6ac] sm:$0xf]  ;;  %v8200_v10 = vld [vmem:[#allocation38_spill] sm:$0xff] }
 0x2e1   : > { %2907 = vmatmul.bf16.gmra.mxu3 %v7400_v41  ;;  %v6442_v41 = vld [vmem:[#allocation5 + $0x76c] sm:$0xf]  ;;  %v5823_v4 = vor.u32 %v6418_v0, %v5820_v11  ;;  %3996 = vmatpush.bf16.msrb.mxu2 %v6003_v45  ;;  %v6369_v0 = vld [vmem:[%s7018_s26 + $0x44] sm:$0xf]  ;;  %v5624_v11 = vld [vmem:[%s7018_s26 + $0x50] sm:$0xf0] }
 0x2e2   : > { %v5919_v22 = vor.u32 %v6442_v41, %v5916_v61  ;;  %v5630_v41 = vld [vmem:[%s7018_s26 + $0x48] sm:$0xf]  ;;  %v5632_v61 = vld [vmem:[%s7018_s26 + $0x58] sm:$0xf0] }
 0x2e3   : > { %v2683_v39 = vpop.f32.mrf.mxu2  ;;  %v2597_v1 = vpop.f32.mrf.mxu0  ;;  %3907 = vmatpush.bf16.msrb.mxu0 %v5823_v4  ;;  %v6370_v4 = vld [vmem:[%s7018_s26 + $0x4c] sm:$0xf] }
 0x2e4   : > { %v2684_v23 = vadd.f32 %v2683_v39, %v2640_v35  ;;  %v2727_v49 = vpop.f32.mrf.mxu3  ;;  %v2598_v13 = vadd.f32 %v2597_v1, %v8178_v44  ;;  %v2641_v28 = vpop.f32.mrf.mxu1  ;;  %3951 = vmatpush.bf16.msrb.mxu1 %v5919_v22  ;;  %v6099_v35 = vor.u32 %v6487_v25, %v6096_v53  ;;  %v5907_v39 = vor.u32 %v6439_v27, %v5904_v17  ;;  %v6460_v25 = vld [vmem:[#allocation5 + $0x7fc] sm:$0xf]  ;;  %v5988_v53 = vld [vmem:[#allocation5 + $0x804] sm:$0xf0] }
 0x2e5   : > { %v7587_v40 = vor.u32 %v6370_v4, %v5632_v61  ;;  %v6084_v27 = vld [vmem:[#allocation5 + $0x8c4] sm:$0xf0]  ;;  %v5976_v4 = vld [vmem:[#allocation5 + $0x7ec] sm:$0xf0]  ;;  %v5638_v61 = vld [vmem:[%s7018_s26 + $0x60] sm:$0xf] }
 0x2e6   : > { %v7560_v20 = vadd.f32 %v2727_v49, %v2684_v23  ;;  %v2642_v15 = vadd.f32 %v2641_v28, %v2598_v13  ;;  %4040 = vmatpush.bf16.msrb.mxu3 %v6099_v35  ;;  %v5622_v13 = vld [vmem:[%s7018_s26 + $0x40] sm:$0xf]  ;;  %v6371_v28 = vld [vmem:[%s7018_s26 + $0x4c] sm:$0xf0]  ;;  %v5796_v17 = vld [vmem:[#allocation5 + $0x684] sm:$0xf0] }
 0x2e8   : > { %8179 = vst [vmem:[#allocation26_spill] sm:$0xff] %v7560_v20  ;;  %3952 = vmatpush.bf16.msrb.mxu1 %v5907_v39  ;;  %v5892_v39 = vld [vmem:[#allocation5 + $0x744] sm:$0xf0] }
 0x2eb   : > { %v2685_v5 = vpop.f32.mrf.mxu2  ;;  %v2600_v19 = vpop.f32.mrf.mxu0 }
 0x2ec   : > { %v2686_v47 = vadd.f32 %v2685_v5, %v2642_v15  ;;  %v2729_v36 = vpop.f32.mrf.mxu3  ;;  %v2601_v32 = vadd.f32 %v2600_v19, %v8180_v62  ;;  %v2644_v58 = vpop.f32.mrf.mxu1  ;;  %v6372_v15 = vld [vmem:[%s7018_s26 + $0x54] sm:$0xf0]  ;;  %v7580_v5 = vor.u32 %v6371_v28, %v5622_v13  ;;  %v7582_v62 = vor.u32 %v6369_v0, %v5624_v11  ;;  %v8186_v13 = vld [vmem:[#allocation31_spill] sm:$0xff] }
 0x2ee   : > { %v7563_v24 = vadd.f32 %v2729_v36, %v2686_v47  ;;  %v2645_v9 = vadd.f32 %v2644_v58, %v2601_v32  ;;  %2780 = vmatmul.bf16.gmra.mxu0 %v7418_v55  ;;  %v5811_v55 = vor.u32 %v6415_v7, %v5808_v54  ;;  %v7584_v32 = vor.u32 %v6372_v15, %v5630_v41  ;;  %v8184_v58 = vld [vmem:[#allocation30_spill] sm:$0xff]  ;;  %v6484_v54 = vld [vmem:[#allocation5 + $0x8bc] sm:$0xf] }
 0x2ef   : > { %2824 = vmatmul.bf16.gmra.mxu1 %v7420_v37  ;;  %v5991_v7 = vor.u32 %v6460_v25, %v5988_v53  ;;  %v6457_v15 = vld [vmem:[#allocation5 + $0x7e4] sm:$0xf]  ;;  %v5648_v25 = vld [vmem:[%s7018_s26 + $0x78] sm:$0xf0] }
 0x2f0   : > { %8181 = vst [vmem:[#allocation27_spill] sm:$0xff] %v7563_v24  ;;  %2868 = vmatmul.bf16.gmra.mxu2 %v7422_v26  ;;  %3908 = vmatpush.bf16.msrb.mxu0 %v5811_v55  ;;  %v6412_v55 = vld [vmem:[#allocation5 + $0x67c] sm:$0xf] }
 0x2f1   : > { %2912 = vmatmul.bf16.gmra.mxu3 %v7424_v16  ;;  %3997 = vmatpush.bf16.msrb.mxu2 %v5991_v7  ;;  %v5696_v24 = vld [vmem:[%s7018_s26 + $0xd8] sm:$0xf0] }
 0x2f3   : > { %v2688_v38 = vpop.f32.mrf.mxu2  ;;  %v2602_v16 = vpop.f32.mrf.mxu0 }
 0x2f4   : > { %v2689_v37 = vadd.f32 %v2688_v38, %v2645_v9  ;;  %v2732_v26 = vpop.f32.mrf.mxu3  ;;  %v2603_v23 = vadd.f32 %v2602_v16, %v8182_v3  ;;  %v2646_v49 = vpop.f32.mrf.mxu1  ;;  %v6087_v38 = vor.u32 %v6484_v54, %v6084_v27  ;;  %v5799_v16 = vor.u32 %v6412_v55, %v5796_v17  ;;  %v8188_v17 = vld [vmem:[#allocation32_spill] sm:$0xff] }
 0x2f6   : > { %v7570_v1 = vadd.f32 %v2732_v26, %v2689_v37  ;;  %v2647_v44 = vadd.f32 %v2646_v49, %v2603_v23  ;;  %4041 = vmatpush.bf16.msrb.mxu3 %v6087_v38  ;;  %v6436_v37 = vld [vmem:[#allocation5 + $0x73c] sm:$0xf]  ;;  %3909 = vmatpush.bf16.msrb.mxu0 %v5799_v16 }
 0x2f8   : > { %8183 = vst [vmem:[#allocation28_spill] sm:$0xff] %v7570_v1 }
 0x2fb   : > { %v2690_v22 = vpop.f32.mrf.mxu2  ;;  %v2605_v19 = vpop.f32.mrf.mxu0 }
 0x2fc   : > { %v2691_v47 = vadd.f32 %v2690_v22, %v2647_v44  ;;  %v2734_v36 = vpop.f32.mrf.mxu3  ;;  %v2606_v9 = vadd.f32 %v2605_v19, %v8184_v58  ;;  %v2649_v60 = vpop.f32.mrf.mxu1  ;;  %v5895_v44 = vor.u32 %v6436_v37, %v5892_v39  ;;  %v6375_v22 = vld [vmem:[%s7018_s26 + $0x6c] sm:$0xf0]  ;;  %v5640_v19 = vld [vmem:[%s7018_s26 + $0x70] sm:$0xf0]  ;;  %v5646_v58 = vld [vmem:[%s7018_s26 + $0x68] sm:$0xf] }
 0x2fe   : > { %v7589_v45 = vadd.f32 %v2734_v36, %v2691_v47  ;;  %v2650_v35 = vadd.f32 %v2649_v60, %v2606_v9  ;;  %3739 = vmatmul.bf16.vlgmr.msra.gmra.mxu0 %v7580_v5  ;;  %3953 = vmatpush.bf16.msrb.mxu1 %v5895_v44  ;;  %v6373_v47 = vld [vmem:[%s7018_s26 + $0x64] sm:$0xf]  ;;  %v5979_v36 = vor.u32 %v6457_v15, %v5976_v4  ;;  %v6376_v9 = vld [vmem:[%s7018_s26 + $0x74] sm:$0xf0]  ;;  %v6374_v60 = vld [vmem:[%s7018_s26 + $0x6c] sm:$0xf] }
 0x2ff   : > { %3783 = vmatmul.bf16.vlgmr.msra.gmra.mxu1 %v7582_v62  ;;  %v7608_v38 = vor.u32 %v6373_v47, %v5640_v19  ;;  %v7610_v55 = vor.u32 %v6376_v9, %v5646_v58  ;;  %v7613_v16 = vor.u32 %v6374_v60, %v5648_v25  ;;  %v5880_v15 = vld [vmem:[#allocation5 + $0x72c] sm:$0xf0]  ;;  %v8190_v19 = vld [vmem:[#allocation33_spill] sm:$0xff] }
 0x300   : > { %8185 = vst [vmem:[#allocation29_spill] sm:$0xff] %v7589_v45  ;;  %3827 = vmatmul.bf16.vlgmr.msra.gmra.mxu2 %v7584_v32  ;;  %v5654_v25 = vld [vmem:[%s7018_s26 + $0x80] sm:$0xf] }
 0x301   : > { %3871 = vmatmul.bf16.vlgmr.msra.gmra.mxu3 %v7587_v40  ;;  %3998 = vmatpush.bf16.msrb.mxu2 %v5979_v36 }
 0x303   : > { %v2693_v26 = vpop.f32.mrf.mxu2  ;;  %v2607_v49 = vpop.f32.mrf.mxu0 }
 0x304   : > { %v2694_v3 = vadd.f32 %v2693_v26, %v2650_v35  ;;  %v2737_v23 = vpop.f32.mrf.mxu3  ;;  %v2608_v28 = vadd.f32 %v2607_v49, %v8186_v13  ;;  %v2651_v0 = vpop.f32.mrf.mxu1  ;;  %v7606_v35 = vor.u32 %v6375_v22, %v5638_v61  ;;  %v6409_v13 = vld [vmem:[#allocation5 + $0x664] sm:$0xf] }
 0x306   : > { %v7596_v11 = vadd.f32 %v2737_v23, %v2694_v3  ;;  %v2652_v41 = vadd.f32 %v2651_v0, %v2608_v28  ;;  %v6481_v3 = vld [vmem:[#allocation5 + $0x8a4] sm:$0xf]  ;;  %v6072_v23 = vld [vmem:[#allocation5 + $0x8ac] sm:$0xf0] }
 0x307   : > { %v6075_v44 = vor.u32 %v6481_v3, %v6072_v23  ;;  %v5784_v28 = vld [vmem:[#allocation5 + $0x66c] sm:$0xf0]  ;;  %v6433_v0 = vld [vmem:[#allocation5 + $0x724] sm:$0xf]  ;;  %v6060_v3 = vld [vmem:[#allocation5 + $0x894] sm:$0xf0] }
 0x308   : > { %8187 = vst [vmem:[#allocation30_spill] sm:$0xff] %v7596_v11  ;;  %v5883_v4 = vor.u32 %v6433_v0, %v5880_v15  ;;  %v5656_v23 = vld [vmem:[%s7018_s26 + $0x90] sm:$0xf0]  ;;  %v5664_v0 = vld [vmem:[%s7018_s26 + $0x98] sm:$0xf0] }
 0x309   : > { %4042 = vmatpush.bf16.msrb.mxu3 %v6075_v44  ;;  %v6380_v44 = vld [vmem:[%s7018_s26 + $0x94] sm:$0xf0] }
 0x30a   : > { %3954 = vmatpush.bf16.msrb.mxu1 %v5883_v4 }
 0x30b   : > { %v2695_v53 = vpop.f32.mrf.mxu2  ;;  %v2751_v27 = vpop.f32.mrf.mxu0 }
 0x30c   : > { %v2696_v7 = vadd.f32 %v2695_v53, %v2652_v41  ;;  %v2739_v54 = vpop.f32.mrf.mxu3  ;;  %v2752_v37 = vadd.f32 %v2751_v27, %v8188_v17  ;;  %v2795_v26 = vpop.f32.mrf.mxu1  ;;  %v5787_v41 = vor.u32 %v6409_v13, %v5784_v28  ;;  %v6478_v27 = vld [vmem:[#allocation5 + $0x88c] sm:$0xf]  ;;  %v6379_v17 = vld [vmem:[%s7018_s26 + $0x8c] sm:$0xf0] }
 0x30d   : > { %v6063_v13 = vor.u32 %v6478_v27, %v6060_v3  ;;  %v6378_v28 = vld [vmem:[%s7018_s26 + $0x8c] sm:$0xf]  ;;  %v7632_v15 = vor.u32 %v6379_v17, %v5654_v25  ;;  %v5868_v17 = vld [vmem:[#allocation5 + $0x714] sm:$0xf0] }
 0x30e   : > { %v7615_v39 = vadd.f32 %v2739_v54, %v2696_v7  ;;  %v2796_v49 = vadd.f32 %v2795_v26, %v2752_v37  ;;  %3744 = vmatmul.bf16.gmra.mxu0 %v7606_v35  ;;  %v6454_v7 = vld [vmem:[#allocation5 + $0x7cc] sm:$0xf]  ;;  %v5964_v54 = vld [vmem:[#allocation5 + $0x7d4] sm:$0xf0]  ;;  %v6377_v37 = vld [vmem:[%s7018_s26 + $0x84] sm:$0xf] }
 0x30f   : > { %3788 = vmatmul.bf16.gmra.mxu1 %v7608_v38  ;;  %3910 = vmatpush.bf16.msrb.mxu0 %v5787_v41  ;;  %v5967_v26 = vor.u32 %v6454_v7, %v5964_v54  ;;  %v7639_v7 = vor.u32 %v6378_v28, %v5664_v0  ;;  %v6406_v27 = vld [vmem:[#allocation5 + $0x64c] sm:$0xf] }
 0x310   : > { %8189 = vst [vmem:[#allocation31_spill] sm:$0xff] %v7615_v39  ;;  %3832 = vmatmul.bf16.gmra.mxu2 %v7610_v55  ;;  %4043 = vmatpush.bf16.msrb.mxu3 %v6063_v13  ;;  %v6430_v3 = vld [vmem:[#allocation5 + $0x70c] sm:$0xf] }
 0x311   : > { %3876 = vmatmul.bf16.gmra.mxu3 %v7613_v16  ;;  %3999 = vmatpush.bf16.msrb.mxu2 %v5967_v26  ;;  %v5772_v26 = vld [vmem:[#allocation5 + $0x654] sm:$0xf0]  ;;  %v8194_v28 = vld [vmem:[#allocation35_spill] sm:$0xff] }
 0x313   : > { %v2839_v61 = vpop.f32.mrf.mxu2  ;;  %v2753_v36 = vpop.f32.mrf.mxu0 }
 0x314   : > { %v2840_v22 = vadd.f32 %v2839_v61, %v2796_v49  ;;  %v2883_v47 = vpop.f32.mrf.mxu3  ;;  %v2754_v58 = vadd.f32 %v2753_v36, %v8190_v19  ;;  %v2797_v9 = vpop.f32.mrf.mxu1  ;;  %v5662_v49 = vld [vmem:[%s7018_s26 + $0x88] sm:$0xf] }
 0x315   : > { %v7636_v36 = vor.u32 %v6380_v44, %v5662_v49  ;;  %v8192_v19 = vld [vmem:[#allocation34_spill] sm:$0xff] }
 0x316   : > { %v7622_v60 = vadd.f32 %v2883_v47, %v2840_v22  ;;  %v2798_v53 = vadd.f32 %v2797_v9, %v2754_v58  ;;  %v7634_v47 = vor.u32 %v6377_v37, %v5656_v23  ;;  %v5871_v37 = vor.u32 %v6430_v3, %v5868_v17  ;;  %v5952_v3 = vld [vmem:[#allocation5 + $0x7bc] sm:$0xf0] }
 0x317   : > { %v6048_v17 = vld [vmem:[#allocation5 + $0x87c] sm:$0xf0] }
 0x318   : > { %8191 = vst [vmem:[#allocation32_spill] sm:$0xff] %v7622_v60  ;;  %3955 = vmatpush.bf16.msrb.mxu1 %v5871_v37  ;;  %v6403_v37 = vld [vmem:[#allocation5 + $0x634] sm:$0xf]  ;;  %v5680_v60 = vld [vmem:[%s7018_s26 + $0xb8] sm:$0xf0] }
 0x31b   : > { %v2841_v41 = vpop.f32.mrf.mxu2  ;;  %v2756_v22 = vpop.f32.mrf.mxu0 }
 0x31c   : > { %v2842_v4 = vadd.f32 %v2841_v41, %v2798_v53  ;;  %v2885_v61 = vpop.f32.mrf.mxu3  ;;  %v2757_v58 = vadd.f32 %v2756_v22, %v8192_v19  ;;  %v2800_v9 = vpop.f32.mrf.mxu1  ;;  %v5775_v53 = vor.u32 %v6406_v27, %v5772_v26  ;;  %v6383_v22 = vld [vmem:[%s7018_s26 + $0xac] sm:$0xf0]  ;;  %v5678_v27 = vld [vmem:[%s7018_s26 + $0xa8] sm:$0xf]  ;;  %v6451_v26 = vld [vmem:[#allocation5 + $0x7b4] sm:$0xf] }
 0x31e   : > { %v7641_v54 = vadd.f32 %v2885_v61, %v2842_v4  ;;  %v2801_v25 = vadd.f32 %v2800_v9, %v2757_v58  ;;  %3749 = vmatmul.bf16.gmra.mxu0 %v7632_v15  ;;  %v5670_v61 = vld [vmem:[%s7018_s26 + $0xa0] sm:$0xf]  ;;  %v6381_v58 = vld [vmem:[%s7018_s26 + $0xa4] sm:$0xf]  ;;  %v5672_v9 = vld [vmem:[%s7018_s26 + $0xb0] sm:$0xf0] }
 0x31f   : > { %3793 = vmatmul.bf16.gmra.mxu1 %v7634_v47  ;;  %3911 = vmatpush.bf16.msrb.mxu0 %v5775_v53  ;;  %v6475_v53 = vld [vmem:[#allocation5 + $0x874] sm:$0xf]  ;;  %v7658_v39 = vor.u32 %v6383_v22, %v5670_v61 }
 0x320   : > { %8193 = vst [vmem:[#allocation33_spill] sm:$0xff] %v7641_v54  ;;  %3837 = vmatmul.bf16.gmra.mxu2 %v7636_v36 }
 0x321   : > { %3881 = vmatmul.bf16.gmra.mxu3 %v7639_v7 }
 0x323   : > { %v2844_v23 = vpop.f32.mrf.mxu2  ;;  %v2758_v13 = vpop.f32.mrf.mxu0 }
 0x324   : > { %v2845_v49 = vadd.f32 %v2844_v23, %v2801_v25  ;;  %v2888_v44 = vpop.f32.mrf.mxu3  ;;  %v2759_v0 = vadd.f32 %v2758_v13, %v8194_v28  ;;  %v2802_v41 = vpop.f32.mrf.mxu1  ;;  %v5955_v25 = vor.u32 %v6451_v26, %v5952_v3  ;;  %v5760_v23 = vld [vmem:[#allocation5 + $0x63c] sm:$0xf0]  ;;  %v6384_v13 = vld [vmem:[%s7018_s26 + $0xb4] sm:$0xf0]  ;;  %v6051_v28 = vor.u32 %v6475_v53, %v6048_v17 }
 0x325   : > { %v5763_v54 = vor.u32 %v6403_v37, %v5760_v23  ;;  %v7660_v3 = vor.u32 %v6381_v58, %v5672_v9  ;;  %v7662_v1 = vor.u32 %v6384_v13, %v5678_v27  ;;  %v8196_v53 = vld [vmem:[#allocation36_spill] sm:$0xff]  ;;  %v8198_v9 = vld [vmem:[#allocation37_spill] sm:$0xff] }
 0x326   : > { %v7648_v4 = vadd.f32 %v2888_v44, %v2845_v49  ;;  %v2803_v19 = vadd.f32 %v2802_v41, %v2759_v0  ;;  %v6427_v49 = vld [vmem:[#allocation5 + $0x6f4] sm:$0xf]  ;;  %v5856_v44 = vld [vmem:[#allocation5 + $0x6fc] sm:$0xf0]  ;;  %4000 = vmatpush.bf16.msrb.mxu2 %v5955_v25  ;;  %4044 = vmatpush.bf16.msrb.mxu3 %v6051_v28  ;;  %v6448_v13 = vld [vmem:[#allocation5 + $0x79c] sm:$0xf] }
 0x327   : > { %v5859_v0 = vor.u32 %v6427_v49, %v5856_v44  ;;  %3912 = vmatpush.bf16.msrb.mxu0 %v5763_v54  ;;  %v5940_v28 = vld [vmem:[#allocation5 + $0x7a4] sm:$0xf0]  ;;  %v6385_v44 = vld [vmem:[%s7018_s26 + $0xc4] sm:$0xf] }
 0x328   : > { %8195 = vst [vmem:[#allocation34_spill] sm:$0xff] %v7648_v4  ;;  %v6382_v4 = vld [vmem:[%s7018_s26 + $0xac] sm:$0xf] }
 0x329   : > { %3956 = vmatpush.bf16.msrb.mxu1 %v5859_v0  ;;  %v7665_v25 = vor.u32 %v6382_v4, %v5680_v60  ;;  %v6387_v4 = vld [vmem:[%s7018_s26 + $0xcc] sm:$0xf0]  ;;  %v5943_v0 = vor.u32 %v6448_v13, %v5940_v28 }
 0x32b   : > { %v2846_v41 = vpop.f32.mrf.mxu2  ;;  %v2761_v26 = vpop.f32.mrf.mxu0  ;;  %4001 = vmatpush.bf16.msrb.mxu2 %v5943_v0 }
 0x32c   : > { %v2847_v11 = vadd.f32 %v2846_v41, %v2803_v19  ;;  %v2890_v45 = vpop.f32.mrf.mxu3  ;;  %v2762_v17 = vadd.f32 %v2761_v26, %v8196_v53  ;;  %v2805_v37 = vpop.f32.mrf.mxu1  ;;  %v6472_v41 = vld [vmem:[#allocation5 + $0x85c] sm:$0xf]  ;;  %v6036_v26 = vld [vmem:[#allocation5 + $0x864] sm:$0xf0] }
 0x32d   : > { %v6400_v53 = vld [vmem:[#allocation5 + $0x61c] sm:$0xf] }
 0x32e   : > { %v7667_v23 = vadd.f32 %v2890_v45, %v2847_v11  ;;  %v2806_v61 = vadd.f32 %v2805_v37, %v2762_v17  ;;  %3754 = vmatmul.bf16.gmra.mxu0 %v7658_v39  ;;  %v5686_v11 = vld [vmem:[%s7018_s26 + $0xc0] sm:$0xf]  ;;  %v6039_v17 = vor.u32 %v6472_v41, %v6036_v26  ;;  %v5748_v37 = vld [vmem:[#allocation5 + $0x624] sm:$0xf0] }
 0x32f   : > { %3798 = vmatmul.bf16.gmra.mxu1 %v7660_v3 }
 0x330   : > { %8197 = vst [vmem:[#allocation35_spill] sm:$0xff] %v7667_v23  ;;  %3842 = vmatmul.bf16.gmra.mxu2 %v7662_v1  ;;  %v6386_v23 = vld [vmem:[%s7018_s26 + $0xcc] sm:$0xf]  ;;  %4045 = vmatpush.bf16.msrb.mxu3 %v6039_v17 }
 0x331   : > { %3886 = vmatmul.bf16.gmra.mxu3 %v7665_v25 }
 0x333   : > { %v2849_v54 = vpop.f32.mrf.mxu2  ;;  %v2763_v58 = vpop.f32.mrf.mxu0 }
 0x334   : > { %v2850_v22 = vadd.f32 %v2849_v54, %v2806_v61  ;;  %v2893_v19 = vpop.f32.mrf.mxu3  ;;  %v2764_v27 = vadd.f32 %v2763_v58, %v8198_v9  ;;  %v2807_v60 = vpop.f32.mrf.mxu1  ;;  %v6424_v61 = vld [vmem:[#allocation5 + $0x6dc] sm:$0xf]  ;;  %v5844_v54 = vld [vmem:[#allocation5 + $0x6e4] sm:$0xf0]  ;;  %v6388_v58 = vld [vmem:[%s7018_s26 + $0xd4] sm:$0xf0]  ;;  %v5751_v9 = vor.u32 %v6400_v53, %v5748_v37  ;;  %v7691_v53 = vor.u32 %v6386_v23, %v5696_v24 }
 0x336   : > { %v7674_v45 = vadd.f32 %v2893_v19, %v2850_v22  ;;  %v2808_v49 = vadd.f32 %v2807_v60, %v2764_v27  ;;  %v5688_v22 = vld [vmem:[%s7018_s26 + $0xd0] sm:$0xf0]  ;;  %v5694_v19 = vld [vmem:[%s7018_s26 + $0xc8] sm:$0xf]  ;;  %v7684_v60 = vor.u32 %v6387_v4, %v5686_v11  ;;  %3913 = vmatpush.bf16.msrb.mxu0 %v5751_v9  ;;  %v5928_v11 = vld [vmem:[#allocation5 + $0x78c] sm:$0xf0] }
 0x337   : > { %v7686_v26 = vor.u32 %v6385_v44, %v5688_v22  ;;  %v7688_v20 = vor.u32 %v6388_v58, %v5694_v19  ;;  %v5702_v22 = vld [vmem:[%s7018_s26 + $0xe0] sm:$0xf]  ;;  %v6469_v19 = vld [vmem:[#allocation5 + $0x844] sm:$0xf]  ;;  %v6024_v58 = vld [vmem:[#allocation5 + $0x84c] sm:$0xf0] }
 0x338   : > { %8199 = vst [vmem:[#allocation36_spill] sm:$0xff] %v7674_v45  ;;  %v5847_v45 = vor.u32 %v6424_v61, %v5844_v54 }
 0x33a   : > { %3957 = vmatpush.bf16.msrb.mxu1 %v5847_v45  ;;  %v6445_v45 = vld [vmem:[#allocation5 + $0x784] sm:$0xf] }
 0x33b   : > { %v2851_v27 = vpop.f32.mrf.mxu2  ;;  %v2766_v41 = vpop.f32.mrf.mxu0  ;;  %v5931_v4 = vor.u32 %v6445_v45, %v5928_v11  ;;  %v5832_v11 = vld [vmem:[#allocation5 + $0x6cc] sm:$0xf0] }
 0x33c   : > { %v2852_v13 = vadd.f32 %v2851_v27, %v2808_v49  ;;  %v2895_v28 = vpop.f32.mrf.mxu3  ;;  %v2767_v48 = vadd.f32 %v2766_v41, %v8200_v10  ;;  %v2810_v0 = vpop.f32.mrf.mxu1  ;;  %v6027_v27 = vor.u32 %v6469_v19, %v6024_v58  ;;  %v6421_v41 = vld [vmem:[#allocation5 + $0x6c4] sm:$0xf] }
 0x33d   : > { %4002 = vmatpush.bf16.msrb.mxu2 %v5931_v4  ;;  %v5704_v4 = vld [vmem:[%s7018_s26 + $0xf0] sm:$0xf0] }
 0x33e   : > { %v7693_v37 = vadd.f32 %v2895_v28, %v2852_v13  ;;  %v2811_v17 = vadd.f32 %v2810_v0, %v2767_v48  ;;  %3759 = vmatmul.bf16.gmra.mxu0 %v7684_v60  ;;  %v8202_v48 = vld [vmem:[#allocation39_spill] sm:$0xff]  ;;  %v6397_v13 = vld [vmem:[#allocation5 + $0x604] sm:$0xf]  ;;  %4046 = vmatpush.bf16.msrb.mxu3 %v6027_v27 }
 0x33f   : > { %3803 = vmatmul.bf16.gmra.mxu1 %v7686_v26  ;;  %v5736_v28 = vld [vmem:[#allocation5 + $0x60c] sm:$0xf0] }
 0x340   : > { %8201 = vst [vmem:[#allocation37_spill] sm:$0xff] %v7693_v37  ;;  %3847 = vmatmul.bf16.gmra.mxu2 %v7688_v20  ;;  %v6391_v0 = vld [vmem:[%s7018_s26 + $0xec] sm:$0xf0]  ;;  %v5739_v45 = vor.u32 %v6397_v13, %v5736_v28 }
 0x341   : > { %3891 = vmatmul.bf16.gmra.mxu3 %v7691_v53  ;;  %v7710_v37 = vor.u32 %v6391_v0, %v5702_v22  ;;  %v8204_v13 = vld [vmem:[#allocation40_spill] sm:$0xff]  ;;  %v6468_v22 = vld [vmem:[#allocation5 + $0x838] sm:$0xf0] }
 0x342   : > { %3914 = vmatpush.bf16.msrb.mxu0 %v5739_v45 }
 0x343   : > { %v2854_v49 = vpop.f32.mrf.mxu2  ;;  %v2768_v23 = vpop.f32.mrf.mxu0 }
 0x344   : > { %v2855_v10 = vadd.f32 %v2854_v49, %v2811_v17  ;;  %v2898_v24 = vpop.f32.mrf.mxu3  ;;  %v2769_v44 = vadd.f32 %v2768_v23, %v8202_v48  ;;  %v2812_v61 = vpop.f32.mrf.mxu1  ;;  %v6389_v17 = vld [vmem:[%s7018_s26 + $0xe4] sm:$0xf]  ;;  %v5710_v49 = vld [vmem:[%s7018_s26 + $0xe8] sm:$0xf]  ;;  %v6392_v23 = vld [vmem:[%s7018_s26 + $0xf4] sm:$0xf0] }
 0x345   : > { %v5712_v48 = vld [vmem:[%s7018_s26 + $0xf8] sm:$0xf0]  ;;  %v7712_v58 = vor.u32 %v6389_v17, %v5704_v4  ;;  %v7714_v57 = vor.u32 %v6392_v23, %v5710_v49 }
 0x346   : > { %v7700_v54 = vadd.f32 %v2898_v24, %v2855_v10  ;;  %v2813_v9 = vadd.f32 %v2812_v61, %v2769_v44  ;;  %v5835_v10 = vor.u32 %v6421_v41, %v5832_v11  ;;  %v6390_v24 = vld [vmem:[%s7018_s26 + $0xec] sm:$0xf]  ;;  %v6492_v17 = vld [vmem:[#allocation5 + $0x8f8] sm:$0xf0] }
 0x347   : > { %v7717_v34 = vor.u32 %v6390_v24, %v5712_v48  ;;  %v8206_v23 = vld [vmem:[#allocation41_spill] sm:$0xff] }
 0x348   : > { %8203 = vst [vmem:[#allocation38_spill] sm:$0xff] %v7700_v54  ;;  %3958 = vmatpush.bf16.msrb.mxu1 %v5835_v10 }
 0x34b   : > { %v2856_v54 = vpop.f32.mrf.mxu2  ;;  %v2771_v19 = vpop.f32.mrf.mxu0 }
 0x34c   : > { %v2857_v44 = vadd.f32 %v2856_v54, %v2813_v9  ;;  %v2900_v61 = vpop.f32.mrf.mxu3  ;;  %v2772_v28 = vadd.f32 %v2771_v19, %v8204_v13  ;;  %v2815_v29 = vpop.f32.mrf.mxu1  ;;  %v6018_v54 = vld [vmem:[#allocation5 + $0x830] sm:$0xf] }
 0x34d   : > { %v6114_v9 = vld [vmem:[#allocation5 + $0x8f0] sm:$0xf]  ;;  %v6019_v0 = vor.u32 %v6468_v22, %v6018_v54  ;;  %v5718_v54 = vld [vmem:[%s7018_s26 + $0x100] sm:$0xf] }
 0x34e   : > { %v7719_v27 = vadd.f32 %v2900_v61, %v2857_v44  ;;  %v2816_v41 = vadd.f32 %v2815_v29, %v2772_v28  ;;  %3764 = vmatmul.bf16.gmra.mxu0 %v7710_v37  ;;  %v6115_v11 = vor.u32 %v6492_v17, %v6114_v9  ;;  %v5826_v44 = vld [vmem:[#allocation5 + $0x6b0] sm:$0xf]  ;;  %v6420_v61 = vld [vmem:[#allocation5 + $0x6b8] sm:$0xf0]  ;;  %v6393_v9 = vld [vmem:[%s7018_s26 + $0x104] sm:$0xf] }
 0x34f   : > { %3808 = vmatmul.bf16.gmra.mxu1 %v7712_v58  ;;  %4171 = vmatpush.bf16.msra.mxu2 %v6019_v0  ;;  %v5922_v19 = vld [vmem:[#allocation5 + $0x770] sm:$0xf]  ;;  %v5827_v28 = vor.u32 %v6420_v61, %v5826_v44  ;;  %v5720_v17 = vld [vmem:[%s7018_s26 + $0x110] sm:$0xf0] }
 0x350   : > { %8205 = vst [vmem:[#allocation39_spill] sm:$0xff] %v7719_v27  ;;  %3852 = vmatmul.bf16.gmra.mxu2 %v7714_v57  ;;  %4215 = vmatpush.bf16.msra.mxu3 %v6115_v11  ;;  %v6395_v22 = vld [vmem:[%s7018_s26 + $0x10c] sm:$0xf0]  ;;  %v5728_v11 = vld [vmem:[%s7018_s26 + $0x118] sm:$0xf0] }
 0x351   : > { %3896 = vmatmul.bf16.gmra.mxu3 %v7717_v34  ;;  %4083 = vmatpush.bf16.msra.mxu0 %v5827_v28  ;;  %v6006_v28 = vld [vmem:[#allocation5 + $0x818] sm:$0xf] }
 0x353   : > { %v2859_v45 = vpop.f32.mrf.mxu2  ;;  %v2773_v49 = vpop.f32.mrf.mxu0 }
 0x354   : > { %v2860_v4 = vadd.f32 %v2859_v45, %v2816_v41  ;;  %v2903_v29 = vpop.f32.mrf.mxu3  ;;  %v2774_v10 = vadd.f32 %v2773_v49, %v8206_v23  ;;  %v2817_v24 = vpop.f32.mrf.mxu1  ;;  %v6444_v41 = vld [vmem:[#allocation5 + $0x778] sm:$0xf0]  ;;  %v5726_v45 = vld [vmem:[%s7018_s26 + $0x108] sm:$0xf]  ;;  %v6396_v49 = vld [vmem:[%s7018_s26 + $0x114] sm:$0xf0] }
 0x355   : > { %v5923_v0 = vor.u32 %v6444_v41, %v5922_v19  ;;  %v6394_v23 = vld [vmem:[%s7018_s26 + $0x10c] sm:$0xf] }
 0x356   : > { %v7726_v48 = vadd.f32 %v2903_v29, %v2860_v4  ;;  %v2818_v13 = vadd.f32 %v2817_v24, %v2774_v10  ;;  %v7736_v29 = vor.u32 %v6395_v22, %v5718_v54  ;;  %v7738_v10 = vor.u32 %v6393_v9, %v5720_v17  ;;  %v6417_v9 = vld [vmem:[#allocation5 + $0x6a0] sm:$0xf0] }
 0x357   : > { %4127 = vmatpush.bf16.msra.mxu1 %v5923_v0  ;;  %v7740_v24 = vor.u32 %v6396_v49, %v5726_v45  ;;  %v7743_v19 = vor.u32 %v6394_v23, %v5728_v11  ;;  %v6007_v54 = vor.u32 %v6465_v30, %v6006_v28 }
 0x358   : > { %8207 = vst [vmem:[#allocation40_spill] sm:$0xff] %v7726_v48 }
 0x359   : > { %4172 = vmatpush.bf16.msra.mxu2 %v6007_v54 }
 0x35b   : > { %v2861_v4 = vpop.f32.mrf.mxu2  ;;  %v2776_v56 = vpop.f32.mrf.mxu0 }
 0x35c   : > { %v2862_v48 = vadd.f32 %v2861_v4, %v2818_v13  ;;  %v2905_v27 = vpop.f32.mrf.mxu3  ;;  %v2777_v44 = vadd.f32 %v2776_v56, %v7432_v59  ;;  %v2820_v61 = vpop.f32.mrf.mxu1  ;;  %v6102_v13 = vld [vmem:[#allocation5 + $0x8d8] sm:$0xf]  ;;  %v6489_v59 = vld [vmem:[#allocation5 + $0x8e0] sm:$0xf0] }
 0x35d   : > { %v5814_v56 = vld [vmem:[#allocation5 + $0x698] sm:$0xf]  ;;  %v6103_v22 = vor.u32 %v6489_v59, %v6102_v13 }
 0x35e   : > { %v7745_v41 = vadd.f32 %v2905_v27, %v2862_v48  ;;  %v2821_v0 = vadd.f32 %v2820_v61, %v2777_v44  ;;  %3769 = vmatmul.bf16.gmra.mxu0 %v7736_v29  ;;  %v5910_v27 = vld [vmem:[#allocation5 + $0x758] sm:$0xf]  ;;  %v6441_v48 = vld [vmem:[#allocation5 + $0x760] sm:$0xf0]  ;;  %v5815_v45 = vor.u32 %v6417_v9, %v5814_v56 }
 0x35f   : > { %3813 = vmatmul.bf16.gmra.mxu1 %v7738_v10  ;;  %v5911_v49 = vor.u32 %v6441_v48, %v5910_v27  ;;  %4216 = vmatpush.bf16.msra.mxu3 %v6103_v22  ;;  %v6462_v22 = vld [vmem:[#allocation5 + $0x808] sm:$0xf0]  ;;  %v6090_v27 = vld [vmem:[#allocation5 + $0x8c0] sm:$0xf] }
 0x360   : > { %8208 = vst [vmem:[#allocation41_spill] sm:$0xff] %v7745_v41  ;;  %3857 = vmatmul.bf16.gmra.mxu2 %v7740_v24  ;;  %4084 = vmatpush.bf16.msra.mxu0 %v5815_v45  ;;  %v5802_v45 = vld [vmem:[#allocation5 + $0x680] sm:$0xf] }
 0x361   : > { %3901 = vmatmul.bf16.gmra.mxu3 %v7743_v19  ;;  %4128 = vmatpush.bf16.msra.mxu1 %v5911_v49  ;;  %v6414_v49 = vld [vmem:[#allocation5 + $0x688] sm:$0xf0] }
 0x363   : > { %v2864_v17 = vpop.f32.mrf.mxu2  ;;  %v2778_v30 = vpop.f32.mrf.mxu0 }
 0x364   : > { %v2865_v23 = vadd.f32 %v2864_v17, %v2821_v0  ;;  %v2908_v11 = vpop.f32.mrf.mxu3  ;;  %v2779_v4 = vadd.f32 %v2778_v30, %v7434_v52  ;;  %v2822_v44 = vpop.f32.mrf.mxu1  ;;  %v5994_v52 = vld [vmem:[#allocation5 + $0x800] sm:$0xf]  ;;  %v6486_v17 = vld [vmem:[#allocation5 + $0x8c8] sm:$0xf0] }
 0x365   : > { %v5995_v48 = vor.u32 %v6462_v22, %v5994_v52  ;;  %v5982_v22 = vld [vmem:[#allocation5 + $0x7e8] sm:$0xf] }
 0x366   : > { %v7752_v61 = vadd.f32 %v2908_v11, %v2865_v23  ;;  %v2823_v28 = vadd.f32 %v2822_v44, %v2779_v4  ;;  %v5898_v23 = vld [vmem:[#allocation5 + $0x740] sm:$0xf]  ;;  %v6438_v11 = vld [vmem:[#allocation5 + $0x748] sm:$0xf0] }
 0x367   : > { %4173 = vmatpush.bf16.msra.mxu2 %v5995_v48  ;;  %v5899_v30 = vor.u32 %v6438_v11, %v5898_v23 }
 0x369   : > { %4129 = vmatpush.bf16.msra.mxu1 %v5899_v30  ;;  %v5790_v30 = vld [vmem:[#allocation5 + $0x668] sm:$0xf] }
 0x36b   : > { %v2866_v54 = vpop.f32.mrf.mxu2  ;;  %v2781_v41 = vpop.f32.mrf.mxu0 }
 0x36c   : > { %v2867_v13 = vadd.f32 %v2866_v54, %v2823_v28  ;;  %v2910_v59 = vpop.f32.mrf.mxu3  ;;  %v2782_v12 = vadd.f32 %v2781_v41, %v7440_v21  ;;  %v2825_v56 = vpop.f32.mrf.mxu1  ;;  %v6091_v21 = vor.u32 %v6486_v17, %v6090_v27  ;;  %v5803_v41 = vor.u32 %v6414_v49, %v5802_v45  ;;  %v8209_v54 = vld [vmem:[#allocation42_spill] sm:$0xff]  ;;  %v6459_v27 = vld [vmem:[#allocation5 + $0x7f0] sm:$0xf0] }
 0x36d   : > { %v5983_v17 = vor.u32 %v6459_v27, %v5982_v22 }
 0x36e   : > { %v7755_v9 = vadd.f32 %v2910_v59, %v2867_v13  ;;  %v2826_v0 = vadd.f32 %v2825_v56, %v2782_v12  ;;  %3915 = vmatmul.bf16.vlgmr.msrb.gmra.mxu0 %v7580_v5  ;;  %4217 = vmatpush.bf16.msra.mxu3 %v6091_v21 }
 0x36f   : > { %3959 = vmatmul.bf16.vlgmr.msrb.gmra.mxu1 %v7582_v62  ;;  %4085 = vmatpush.bf16.msra.mxu0 %v5803_v41  ;;  %v6078_v41 = vld [vmem:[#allocation5 + $0x8a8] sm:$0xf] }
 0x370   : > { %4003 = vmatmul.bf16.vlgmr.msrb.gmra.mxu2 %v7584_v32 }
 0x371   : > { %4047 = vmatmul.bf16.vlgmr.msrb.gmra.mxu3 %v7587_v40  ;;  %4174 = vmatpush.bf16.msra.mxu2 %v5983_v17 }
 0x373   : > { %v2869_v12 = vpop.f32.mrf.mxu2  ;;  %v2783_v28 = vpop.f32.mrf.mxu0 }
 0x374   : > { %v2870_v4 = vadd.f32 %v2869_v12, %v2826_v0  ;;  %v2913_v44 = vpop.f32.mrf.mxu3  ;;  %v2784_v13 = vadd.f32 %v2783_v28, %v8209_v54  ;;  %v2827_v59 = vpop.f32.mrf.mxu1  ;;  %v6483_v12 = vld [vmem:[#allocation5 + $0x8b0] sm:$0xf0]  ;;  %v5886_v28 = vld [vmem:[#allocation5 + $0x728] sm:$0xf] }
 0x375   : > { %v6435_v54 = vld [vmem:[#allocation5 + $0x730] sm:$0xf0] }
 0x376   : > { %v7762_v56 = vadd.f32 %v2913_v44, %v2870_v4  ;;  %v2828_v52 = vadd.f32 %v2827_v59, %v2784_v13  ;;  %v6079_v4 = vor.u32 %v6483_v12, %v6078_v41  ;;  %v6411_v44 = vld [vmem:[#allocation5 + $0x670] sm:$0xf0]  ;;  %v5887_v59 = vor.u32 %v6435_v54, %v5886_v28  ;;  %v6456_v41 = vld [vmem:[#allocation5 + $0x7d8] sm:$0xf0]  ;;  %v6066_v12 = vld [vmem:[#allocation5 + $0x890] sm:$0xf] }
 0x377   : > { %v5791_v13 = vor.u32 %v6411_v44, %v5790_v30 }
 0x378   : > { %8210 = vst [vmem:[#allocation42_spill] sm:$0xff] %v7762_v56  ;;  %4218 = vmatpush.bf16.msra.mxu3 %v6079_v4  ;;  %4130 = vmatpush.bf16.msra.mxu1 %v5887_v59  ;;  %v6480_v56 = vld [vmem:[#allocation5 + $0x898] sm:$0xf0] }
 0x379   : > { %4086 = vmatpush.bf16.msra.mxu0 %v5791_v13  ;;  %v6067_v30 = vor.u32 %v6480_v56, %v6066_v12  ;;  %v6408_v56 = vld [vmem:[#allocation5 + $0x658] sm:$0xf0] }
 0x37b   : > { %v2871_v45 = vpop.f32.mrf.mxu2  ;;  %v3740_v23 = vpop.f32.mrf.mxu0 }
 0x37c   : > { %v2872_v49 = vadd.f32 %v2871_v45, %v2828_v52  ;;  %v2915_v48 = vpop.f32.mrf.mxu3  ;;  %v3784_v0 = vpop.f32.mrf.mxu1  ;;  %4219 = vmatpush.bf16.msra.mxu3 %v6067_v30 }
 0x37d   : > { %v3785_v21 = vadd.f32 %v3784_v0, %v3740_v23  ;;  %v5970_v0 = vld [vmem:[#allocation5 + $0x7d0] sm:$0xf] }
 0x37e   : > { %v7764_v11 = vadd.f32 %v2915_v48, %v2872_v49  ;;  %3920 = vmatmul.bf16.gmra.mxu0 %v7606_v35 }
 0x37f   : > { %3964 = vmatmul.bf16.gmra.mxu1 %v7608_v38 }
 0x380   : > { %8211 = vst [vmem:[#allocation44_spill] sm:$0xff] %v7764_v11  ;;  %4008 = vmatmul.bf16.gmra.mxu2 %v7610_v55  ;;  %v5971_v11 = vor.u32 %v6456_v41, %v5970_v0 }
 0x381   : > { %4052 = vmatmul.bf16.gmra.mxu3 %v7613_v16 }
 0x382   : > { %4175 = vmatpush.bf16.msra.mxu2 %v5971_v11 }
 0x383   : > { %v3828_v52 = vpop.f32.mrf.mxu2  ;;  %v3742_v17 = vpop.f32.mrf.mxu0 }
 0x384   : > { %v3829_v22 = vadd.f32 %v3828_v52, %v3785_v21  ;;  %v3872_v27 = vpop.f32.mrf.mxu3  ;;  %v3786_v45 = vpop.f32.mrf.mxu1  ;;  %v5778_v52 = vld [vmem:[#allocation5 + $0x650] sm:$0xf] }
 0x385   : > { %v3787_v48 = vadd.f32 %v3786_v45, %v3742_v17  ;;  %v5779_v11 = vor.u32 %v6408_v56, %v5778_v52  ;;  %v6405_v52 = vld [vmem:[#allocation5 + $0x640] sm:$0xf0] }
 0x386   : > { %v3873_v49 = vadd.f32 %v3872_v27, %v3829_v22  ;;  %v5874_v22 = vld [vmem:[#allocation5 + $0x710] sm:$0xf]  ;;  %v6432_v27 = vld [vmem:[#allocation5 + $0x718] sm:$0xf0] }
 0x387   : > { %v5875_v17 = vor.u32 %v6432_v27, %v5874_v22  ;;  %4087 = vmatpush.bf16.msra.mxu0 %v5779_v11  ;;  %v5862_v11 = vld [vmem:[#allocation5 + $0x6f8] sm:$0xf] }
 0x388   : > { %v7771_v23 = vadd.f32 %v3873_v49, %v7450_v50 }
 0x389   : > { %4131 = vmatpush.bf16.msra.mxu1 %v5875_v17 }
 0x38b   : > { %v3830_v44 = vpop.f32.mrf.mxu2  ;;  %v3745_v28 = vpop.f32.mrf.mxu0 }
 0x38c   : > { %v3831_v4 = vadd.f32 %v3830_v44, %v3787_v48  ;;  %v3874_v21 = vpop.f32.mrf.mxu3  ;;  %v3789_v54 = vpop.f32.mrf.mxu1  ;;  %v5958_v44 = vld [vmem:[#allocation5 + $0x7b8] sm:$0xf] }
 0x38d   : > { %v3790_v59 = vadd.f32 %v3789_v54, %v3745_v28  ;;  %v6477_v54 = vld [vmem:[#allocation5 + $0x880] sm:$0xf0] }
 0x38e   : > { %v3875_v13 = vadd.f32 %v3874_v21, %v3831_v4  ;;  %3925 = vmatmul.bf16.gmra.mxu0 %v7632_v15  ;;  %v6453_v4 = vld [vmem:[#allocation5 + $0x7c0] sm:$0xf0]  ;;  %v6054_v21 = vld [vmem:[#allocation5 + $0x878] sm:$0xf] }
 0x38f   : > { %3969 = vmatmul.bf16.gmra.mxu1 %v7634_v47  ;;  %v5959_v28 = vor.u32 %v6453_v4, %v5958_v44  ;;  %v6055_v56 = vor.u32 %v6477_v54, %v6054_v21 }
 0x390   : > { %v7775_v50 = vadd.f32 %v3875_v13, %v7453_v33  ;;  %4013 = vmatmul.bf16.gmra.mxu2 %v7636_v36  ;;  %v5766_v13 = vld [vmem:[#allocation5 + $0x638] sm:$0xf] }
 0x391   : > { %4057 = vmatmul.bf16.gmra.mxu3 %v7639_v7  ;;  %v5767_v22 = vor.u32 %v6405_v52, %v5766_v13  ;;  %4176 = vmatpush.bf16.msra.mxu2 %v5959_v28 }
 0x392   : > { %4220 = vmatpush.bf16.msra.mxu3 %v6055_v56  ;;  %v5946_v56 = vld [vmem:[#allocation5 + $0x7a0] sm:$0xf] }
 0x393   : > { %v3833_v45 = vpop.f32.mrf.mxu2  ;;  %v3747_v0 = vpop.f32.mrf.mxu0  ;;  %4088 = vmatpush.bf16.msra.mxu0 %v5767_v22  ;;  %v6450_v22 = vld [vmem:[#allocation5 + $0x7a8] sm:$0xf0] }
 0x394   : > { %v3834_v49 = vadd.f32 %v3833_v45, %v3790_v59  ;;  %v3877_v48 = vpop.f32.mrf.mxu3  ;;  %v3791_v33 = vpop.f32.mrf.mxu1  ;;  %v6429_v59 = vld [vmem:[#allocation5 + $0x700] sm:$0xf0] }
 0x395   : > { %v3792_v12 = vadd.f32 %v3791_v33, %v3747_v0  ;;  %v5863_v17 = vor.u32 %v6429_v59, %v5862_v11  ;;  %v5947_v11 = vor.u32 %v6450_v22, %v5946_v56  ;;  %v6474_v59 = vld [vmem:[#allocation5 + $0x868] sm:$0xf0]  ;;  %v6447_v56 = vld [vmem:[#allocation5 + $0x790] sm:$0xf0] }
 0x396   : > { %v3878_v41 = vadd.f32 %v3877_v48, %v3834_v49 }
 0x397   : > { %4132 = vmatpush.bf16.msra.mxu1 %v5863_v17  ;;  %v6402_v17 = vld [vmem:[#allocation5 + $0x628] sm:$0xf0]  ;;  %4177 = vmatpush.bf16.msra.mxu2 %v5947_v11 }
 0x398   : > { %v7781_v30 = vadd.f32 %v3878_v41, %v7460_v2 }
 0x39b   : > { %v3835_v27 = vpop.f32.mrf.mxu2  ;;  %v3750_v48 = vpop.f32.mrf.mxu0 }
 0x39c   : > { %v3836_v45 = vadd.f32 %v3835_v27, %v3792_v12  ;;  %v3879_v49 = vpop.f32.mrf.mxu3  ;;  %v3794_v2 = vpop.f32.mrf.mxu1  ;;  %v5754_v27 = vld [vmem:[#allocation5 + $0x620] sm:$0xf] }
 0x39d   : > { %v3795_v33 = vadd.f32 %v3794_v2, %v3750_v48  ;;  %v5850_v48 = vld [vmem:[#allocation5 + $0x6e0] sm:$0xf]  ;;  %v6426_v2 = vld [vmem:[#allocation5 + $0x6e8] sm:$0xf0] }
 0x39e   : > { %v3880_v0 = vadd.f32 %v3879_v49, %v3836_v45  ;;  %3930 = vmatmul.bf16.gmra.mxu0 %v7658_v39  ;;  %v5755_v49 = vor.u32 %v6402_v17, %v5754_v27 }
 0x39f   : > { %3974 = vmatmul.bf16.gmra.mxu1 %v7660_v3 }
 0x3a0   : > { %v7785_v41 = vadd.f32 %v3880_v0, %v7463_v43  ;;  %4018 = vmatmul.bf16.gmra.mxu2 %v7662_v1  ;;  %v6042_v43 = vld [vmem:[#allocation5 + $0x860] sm:$0xf]  ;;  %4089 = vmatpush.bf16.msra.mxu0 %v5755_v49 }
 0x3a1   : > { %4062 = vmatmul.bf16.gmra.mxu3 %v7665_v25  ;;  %v6043_v45 = vor.u32 %v6474_v59, %v6042_v43 }
 0x3a3   : > { %v3838_v12 = vpop.f32.mrf.mxu2  ;;  %v3752_v21 = vpop.f32.mrf.mxu0  ;;  %4221 = vmatpush.bf16.msra.mxu3 %v6043_v45 }
 0x3a4   : > { %v3839_v44 = vadd.f32 %v3838_v12, %v3795_v33  ;;  %v3882_v4 = vpop.f32.mrf.mxu3  ;;  %v3796_v28 = vpop.f32.mrf.mxu1  ;;  %v5851_v33 = vor.u32 %v6426_v2, %v5850_v48  ;;  %v6030_v48 = vld [vmem:[#allocation5 + $0x848] sm:$0xf]  ;;  %v6471_v2 = vld [vmem:[#allocation5 + $0x850] sm:$0xf0] }
 0x3a5   : > { %v3797_v13 = vadd.f32 %v3796_v28, %v3752_v21 }
 0x3a6   : > { %v3883_v54 = vadd.f32 %v3882_v4, %v3839_v44  ;;  %4133 = vmatpush.bf16.msra.mxu1 %v5851_v33  ;;  %v6031_v33 = vor.u32 %v6471_v2, %v6030_v48 }
 0x3a8   : > { %v7791_v52 = vadd.f32 %v3883_v54, %v7470_v42  ;;  %4222 = vmatpush.bf16.msra.mxu3 %v6031_v33 }
 0x3ab   : > { %v3840_v0 = vpop.f32.mrf.mxu2  ;;  %v3755_v4 = vpop.f32.mrf.mxu0 }
 0x3ac   : > { %v3841_v12 = vadd.f32 %v3840_v0, %v3797_v13  ;;  %v3884_v44 = vpop.f32.mrf.mxu3  ;;  %v3799_v42 = vpop.f32.mrf.mxu1  ;;  %v5934_v13 = vld [vmem:[#allocation5 + $0x788] sm:$0xf] }
 0x3ad   : > { %v3800_v28 = vadd.f32 %v3799_v42, %v3755_v4  ;;  %v5935_v22 = vor.u32 %v6447_v56, %v5934_v13  ;;  %v5742_v0 = vld [vmem:[#allocation5 + $0x608] sm:$0xf]  ;;  %v6423_v4 = vld [vmem:[#allocation5 + $0x6d0] sm:$0xf0] }
 0x3ae   : > { %v3885_v21 = vadd.f32 %v3884_v44, %v3841_v12  ;;  %3935 = vmatmul.bf16.gmra.mxu0 %v7684_v60  ;;  %v6399_v12 = vld [vmem:[#allocation5 + $0x610] sm:$0xf0]  ;;  %v5838_v44 = vld [vmem:[#allocation5 + $0x6c8] sm:$0xf] }
 0x3af   : > { %3979 = vmatmul.bf16.gmra.mxu1 %v7686_v26  ;;  %4178 = vmatpush.bf16.msra.mxu2 %v5935_v22  ;;  %v5743_v42 = vor.u32 %v6399_v12, %v5742_v0 }
 0x3b0   : > { %v7795_v54 = vadd.f32 %v3885_v21, %v7473_v18  ;;  %4023 = vmatmul.bf16.gmra.mxu2 %v7688_v20  ;;  %v5839_v21 = vor.u32 %v6423_v4, %v5838_v44 }
 0x3b1   : > { %4067 = vmatmul.bf16.gmra.mxu3 %v7691_v53  ;;  %4090 = vmatpush.bf16.msra.mxu0 %v5743_v42 }
 0x3b2   : > { %4134 = vmatpush.bf16.msra.mxu1 %v5839_v21 }
 0x3b3   : > { %v3843_v43 = vpop.f32.mrf.mxu2  ;;  %v3757_v27 = vpop.f32.mrf.mxu0 }
 0x3b4   : > { %v3844_v11 = vadd.f32 %v3843_v43, %v3800_v28  ;;  %v3887_v59 = vpop.f32.mrf.mxu3  ;;  %v3801_v17 = vpop.f32.mrf.mxu1 }
 0x3b5   : > { %v3802_v49 = vadd.f32 %v3801_v17, %v3757_v27 }
 0x3b6   : > { %v3888_v45 = vadd.f32 %v3887_v59, %v3844_v11 }
 0x3b8   : > { %v7801_v18 = vadd.f32 %v3888_v45, %v7480_v31 }
 0x3bb   : > { %v3845_v13 = vpop.f32.mrf.mxu2  ;;  %v3760_v22 = vpop.f32.mrf.mxu0 }
 0x3bc   : > { %v3846_v28 = vadd.f32 %v3845_v13, %v3802_v49  ;;  %v3889_v56 = vpop.f32.mrf.mxu3  ;;  %v3804_v43 = vpop.f32.mrf.mxu1 }
 0x3bd   : > { %v3805_v31 = vadd.f32 %v3804_v43, %v3760_v22 }
 0x3be   : > { %v3890_v11 = vadd.f32 %v3889_v56, %v3846_v28  ;;  %3940 = vmatmul.bf16.gmra.mxu0 %v7710_v37  ;;  %v8212_v28 = vld [vmem:[#allocation43_spill] sm:$0xff] }
 0x3bf   : > { %3984 = vmatmul.bf16.gmra.mxu1 %v7712_v58 }
 0x3c0   : > { %v7805_v59 = vadd.f32 %v3890_v11, %v7483_v51  ;;  %4028 = vmatmul.bf16.gmra.mxu2 %v7714_v57 }
 0x3c1   : > { %4072 = vmatmul.bf16.gmra.mxu3 %v7717_v34 }
 0x3c3   : > { %v3848_v27 = vpop.f32.mrf.mxu2  ;;  %v3762_v49 = vpop.f32.mrf.mxu0 }
 0x3c4   : > { %v3849_v17 = vadd.f32 %v3848_v27, %v3805_v31  ;;  %v3892_v45 = vpop.f32.mrf.mxu3  ;;  %v3806_v48 = vpop.f32.mrf.mxu1 }
 0x3c5   : > { %v3807_v0 = vadd.f32 %v3806_v48, %v3762_v49 }
 0x3c6   : > { %v3893_v2 = vadd.f32 %v3892_v45, %v3849_v17 }
 0x3c8   : > { %v7811_v33 = vadd.f32 %v3893_v2, %v7490_v63 }
 0x3cb   : > { %v3850_v12 = vpop.f32.mrf.mxu2  ;;  %v3765_v4 = vpop.f32.mrf.mxu0 }
 0x3cc   : > { %v3851_v44 = vadd.f32 %v3850_v12, %v3807_v0  ;;  %v3894_v51 = vpop.f32.mrf.mxu3  ;;  %v3809_v42 = vpop.f32.mrf.mxu1 }
 0x3cd   : > { %v3810_v13 = vadd.f32 %v3809_v42, %v3765_v4 }
 0x3ce   : > { %v3895_v21 = vadd.f32 %v3894_v51, %v3851_v44  ;;  %3945 = vmatmul.bf16.gmra.mxu0 %v7736_v29 }
 0x3cf   : > { %3989 = vmatmul.bf16.gmra.mxu1 %v7738_v10 }
 0x3d0   : > { %v7815_v56 = vadd.f32 %v3895_v21, %v8212_v28  ;;  %4033 = vmatmul.bf16.gmra.mxu2 %v7740_v24 }
 0x3d1   : > { %4077 = vmatmul.bf16.gmra.mxu3 %v7743_v19 }
 0x3d3   : > { %v3853_v63 = vpop.f32.mrf.mxu2  ;;  %v3767_v11 = vpop.f32.mrf.mxu0 }
 0x3d4   : > { %v3854_v22 = vadd.f32 %v3853_v63, %v3810_v13  ;;  %v3897_v43 = vpop.f32.mrf.mxu3  ;;  %v3811_v31 = vpop.f32.mrf.mxu1 }
 0x3d5   : > { %v3812_v17 = vadd.f32 %v3811_v31, %v3767_v11 }
 0x3d6   : > { %v3898_v27 = vadd.f32 %v3897_v43, %v3854_v22 }
 0x3d8   : > { %v7821_v45 = vadd.f32 %v3898_v27, %v7500_v6 }
 0x3db   : > { %v3855_v49 = vpop.f32.mrf.mxu2  ;;  %v3770_v0 = vpop.f32.mrf.mxu0 }
 0x3dc   : > { %v3856_v48 = vadd.f32 %v3855_v49, %v3812_v17  ;;  %v3899_v2 = vpop.f32.mrf.mxu3  ;;  %v3814_v12 = vpop.f32.mrf.mxu1 }
 0x3dd   : > { %v3815_v51 = vadd.f32 %v3814_v12, %v3770_v0 }
 0x3de   : > { %v3900_v44 = vadd.f32 %v3899_v2, %v3856_v48  ;;  %4091 = vmatmul.bf16.vlgmr.msra.gmra.mxu0 %v7580_v5 }
 0x3df   : > { %4135 = vmatmul.bf16.vlgmr.msra.gmra.mxu1 %v7582_v62 }
 0x3e0   : > { %v7825_v4 = vadd.f32 %v3900_v44, %v7503_v14  ;;  %4179 = vmatmul.bf16.vlgmr.msra.gmra.mxu2 %v7584_v32  ;;  %v8213_v44 = vld [vmem:[#allocation18_spill] sm:$0xff] }
 0x3e1   : > { %4223 = vmatmul.bf16.vlgmr.msra.gmra.mxu3 %v7587_v40 }
 0x3e3   : > { %v3858_v6 = vpop.f32.mrf.mxu2  ;;  %v3772_v13 = vpop.f32.mrf.mxu0 }
 0x3e4   : > { %v3859_v42 = vadd.f32 %v3858_v6, %v3815_v51  ;;  %v3902_v21 = vpop.f32.mrf.mxu3  ;;  %v3816_v28 = vpop.f32.mrf.mxu1 }
 0x3e5   : > { %v3817_v22 = vadd.f32 %v3816_v28, %v3772_v13  ;;  %v8214_v28 = vld [vmem:[#allocation19_spill] sm:$0xff] }
 0x3e6   : > { %v3903_v63 = vadd.f32 %v3902_v21, %v3859_v42 }
 0x3e8   : > { %v7831_v43 = vadd.f32 %v3903_v63, %v7510_v46 }
 0x3eb   : > { %v3860_v5 = vpop.f32.mrf.mxu2  ;;  %v3916_v31 = vpop.f32.mrf.mxu0 }
 0x3ec   : > { %v3861_v11 = vadd.f32 %v3860_v5, %v3817_v22  ;;  %v3904_v14 = vpop.f32.mrf.mxu3  ;;  %v3960_v27 = vpop.f32.mrf.mxu1 }
 0x3ed   : > { %v3961_v17 = vadd.f32 %v3960_v27, %v3916_v31 }
 0x3ee   : > { %v3905_v62 = vadd.f32 %v3904_v14, %v3861_v11  ;;  %4096 = vmatmul.bf16.gmra.mxu0 %v7606_v35  ;;  %v4315_v35 = vlaneseq }
 0x3ef   : > { %4140 = vmatmul.bf16.gmra.mxu1 %v7608_v38 }
 0x3f0   : > { %v7835_v32 = vadd.f32 %v3905_v62, %v7513_v8  ;;  %4184 = vmatmul.bf16.gmra.mxu2 %v7610_v55  ;;  %v7843_v38 = vshrl.u32 %v4315_v35, 7 }
 0x3f1   : > { %4228 = vmatmul.bf16.gmra.mxu3 %v7613_v16 }
 0x3f2   : > { %vm4317_vm0 = vcmp.lt.s32.totalorder %v7843_v38, 7  ;;  %vm4346_vm1 = vcmp.lt.s32.totalorder %v7843_v38, 6 }
 0x3f3   : > { %v4004_v46 = vpop.f32.mrf.mxu2  ;;  %v3918_v48 = vpop.f32.mrf.mxu0 }
 0x3f4   : > { %v4005_v40 = vadd.f32 %v4004_v46, %v3961_v17  ;;  %v4048_v49 = vpop.f32.mrf.mxu3  ;;  %v3962_v2 = vpop.f32.mrf.mxu1  ;;  %v8215_v46 = vld [vmem:[#allocation20_spill] sm:$0xff] }
 0x3f5   : > { %v3963_v12 = vadd.f32 %v3962_v2, %v3918_v48 }
 0x3f6   : > { %v4049_v0 = vadd.f32 %v4048_v49, %v4005_v40 }
 0x3f8   : > { %v7841_v51 = vadd.f32 %v4049_v0, %v8213_v44 }
 0x3fa   : > { %v4301_v22 = vrot.slane %v7841_v51, 1 }
 0x3fb   : > { %v4006_v6 = vpop.f32.mrf.mxu2  ;;  %v3921_v21 = vpop.f32.mrf.mxu0 }
 0x3fc   : > { %v4007_v8 = vadd.f32 %v4006_v6, %v3963_v12  ;;  %v4050_v42 = vpop.f32.mrf.mxu3  ;;  %v3965_v55 = vpop.f32.mrf.mxu1 }
 0x3fd   : > { %v3966_v16 = vadd.f32 %v3965_v55, %v3921_v21 }
 0x3fe   : > { %v4051_v13 = vadd.f32 %v4050_v42, %v4007_v8  ;;  %4101 = vmatmul.bf16.gmra.mxu0 %v7632_v15  ;;  %v8216_v8 = vld [vmem:[#allocation21_spill] sm:$0xff] }
 0x3ff   : > { %4145 = vmatmul.bf16.gmra.mxu1 %v7634_v47 }
 0x400   : > { %v4263_v63 = vadd.f32 %v4051_v13, %v8214_v28  ;;  %4189 = vmatmul.bf16.gmra.mxu2 %v7636_v36 }
 0x401   : > { %4233 = vmatmul.bf16.gmra.mxu3 %v7639_v7 }
 0x402   : > { %v4302_v5 = vrot.slane %v4263_v63, 1 }
 0x403   : > { %v4009_v11 = vpop.f32.mrf.mxu2  ;;  %v3923_v27 = vpop.f32.mrf.mxu0 }
 0x404   : > { %v4330_v14 = vsel %vm4317_vm0, %v4301_v22, %v4302_v5  ;;  %v4010_v15 = vadd.f32 %v4009_v11, %v3966_v16  ;;  %v4053_v31 = vpop.f32.mrf.mxu3  ;;  %v3967_v36 = vpop.f32.mrf.mxu1 }
 0x405   : > { %v7857_v47 = vadd.f32 %v4330_v14, %v7771_v23  ;;  %v3968_v17 = vadd.f32 %v3967_v36, %v3923_v27  ;;  %v8217_v14 = vld [vmem:[#allocation22_spill] sm:$0xff] }
 0x406   : > { %v4054_v62 = vadd.f32 %v4053_v31, %v4010_v15 }
 0x408   : > { %v4266_v7 = vadd.f32 %v4054_v62, %v8215_v46 }
 0x40a   : > { %v4303_v40 = vrot.slane %v4266_v7, 1  ;;  %v8218_v7 = vld [vmem:[#allocation23_spill] sm:$0xff] }
 0x40b   : > { %v4011_v49 = vpop.f32.mrf.mxu2  ;;  %v3926_v12 = vpop.f32.mrf.mxu0 }
 0x40c   : > { %v4329_v48 = vsel %vm4317_vm0, %v4302_v5, %v4303_v40  ;;  %v4012_v2 = vadd.f32 %v4011_v49, %v3968_v17  ;;  %v4055_v0 = vpop.f32.mrf.mxu3  ;;  %v3970_v35 = vpop.f32.mrf.mxu1 }
 0x40d   : > { %v7863_v44 = vadd.f32 %v4329_v48, %v7775_v50  ;;  %v3971_v23 = vadd.f32 %v3970_v35, %v3926_v12 }
 0x40e   : > { %v4056_v6 = vadd.f32 %v4055_v0, %v4012_v2  ;;  %4106 = vmatmul.bf16.gmra.mxu0 %v7658_v39 }
 0x40f   : > { %4150 = vmatmul.bf16.gmra.mxu1 %v7660_v3 }
 0x410   : > { %v4269_v42 = vadd.f32 %v4056_v6, %v8216_v8  ;;  %4194 = vmatmul.bf16.gmra.mxu2 %v7662_v1  ;;  %v8219_v8 = vld [vmem:[#allocation24_spill] sm:$0xff] }
 0x411   : > { %4238 = vmatmul.bf16.gmra.mxu3 %v7665_v25 }
 0x412   : > { %v4304_v21 = vrot.slane %v4269_v42, 1 }
 0x413   : > { %v4014_v55 = vpop.f32.mrf.mxu2  ;;  %v3928_v28 = vpop.f32.mrf.mxu0 }
 0x414   : > { %v4328_v13 = vsel %vm4317_vm0, %v4303_v40, %v4304_v21  ;;  %v4015_v50 = vadd.f32 %v4014_v55, %v3971_v23  ;;  %v4058_v16 = vpop.f32.mrf.mxu3  ;;  %v3972_v39 = vpop.f32.mrf.mxu1 }
 0x415   : > { %v7873_v63 = vadd.f32 %v4328_v13, %v7781_v30  ;;  %v3973_v11 = vadd.f32 %v3972_v39, %v3928_v28  ;;  %v8220_v39 = vld [vmem:[#allocation25_spill] sm:$0xff] }
 0x416   : > { %v4059_v5 = vadd.f32 %v4058_v16, %v4015_v50 }
 0x418   : > { %v4272_v3 = vadd.f32 %v4059_v5, %v8217_v14 }
 0x41a   : > { %v4305_v15 = vrot.slane %v4272_v3, 1 }
 0x41b   : > { %v4016_v1 = vpop.f32.mrf.mxu2  ;;  %v3931_v36 = vpop.f32.mrf.mxu0 }
 0x41c   : > { %v4327_v25 = vsel %vm4317_vm0, %v4304_v21, %v4305_v15  ;;  %v4017_v31 = vadd.f32 %v4016_v1, %v3973_v11  ;;  %v4060_v27 = vpop.f32.mrf.mxu3  ;;  %v3975_v17 = vpop.f32.mrf.mxu1 }
 0x41d   : > { %v7879_v62 = vadd.f32 %v4327_v25, %v7785_v41  ;;  %v3976_v30 = vadd.f32 %v3975_v17, %v3931_v36  ;;  %v8221_v36 = vld [vmem:[#allocation26_spill] sm:$0xff] }
 0x41e   : > { %v4061_v46 = vadd.f32 %v4060_v27, %v4017_v31  ;;  %4111 = vmatmul.bf16.gmra.mxu0 %v7684_v60 }
 0x41f   : > { %4155 = vmatmul.bf16.gmra.mxu1 %v7686_v26 }
 0x420   : > { %v4275_v40 = vadd.f32 %v4061_v46, %v8218_v7  ;;  %4199 = vmatmul.bf16.gmra.mxu2 %v7688_v20 }
 0x421   : > { %4243 = vmatmul.bf16.gmra.mxu3 %v7691_v53 }
 0x422   : > { %v4306_v49 = vrot.slane %v4275_v40, 1 }
 0x423   : > { %v4019_v48 = vpop.f32.mrf.mxu2  ;;  %v3933_v12 = vpop.f32.mrf.mxu0 }
 0x424   : > { %v4326_v2 = vsel %vm4317_vm0, %v4305_v15, %v4306_v49  ;;  %v4020_v41 = vadd.f32 %v4019_v48, %v3976_v30  ;;  %v4063_v0 = vpop.f32.mrf.mxu3  ;;  %v3977_v60 = vpop.f32.mrf.mxu1 }
 0x425   : > { %v7889_v35 = vadd.f32 %v4326_v2, %v7791_v52  ;;  %v3978_v23 = vadd.f32 %v3977_v60, %v3933_v12  ;;  %v8222_v2 = vld [vmem:[#allocation27_spill] sm:$0xff] }
 0x426   : > { %v4064_v6 = vadd.f32 %v4063_v0, %v4020_v41 }
 0x428   : > { %v4278_v26 = vadd.f32 %v4064_v6, %v8219_v8 }
 0x42a   : > { %v4307_v42 = vrot.slane %v4278_v26, 1 }
 0x42b   : > { %v4021_v20 = vpop.f32.mrf.mxu2  ;;  %v3936_v13 = vpop.f32.mrf.mxu0 }
 0x42c   : > { %v4325_v53 = vsel %vm4317_vm0, %v4306_v49, %v4307_v42  ;;  %v4022_v21 = vadd.f32 %v4021_v20, %v3978_v23  ;;  %v4065_v55 = vpop.f32.mrf.mxu3  ;;  %v3980_v16 = vpop.f32.mrf.mxu1  ;;  %v8223_v20 = vld [vmem:[#allocation28_spill] sm:$0xff] }
 0x42d   : > { %v7895_v50 = vadd.f32 %v4325_v53, %v7795_v54  ;;  %v3981_v52 = vadd.f32 %v3980_v16, %v3936_v13 }
 0x42e   : > { %v4066_v28 = vadd.f32 %v4065_v55, %v4022_v21  ;;  %4116 = vmatmul.bf16.gmra.mxu0 %v7710_v37 }
 0x42f   : > { %4160 = vmatmul.bf16.gmra.mxu1 %v7712_v58 }
 0x430   : > { %v4281_v5 = vadd.f32 %v4066_v28, %v8220_v39  ;;  %4204 = vmatmul.bf16.gmra.mxu2 %v7714_v57  ;;  %v8224_v39 = vld [vmem:[#allocation29_spill] sm:$0xff] }
 0x431   : > { %4248 = vmatmul.bf16.gmra.mxu3 %v7717_v34 }
 0x432   : > { %v4308_v11 = vrot.slane %v4281_v5, 1 }
 0x433   : > { %v4024_v14 = vpop.f32.mrf.mxu2  ;;  %v3938_v1 = vpop.f32.mrf.mxu0 }
 0x434   : > { %v4324_v3 = vsel %vm4317_vm0, %v4307_v42, %v4308_v11  ;;  %v4025_v54 = vadd.f32 %v4024_v14, %v3981_v52  ;;  %v4068_v15 = vpop.f32.mrf.mxu3  ;;  %v3982_v37 = vpop.f32.mrf.mxu1 }
 0x435   : > { %v7905_v25 = vadd.f32 %v4324_v3, %v7801_v18  ;;  %v3983_v27 = vadd.f32 %v3982_v37, %v3938_v1 }
 0x436   : > { %v4069_v31 = vadd.f32 %v4068_v15, %v4025_v54 }
 0x438   : > { %v4284_v58 = vadd.f32 %v4069_v31, %v8221_v36  ;;  %v8225_v36 = vld [vmem:[#allocation30_spill] sm:$0xff] }
 0x43a   : > { %v4309_v17 = vrot.slane %v4284_v58, 1 }
 0x43b   : > { %v4026_v57 = vpop.f32.mrf.mxu2  ;;  %v3941_v7 = vpop.f32.mrf.mxu0 }
 0x43c   : > { %v4323_v34 = vsel %vm4317_vm0, %v4308_v11, %v4309_v17  ;;  %v4027_v46 = vadd.f32 %v4026_v57, %v3983_v27  ;;  %v4070_v30 = vpop.f32.mrf.mxu3  ;;  %v3985_v49 = vpop.f32.mrf.mxu1 }
 0x43d   : > { %v7911_v40 = vadd.f32 %v4323_v34, %v7805_v59  ;;  %v3986_v18 = vadd.f32 %v3985_v49, %v3941_v7 }
 0x43e   : > { %v4071_v48 = vadd.f32 %v4070_v30, %v4027_v46  ;;  %4121 = vmatmul.bf16.gmra.mxu0 %v7736_v29 }
 0x43f   : > { %4165 = vmatmul.bf16.gmra.mxu1 %v7738_v10 }
 0x440   : > { %v4287_v41 = vadd.f32 %v4071_v48, %v8222_v2  ;;  %4209 = vmatmul.bf16.gmra.mxu2 %v7740_v24 }
 0x441   : > { %4253 = vmatmul.bf16.gmra.mxu3 %v7743_v19 }
 0x442   : > { %v4310_v0 = vrot.slane %v4287_v41, 1 }
 0x443   : > { %v4029_v12 = vpop.f32.mrf.mxu2  ;;  %v3943_v23 = vpop.f32.mrf.mxu0 }
 0x444   : > { %v4322_v60 = vsel %vm4317_vm0, %v4309_v17, %v4310_v0  ;;  %v4030_v59 = vadd.f32 %v4029_v12, %v3986_v18  ;;  %v4073_v6 = vpop.f32.mrf.mxu3  ;;  %v3987_v29 = vpop.f32.mrf.mxu1 }
 0x445   : > { %v7921_v8 = vadd.f32 %v4322_v60, %v7811_v33  ;;  %v3988_v42 = vadd.f32 %v3987_v29, %v3943_v23 }
 0x446   : > { %v4074_v26 = vadd.f32 %v4073_v6, %v4030_v59 }
 0x448   : > { %v4290_v10 = vadd.f32 %v4074_v26, %v8223_v20 }
 0x44a   : > { %v4311_v53 = vrot.slane %v4290_v10, 1 }
 0x44b   : > { %v4031_v24 = vpop.f32.mrf.mxu2  ;;  %v3946_v13 = vpop.f32.mrf.mxu0 }
 0x44c   : > { %v4321_v19 = vsel %vm4317_vm0, %v4310_v0, %v4311_v53  ;;  %v4032_v21 = vadd.f32 %v4031_v24, %v3988_v42  ;;  %v4075_v55 = vpop.f32.mrf.mxu3  ;;  %v3990_v28 = vpop.f32.mrf.mxu1 }
 0x44d   : > { %v7927_v16 = vadd.f32 %v4321_v19, %v7815_v56  ;;  %v3991_v33 = vadd.f32 %v3990_v28, %v3946_v13 }
 0x44e   : > { %v4076_v52 = vadd.f32 %v4075_v55, %v4032_v21 }
 0x450   : > { %v4293_v5 = vadd.f32 %v4076_v52, %v8224_v39  ;;  %v7963_v39 = vld [vmem:[#allocation7] ss:$0 sm:$0xff] }
 0x452   : > { %v4312_v11 = vrot.slane %v4293_v5, 1 }
 0x453   : > { %v4034_v14 = vpop.f32.mrf.mxu2  ;;  %v3948_v1 = vpop.f32.mrf.mxu0 }
 0x454   : > { %v4320_v3 = vsel %vm4317_vm0, %v4311_v53, %v4312_v11  ;;  %v4035_v54 = vadd.f32 %v4034_v14, %v3991_v33  ;;  %v4078_v15 = vpop.f32.mrf.mxu3  ;;  %v3992_v31 = vpop.f32.mrf.mxu1 }
 0x455   : > { %v7933_v37 = vadd.f32 %v4320_v3, %v7821_v45  ;;  %v3993_v56 = vadd.f32 %v3992_v31, %v3948_v1  ;;  %v8226_v45 = vld [vmem:[#allocation31_spill] sm:$0xff] }
 0x456   : > { %v4079_v27 = vadd.f32 %v4078_v15, %v4035_v54 }
 0x458   : > { %v4296_v58 = vadd.f32 %v4079_v27, %v8225_v36 }
 0x45a   : > { %v4313_v17 = vrot.slane %v4296_v58, 1 }
 0x45b   : > { %v4036_v57 = vpop.f32.mrf.mxu2  ;;  %v4092_v7 = vpop.f32.mrf.mxu0 }
 0x45c   : > { %v4319_v34 = vsel %vm4317_vm0, %v4312_v11, %v4313_v17  ;;  %v4037_v46 = vadd.f32 %v4036_v57, %v3993_v56  ;;  %v4080_v30 = vpop.f32.mrf.mxu3  ;;  %v4136_v48 = vpop.f32.mrf.mxu1  ;;  %v8229_v56 = vld [vmem:[#allocation34_spill] sm:$0xff] }
 0x45d   : > { %v7939_v49 = vadd.f32 %v4319_v34, %v7825_v4  ;;  %v4137_v0 = vadd.f32 %v4136_v48, %v4092_v7 }
 0x45e   : > { %v4081_v18 = vadd.f32 %v4080_v30, %v4037_v46 }
 0x460   : > { %v4299_v2 = vadd.f32 %v4081_v18, %v8226_v45 }
 0x462   : > { %v4314_v41 = vrot.slane %v4299_v2, 1  ;;  %v8230_v2 = vld [vmem:[#allocation35_spill] sm:$0xff] }
 0x463   : > { %v4180_v12 = vpop.f32.mrf.mxu2  ;;  %v4094_v23 = vpop.f32.mrf.mxu0 }
 0x464   : > { %v4318_v60 = vsel %vm4317_vm0, %v4313_v17, %v4314_v41  ;;  %v4331_v59 = vsel %vm4317_vm0, %v4314_v41, %v4301_v22  ;;  %v4224_v6 = vpop.f32.mrf.mxu3  ;;  %v4138_v26 = vpop.f32.mrf.mxu1  ;;  %v4181_v42 = vadd.f32 %v4180_v12, %v4137_v0  ;;  %v8227_v22 = vld [vmem:[#allocation32_spill] sm:$0xff] }
 0x465   : > { %v7949_v4 = vadd.f32 %v4318_v60, %v7831_v43  ;;  %v7952_v29 = vadd.f32 %v4331_v59, %v7835_v32  ;;  %v4139_v10 = vadd.f32 %v4138_v26, %v4094_v23  ;;  %v8228_v43 = vld [vmem:[#allocation33_spill] sm:$0xff] }
 0x466   : > { %v4225_v20 = vadd.f32 %v4224_v6, %v4181_v42 }
 0x468   : > { %v7955_v55 = vadd.f32 %v4225_v20, %v8227_v22 }
 0x46a   : > { %v4332_v32 = vrot.slane %v7955_v55, 2 }
 0x46b   : > { %v4182_v53 = vpop.f32.mrf.mxu2  ;;  %v4097_v19 = vpop.f32.mrf.mxu0 }
 0x46c   : > { %v4183_v24 = vadd.f32 %v4182_v53, %v4139_v10  ;;  %v4226_v51 = vpop.f32.mrf.mxu3  ;;  %v4141_v21 = vpop.f32.mrf.mxu1  ;;  %v8231_v53 = vld [vmem:[#allocation36_spill] sm:$0xff] }
 0x46d   : > { %v4142_v52 = vadd.f32 %v4141_v21, %v4097_v19 }
 0x46e   : > { %v4227_v13 = vadd.f32 %v4226_v51, %v4183_v24 }
 0x470   : > { %v4264_v28 = vadd.f32 %v4227_v13, %v8228_v43 }
 0x472   : > { %v4333_v33 = vrot.slane %v4264_v28, 2 }
 0x473   : > { %v4185_v5 = vpop.f32.mrf.mxu2  ;;  %v4099_v54 = vpop.f32.mrf.mxu0 }
 0x474   : > { %v4359_v11 = vsel %vm4346_vm1, %v4332_v32, %v4333_v33  ;;  %v4186_v14 = vadd.f32 %v4185_v5, %v4142_v52  ;;  %v4229_v3 = vpop.f32.mrf.mxu3  ;;  %v4143_v1 = vpop.f32.mrf.mxu1 }
 0x475   : > { %v4375_v15 = vadd.f32 %v7857_v47, %v4359_v11  ;;  %v4144_v17 = vadd.f32 %v4143_v1, %v4099_v54  ;;  %v8232_v11 = vld [vmem:[#allocation37_spill] sm:$0xff] }
 0x476   : > { %v4230_v31 = vadd.f32 %v4229_v3, %v4186_v14 }
 0x477   : > { %v4393_v27 = vadd.f32 %v7963_v39, %v4375_v15 }
 0x478   : > { %v4267_v36 = vadd.f32 %v4230_v31, %v8229_v56 }
 0x479   : > { %4407 = vst [vmem:[%s7972_s29] sm:$0xff] %v4393_v27 }
 0x47a   : > { %v4334_v58 = vrot.slane %v4267_v36, 2 }
 0x47b   : > { %v4187_v57 = vpop.f32.mrf.mxu2  ;;  %v4102_v47 = vpop.f32.mrf.mxu0 }
 0x47c   : > { %v4358_v34 = vsel %vm4346_vm1, %v4333_v33, %v4334_v58  ;;  %v4188_v46 = vadd.f32 %v4187_v57, %v4144_v17  ;;  %v4231_v30 = vpop.f32.mrf.mxu3  ;;  %v4146_v48 = vpop.f32.mrf.mxu1  ;;  %v8233_v57 = vld [vmem:[#allocation38_spill] sm:$0xff] }
 0x47d   : > { %v4376_v7 = vadd.f32 %v7863_v44, %v4358_v34  ;;  %v4147_v0 = vadd.f32 %v4146_v48, %v4102_v47 }
 0x47e   : > { %v4232_v18 = vadd.f32 %v4231_v30, %v4188_v46 }
 0x47f   : > { %v4394_v45 = vadd.f32 %v7963_v39, %v4376_v7 }
 0x480   : > { %v4270_v41 = vadd.f32 %v4232_v18, %v8230_v2 }
 0x481   : > { %4408 = vst [vmem:[%s7972_s29 + $0x8] sm:$0xff] %v4394_v45 }
 0x482   : > { %v4335_v12 = vrot.slane %v4270_v41, 2 }
 0x483   : > { %v4190_v60 = vpop.f32.mrf.mxu2  ;;  %v4104_v26 = vpop.f32.mrf.mxu0 }
 0x484   : > { %v4357_v59 = vsel %vm4346_vm1, %v4334_v58, %v4335_v12  ;;  %v4191_v6 = vadd.f32 %v4190_v60, %v4147_v0  ;;  %v4234_v23 = vpop.f32.mrf.mxu3  ;;  %v4148_v44 = vpop.f32.mrf.mxu1 }
 0x485   : > { %v4377_v42 = vadd.f32 %v7873_v63, %v4357_v59  ;;  %v4149_v19 = vadd.f32 %v4148_v44, %v4104_v26 }
 0x486   : > { %v4235_v20 = vadd.f32 %v4234_v23, %v4191_v6 }
 0x487   : > { %v4395_v10 = vadd.f32 %v7963_v39, %v4377_v42 }
 0x488   : > { %v4273_v24 = vadd.f32 %v4235_v20, %v8231_v53 }
 0x489   : > { %4409 = vst [vmem:[%s7972_s29 + $0x10] sm:$0xff] %v4395_v10 }
 0x48a   : > { %v4336_v51 = vrot.slane %v4273_v24, 2 }
 0x48b   : > { %v4192_v21 = vpop.f32.mrf.mxu2  ;;  %v4107_v28 = vpop.f32.mrf.mxu0 }
 0x48c   : > { %v4356_v22 = vsel %vm4346_vm1, %v4335_v12, %v4336_v51  ;;  %v4193_v13 = vadd.f32 %v4192_v21, %v4149_v19  ;;  %v4236_v43 = vpop.f32.mrf.mxu3  ;;  %v4151_v63 = vpop.f32.mrf.mxu1  ;;  %v8234_v12 = vld [vmem:[#allocation39_spill] sm:$0xff] }
 0x48d   : > { %v4378_v52 = vadd.f32 %v7879_v62, %v4356_v22  ;;  %v4152_v3 = vadd.f32 %v4151_v63, %v4107_v28 }
 0x48e   : > { %v4237_v33 = vadd.f32 %v4236_v43, %v4193_v13 }
 0x48f   : > { %v4396_v5 = vadd.f32 %v7963_v39, %v4378_v52 }
 0x490   : > { %v4276_v14 = vadd.f32 %v4237_v33, %v8232_v11 }
 0x491   : > { %4410 = vst [vmem:[%s7972_s29 + $0x18] sm:$0xff] %v4396_v5 }
 0x492   : > { %v4337_v54 = vrot.slane %v4276_v14, 2  ;;  %v8236_v14 = vld [vmem:[#allocation41_spill] sm:$0xff] }
 0x493   : > { %v4195_v15 = vpop.f32.mrf.mxu2  ;;  %v4109_v56 = vpop.f32.mrf.mxu0 }
 0x494   : > { %v4355_v1 = vsel %vm4346_vm1, %v4336_v51, %v4337_v54  ;;  %v4196_v31 = vadd.f32 %v4195_v15, %v4152_v3  ;;  %v4239_v27 = vpop.f32.mrf.mxu3  ;;  %v4153_v62 = vpop.f32.mrf.mxu1  ;;  %v8235_v51 = vld [vmem:[#allocation40_spill] sm:$0xff] }
 0x495   : > { %v4379_v36 = vadd.f32 %v7889_v35, %v4355_v1  ;;  %v4154_v30 = vadd.f32 %v4153_v62, %v4109_v56 }
 0x496   : > { %v4240_v58 = vadd.f32 %v4239_v27, %v4196_v31 }
 0x497   : > { %v4397_v17 = vadd.f32 %v7963_v39, %v4379_v36 }
 0x498   : > { %v4279_v34 = vadd.f32 %v4240_v58, %v8233_v57 }
 0x499   : > { %4411 = vst [vmem:[%s7972_s29 + $0x20] sm:$0xff] %v4397_v17 }
 0x49a   : > { %v4338_v46 = vrot.slane %v4279_v34, 2 }
 0x49b   : > { %v4197_v47 = vpop.f32.mrf.mxu2  ;;  %v4112_v45 = vpop.f32.mrf.mxu0 }
 0x49c   : > { %v4354_v7 = vsel %vm4346_vm1, %v4337_v54, %v4338_v46  ;;  %v4198_v48 = vadd.f32 %v4197_v47, %v4154_v30  ;;  %v4241_v18 = vpop.f32.mrf.mxu3  ;;  %v4156_v35 = vpop.f32.mrf.mxu1 }
 0x49d   : > { %v4380_v2 = vadd.f32 %v7895_v50, %v4354_v7  ;;  %v4157_v59 = vadd.f32 %v4156_v35, %v4112_v45 }
 0x49e   : > { %v4242_v41 = vadd.f32 %v4241_v18, %v4198_v48 }
 0x49f   : > { %v4398_v0 = vadd.f32 %v7963_v39, %v4380_v2 }
 0x4a0   : > { %v4282_v60 = vadd.f32 %v4242_v41, %v8234_v12 }
 0x4a1   : > { %4412 = vst [vmem:[%s7972_s29 + $0x28] sm:$0xff] %v4398_v0 }
 0x4a2   : > { %v4339_v6 = vrot.slane %v4282_v60, 2 }
 0x4a3   : > { %v4200_v23 = vpop.f32.mrf.mxu2  ;;  %v4114_v20 = vpop.f32.mrf.mxu0 }
 0x4a4   : > { %v4353_v26 = vsel %vm4346_vm1, %v4338_v46, %v4339_v6  ;;  %v4201_v42 = vadd.f32 %v4200_v23, %v4157_v59  ;;  %v4244_v44 = vpop.f32.mrf.mxu3  ;;  %v4158_v50 = vpop.f32.mrf.mxu1 }
 0x4a5   : > { %v4381_v10 = vadd.f32 %v7905_v25, %v4353_v26  ;;  %v4159_v22 = vadd.f32 %v4158_v50, %v4114_v20 }
 0x4a6   : > { %v4245_v53 = vadd.f32 %v4244_v44, %v4201_v42 }
 0x4a7   : > { %v4399_v24 = vadd.f32 %v7963_v39, %v4381_v10 }
 0x4a8   : > { %v4285_v19 = vadd.f32 %v4245_v53, %v8235_v51 }
 0x4a9   : > { %4413 = vst [vmem:[%s7972_s29 + $0x30] sm:$0xff] %v4399_v24 }
 0x4aa   : > { %v4340_v21 = vrot.slane %v4285_v19, 2 }
 0x4ab   : > { %v4202_v13 = vpop.f32.mrf.mxu2  ;;  %v4117_v63 = vpop.f32.mrf.mxu0 }
 0x4ac   : > { %v4352_v43 = vsel %vm4346_vm1, %v4339_v6, %v4340_v21  ;;  %v4203_v28 = vadd.f32 %v4202_v13, %v4159_v22  ;;  %v4246_v52 = vpop.f32.mrf.mxu3  ;;  %v4161_v25 = vpop.f32.mrf.mxu1  ;;  %v8238_v13 = vld [vmem:[#allocation44_spill] sm:$0xff] }
 0x4ad   : > { %v4382_v33 = vadd.f32 %v7911_v40, %v4352_v43  ;;  %v4162_v54 = vadd.f32 %v4161_v25, %v4117_v63 }
 0x4ae   : > { %v4247_v5 = vadd.f32 %v4246_v52, %v4203_v28 }
 0x4af   : > { %v4400_v11 = vadd.f32 %v7963_v39, %v4382_v33 }
 0x4b0   : > { %v4288_v3 = vadd.f32 %v4247_v5, %v8236_v14 }
 0x4b1   : > { %4414 = vst [vmem:[%s7972_s29 + $0x38] sm:$0xff] %v4400_v11 }
 0x4b2   : > { %v4341_v15 = vrot.slane %v4288_v3, 2 }
 0x4b3   : > { %v4205_v1 = vpop.f32.mrf.mxu2  ;;  %v4119_v36 = vpop.f32.mrf.mxu0 }
 0x4b4   : > { %v4351_v31 = vsel %vm4346_vm1, %v4340_v21, %v4341_v15  ;;  %v4206_v27 = vadd.f32 %v4205_v1, %v4162_v54  ;;  %v4249_v56 = vpop.f32.mrf.mxu3  ;;  %v4163_v40 = vpop.f32.mrf.mxu1 }
 0x4b5   : > { %v4383_v62 = vadd.f32 %v7921_v8, %v4351_v31  ;;  %v4164_v46 = vadd.f32 %v4163_v40, %v4119_v36 }
 0x4b6   : > { %v4250_v58 = vadd.f32 %v4249_v56, %v4206_v27 }
 0x4b7   : > { %v4401_v17 = vadd.f32 %v7963_v39, %v4383_v62 }
 0x4b8   : > { %v4291_v57 = vadd.f32 %v4250_v58, %v7752_v61 }
 0x4b9   : > { %4415 = vst [vmem:[%s7972_s29 + $0x40] sm:$0xff] %v4401_v17 }
 0x4ba   : > { %v4342_v34 = vrot.slane %v4291_v57, 2 }
 0x4bb   : > { %v4207_v30 = vpop.f32.mrf.mxu2  ;;  %v4122_v8 = vpop.f32.mrf.mxu0 }
 0x4bc   : > { %v4350_v47 = vsel %vm4346_vm1, %v4341_v15, %v4342_v34  ;;  %v4208_v7 = vadd.f32 %v4207_v30, %v4164_v46  ;;  %v4251_v48 = vpop.f32.mrf.mxu3  ;;  %v4166_v45 = vpop.f32.mrf.mxu1 }
 0x4bd   : > { %v4384_v18 = vadd.f32 %v7927_v16, %v4350_v47  ;;  %v4167_v41 = vadd.f32 %v4166_v45, %v4122_v8 }
 0x4be   : > { %v4252_v2 = vadd.f32 %v4251_v48, %v4208_v7 }
 0x4bf   : > { %v4402_v35 = vadd.f32 %v7963_v39, %v4384_v18 }
 0x4c0   : > { %v4294_v61 = vadd.f32 %v4252_v2, %v7755_v9  ;;  %v8237_v9 = vld [vmem:[#allocation42_spill] sm:$0xff] }
 0x4c1   : > { %4416 = vst [vmem:[%s7972_s29 + $0x48] sm:$0xff] %v4402_v35 }
 0x4c2   : > { %v4343_v0 = vrot.slane %v4294_v61, 2 }
 0x4c3   : > { %v4210_v12 = vpop.f32.mrf.mxu2  ;;  %v4124_v42 = vpop.f32.mrf.mxu0 }
 0x4c4   : > { %v4349_v60 = vsel %vm4346_vm1, %v4342_v34, %v4343_v0  ;;  %v4211_v59 = vadd.f32 %v4210_v12, %v4167_v41  ;;  %v4254_v6 = vpop.f32.mrf.mxu3  ;;  %v4168_v44 = vpop.f32.mrf.mxu1 }
 0x4c5   : > { %v4385_v16 = vadd.f32 %v7933_v37, %v4349_v60  ;;  %v4169_v50 = vadd.f32 %v4168_v44, %v4124_v42 }
 0x4c6   : > { %v4255_v23 = vadd.f32 %v4254_v6, %v4211_v59 }
 0x4c7   : > { %v4403_v26 = vadd.f32 %v7963_v39, %v4385_v16 }
 0x4c8   : > { %v4297_v20 = vadd.f32 %v4255_v23, %v8237_v9 }
 0x4c9   : > { %4417 = vst [vmem:[%s7972_s29 + $0x50] sm:$0xff] %v4403_v26 }
 0x4ca   : > { %v4344_v10 = vrot.slane %v4297_v20, 2 }
 0x4cb   : > { %v4212_v53 = vpop.f32.mrf.mxu2 }
 0x4cc   : > { %v4348_v24 = vsel %vm4346_vm1, %v4343_v0, %v4344_v10  ;;  %v4213_v37 = vadd.f32 %v4212_v53, %v4169_v50  ;;  %v4256_v19 = vpop.f32.mrf.mxu3 }
 0x4cd   : > { %v4386_v51 = vadd.f32 %v7939_v49, %v4348_v24 }
 0x4ce   : > { %v4257_v21 = vadd.f32 %v4256_v19, %v4213_v37 }
 0x4cf   : > { %v4404_v22 = vadd.f32 %v7963_v39, %v4386_v51 }
 0x4d0   : > { %v4300_v43 = vadd.f32 %v4257_v21, %v8238_v13 }
 0x4d1   : > { %4418 = vst [vmem:[%s7972_s29 + $0x58] sm:$0xff] %v4404_v22 }
 0x4d2   : > { %v4345_v28 = vrot.slane %v4300_v43, 2 }
 0x4d4   : > { %v4347_v52 = vsel %vm4346_vm1, %v4344_v10, %v4345_v28  ;;  %v4360_v49 = vsel %vm4346_vm1, %v4345_v28, %v4332_v32 }
 0x4d5   : > { %v4387_v63 = vadd.f32 %v7949_v4, %v4347_v52  ;;  %v4388_v33 = vadd.f32 %v7952_v29, %v4360_v49 }
 0x4d7   : > { %v4405_v25 = vadd.f32 %v7963_v39, %v4387_v63  ;;  %v4406_v5 = vadd.f32 %v7963_v39, %v4388_v33 }
 0x4d9   : > { %4419 = vst [vmem:[%s7972_s29 + $0x60] sm:$0xff] %v4405_v25 }
 0x4da   : > { %4420 = vst [vmem:[%s7972_s29 + $0x68] sm:$0xff] %v4406_v5 }
 0x4db   : > { %6742 = shalt.err (!%p6739_p5)
}
 0x4dc   : > { %s6849_s27 = smov 128   ;;  %s6850_s28 = smov 8  }
 0x4dd   : > { %6505 = dma.vmem_to_hbm [thread:$0]  (%p6941_p6), %s4437_s15, 1792, %s4439_s23, %s4422_s5, %s6849_s27, %s6849_s27, %s6850_s28  }
 0x4de PF: > { %s8240_s29 = sld [smem:[#allocation12_spill]]  ;;  %p6527_p7 = scmp.ge.s32.totalorder %s6841_s22, 2 }
 0x4e0   : > { %p6519_p8 = pnand %p6527_p7, %p6947_p10 }
 0x4e2   : > { %p6520_p9 = pneg %p6519_p8 }
 0x4e4   : > { %s4453_s4 = sand.u32 1, %s8240_s29  }
 0x4e5   : > { %s4454_s7 = scalar_lea.sflag [#allocation4], %s4453_s4 }
 0x4e6   : > { %6796 = dma.done.wait (%p6520_p9), %s4454_s7, 1792  }
 0x4e7   : > { %6798 = vsyncadd (%p6520_p9), %s4454_s7, 4294965504  ;;  %s20_s22 = sadd.s32 1, %s6841_s22   ;;  %s8242_s18 = sld [smem:[#allocation13_spill]] }
 0x4e8   : > { %p17_p12 = scmp.ge.s32.totalorder %s20_s22, 6   ;;  %s8243_s20 = sld [smem:[#allocation16_spill]] }
 0x4e9   : > { %s8244_s8 = sld [smem:[#allocation17_spill]]  ;;  %s8245_s12 = smov %s6805_s13 }
 0x4ea   : > { %s8246_s13 = smov %s6809_s14  ;;  %s8247_s14 = smov %s6992_s1 }
 0x4eb   : > { %s8248_s15 = smov %s6817_s16  ;;  %s8249_s16 = smov %s6821_s17 }
 0x4ec   : > { %s8250_s17 = smov %s6989_s24  ;;  %s8251_s19 = smov %s6837_s21 }
 0x4ed   :  { %19 = sbr.rel (!%p17_p12) target bundleno = 13 (0xd), region = 90 }
 0x4ef   : > { %s8252_s21 = smov %s8244_s8 }
 0x4f2   :  { %4460 = vsyncpa [#allocation3], 1 }
 0x4f3   :  { %4462 = vsyncpa [#allocation3 + $0x1], 1 }
 0x4f4   :  { %4463 = vsyncpa [#allocation6], 1 }
 0x4f5   :  { %4464 = vsyncpa [#allocation4], 1 }
 0x4f6   :  { %4466 = vsyncpa [#allocation4 + $0x1], 1 }

</bundles_post_ra>
